<compile_context>
chip_gen: v6e
topology: v6e:2x2x1
jax: 0.10.0
libtpu: 0.0.40
codegen_flags: <defaults>
</compile_context>

<pallas_src>
import jax
import jax.numpy as jnp
import numpy as np
from jax import lax
from jax.experimental import pallas as pl
from jax.experimental.pallas import tpu as pltpu


def bilstm_kernel(xf_ref, xb_ref, lens_ref,
                  wxf_ref, wxb_ref, bf_ref, bb_ref, whh_ref,
                  out_ref,
                  gxf_scr, gxb_scr, hf_scr, cf_scr, hb_scr, cb_scr):
    k = pl.program_id(0)
    nk = pl.num_programs(0)
    Bp, Hp = hf_scr.shape
    R = gxf_scr.shape[0]
    Tc = R // Bp

    # Init carried state at the first time chunk.
    @pl.when(k == 0)
    def _():
        hf_scr[...] = jnp.zeros_like(hf_scr)
        cf_scr[...] = jnp.zeros_like(cf_scr)
        hb_scr[...] = jnp.zeros_like(hb_scr)
        cb_scr[...] = jnp.zeros_like(cb_scr)

    # Phase 1: hoisted input projections — one big bf16 MXU matmul per
    # direction for the whole chunk, bias folded in, f32 accumulate.
    gxf_scr[...] = (jnp.dot(xf_ref[...], wxf_ref[...],
                            preferred_element_type=jnp.float32) + bf_ref[...])
    gxb_scr[...] = (jnp.dot(xb_ref[...], wxb_ref[...],
                            preferred_element_type=jnp.float32) + bb_ref[...])

    # Lengths broadcast over the hidden dim: a single int32 vreg.
    lens = lens_ref[...]

    # Global time offsets for this chunk (backward chunk is index-reversed).
    tf0 = k * Tc
    tb0 = (nk - 1 - k) * Tc

    def cell(gates, c):
        # PyTorch gate order (i, f, g, o); each slice is a full 128-lane tile.
        i = jax.nn.sigmoid(gates[:, 0 * Hp:1 * Hp])
        f = jax.nn.sigmoid(gates[:, 1 * Hp:2 * Hp])
        g = jnp.tanh(gates[:, 2 * Hp:3 * Hp])
        o = jax.nn.sigmoid(gates[:, 3 * Hp:4 * Hp])
        c_new = f * c + i * g
        h_new = o * jnp.tanh(c_new)
        return h_new, c_new

    # Phase 2: recurrence. One block-diagonal K=2*Hp recurrent matmul covers
    # both directions; the weight is read from VMEM inside the dot (never a
    # loop-carried value). Validity masks are computed in-kernel from lens.
    def body(s, carry):
        h_f, c_f, h_b, c_b = carry
        rf = pl.multiple_of(s * Bp, 8)                 # forward: local time s
        rb = pl.multiple_of((Tc - 1 - s) * Bp, 8)      # backward: reversed local time

        h_cat = jnp.concatenate([h_f, h_b], axis=1).astype(jnp.bfloat16)
        rec = jnp.dot(h_cat, whh_ref[...], preferred_element_type=jnp.float32)

        gf = gxf_scr[pl.ds(rf, Bp), :] + rec[:, :4 * Hp]
        gb = gxb_scr[pl.ds(rb, Bp), :] + rec[:, 4 * Hp:]

        hfn, cfn = cell(gf, c_f)
        hbn, cbn = cell(gb, c_b)

        # pack_padded_sequence semantics: freeze state at padded time steps.
        valid_f = lens > (tf0 + s)
        valid_b = lens > (tb0 + (Tc - 1 - s))
        h_f = jnp.where(valid_f, hfn, h_f)
        c_f = jnp.where(valid_f, cfn, c_f)
        h_b = jnp.where(valid_b, hbn, h_b)
        c_b = jnp.where(valid_b, cbn, c_b)
        return h_f, c_f, h_b, c_b

    init = (hf_scr[...], cf_scr[...], hb_scr[...], cb_scr[...])
    h_f, c_f, h_b, c_b = lax.fori_loop(0, Tc, body, init, unroll=min(8, Tc))

    # Carry state to the next time chunk.
    hf_scr[...] = h_f
    cf_scr[...] = c_f
    hb_scr[...] = h_b
    cb_scr[...] = c_b

    # Final hiddens (lane-dense (2, Bp, 128) block); store only on the last chunk.
    @pl.when(k == nk - 1)
    def _():
        out_ref[0] = h_f
        out_ref[1] = h_b


# ----------------------------- wrapper glue ---------------------------------

def _round_up(x, m):
    return ((x + m - 1) // m) * m


def _pack_gate_cols(w, H, Hp):
    """PyTorch (4H, K) gate-stacked weight -> (K, 4*Hp), transposed and
    zero-padded so each gate occupies a full Hp-wide lane-aligned block."""
    K = w.shape[1]
    out = jnp.zeros((K, 4 * Hp), jnp.float32)
    for g in range(4):
        out = out.at[:, g * Hp:g * Hp + H].set(w[g * H:(g + 1) * H, :].T)
    return out


def _pack_whh_blockdiag(w_hh_f, w_hh_b, H, Hp):
    """Block-diagonal recurrent weight (2*Hp, 8*Hp):
    [h_f | h_b] @ [[Wf, 0], [0, Wb]] = [gates_f | gates_b]."""
    pf = _pack_gate_cols(w_hh_f, H, Hp)            # (H, 4*Hp)
    pb = _pack_gate_cols(w_hh_b, H, Hp)            # (H, 4*Hp)
    out = jnp.zeros((2 * Hp, 8 * Hp), jnp.float32)
    out = out.at[:H, :4 * Hp].set(pf)
    out = out.at[Hp:Hp + H, 4 * Hp:].set(pb)
    return out


def _pack_bias(b, H, Hp):
    out = jnp.zeros((1, 4 * Hp), jnp.float32)
    for g in range(4):
        out = out.at[0, g * Hp:g * Hp + H].set(b[g * H:(g + 1) * H])
    return out


def init_params(key, vocab_size, embeddings_size, hidden_size):
    ks = jax.random.split(key, 9)
    k = 1.0 / np.sqrt(hidden_size)
    emb = 0.1 * jax.random.normal(ks[0], (vocab_size, embeddings_size), jnp.float32)
    emb = emb.at[0].set(0.0)  # padding_idx=0
    u = lambda kk, shape: jax.random.uniform(kk, shape, jnp.float32, -k, k)
    return {
        "hidden_size": hidden_size,
        "embedding": emb,
        "w_ih_f": u(ks[1], (4 * hidden_size, embeddings_size)),
        "w_hh_f": u(ks[2], (4 * hidden_size, hidden_size)),
        "b_ih_f": u(ks[3], (4 * hidden_size,)),
        "b_hh_f": u(ks[4], (4 * hidden_size,)),
        "w_ih_b": u(ks[5], (4 * hidden_size, embeddings_size)),
        "w_hh_b": u(ks[6], (4 * hidden_size, hidden_size)),
        "b_ih_b": u(ks[7], (4 * hidden_size,)),
        "b_hh_b": u(ks[8], (4 * hidden_size,)),
    }


def sentence_encoder_forward(inputs, lengths, params, *, chunk_t=128):
    """inputs: (B, T) int32 token ids; lengths: (B,) int32. Returns (2, B, H)
    matching nn.LSTM(packed)'s final (num_directions, batch, hidden) state."""
    B, T = inputs.shape
    H = int(params["hidden_size"])
    E = params["embedding"].shape[1]

    Hp = _round_up(H, 128)           # lane-aligned hidden -> full-width gate slices
    Bp = _round_up(max(B, 1), 8)     # sublane-aligned batch
    # Cap rows per chunk so the f32 gx scratch (2 * Tc*Bp * 4*Hp * 4 B) stays
    # well inside the v7x 64 MiB/TC VMEM budget (and v5e/v6e 128 MiB).
    Tc = max(1, min(chunk_t, T, max(1, 2048 // Bp)))
    T_pad = _round_up(T, Tc)
    nchunks = T_pad // Tc
    R = Tc * Bp                      # rows per chunk in the flat (T*B, .) layout

    # Glue: embedding lookup (gather), time-major layout, padding (XLA).
    emb = params["embedding"][inputs].astype(jnp.float32)            # (B, T, E)
    x = jnp.transpose(emb, (1, 0, 2))                                # (T, B, E)
    x = jnp.pad(x, ((0, T_pad - T), (0, Bp - B), (0, 0)))
    x_flat = x.reshape(T_pad * Bp, E).astype(jnp.bfloat16)           # bf16 MXU operand

    # Lengths broadcast over the (padded) hidden dim: one int32 vreg, replaces
    # the old (T_pad*Bp, Hp) f32 mask stream entirely.
    lens_p = jnp.pad(lengths.astype(jnp.int32), (0, Bp - B))         # pad rows -> len 0
    lens_b = jnp.broadcast_to(lens_p[:, None], (Bp, Hp))

    # Weights: PyTorch layout -> lane-aligned gate blocks, bf16, bias folded.
    wxf = _pack_gate_cols(params["w_ih_f"], H, Hp).astype(jnp.bfloat16)   # (E, 4Hp)
    wxb = _pack_gate_cols(params["w_ih_b"], H, Hp).astype(jnp.bfloat16)
    bf = _pack_bias(params["b_ih_f"] + params["b_hh_f"], H, Hp)           # (1, 4Hp)
    bb = _pack_bias(params["b_ih_b"] + params["b_hh_b"], H, Hp)
    whh_blk = _pack_whh_blockdiag(params["w_hh_f"], params["w_hh_b"],
                                  H, Hp).astype(jnp.bfloat16)             # (2Hp, 8Hp)

    const2d = lambda shape: pl.BlockSpec(shape, lambda k: (0, 0))
    in_specs = [
        pl.BlockSpec((R, E), lambda k: (k, 0)),                  # x, forward chunks
        pl.BlockSpec((R, E), lambda k: (nchunks - 1 - k, 0)),    # x, backward chunks
        const2d((Bp, Hp)),                                       # lengths broadcast
        const2d((E, 4 * Hp)), const2d((E, 4 * Hp)),              # W_ih fwd / bwd
        const2d((1, 4 * Hp)), const2d((1, 4 * Hp)),              # bias fwd / bwd
        const2d((2 * Hp, 8 * Hp)),                               # block-diag W_hh
    ]
    out_specs = pl.BlockSpec((2, Bp, Hp), lambda k: (0, 0, 0))
    scratch_shapes = [
        pltpu.VMEM((R, 4 * Hp), jnp.float32),   # precomputed input gates, fwd
        pltpu.VMEM((R, 4 * Hp), jnp.float32),   # precomputed input gates, bwd
        pltpu.VMEM((Bp, Hp), jnp.float32),      # h_f carried across chunks
        pltpu.VMEM((Bp, Hp), jnp.float32),      # c_f
        pltpu.VMEM((Bp, Hp), jnp.float32),      # h_b
        pltpu.VMEM((Bp, Hp), jnp.float32),      # c_b
    ]

    # NOTE: for large B, add a leading batch-block grid axis with
    # dimension_semantics=("parallel", "arbitrary") to shard across the two
    # v7x TensorCores; at the tiny batches used here it would only add overhead.
    hiddens_p = pl.pallas_call(
        bilstm_kernel,
        out_shape=jax.ShapeDtypeStruct((2, Bp, Hp), jnp.float32),
        grid_spec=pltpu.PrefetchScalarGridSpec(
            num_scalar_prefetch=0,
            grid=(nchunks,),
            in_specs=in_specs,
            out_specs=out_specs,
            scratch_shapes=scratch_shapes,
        ),
        compiler_params=pltpu.CompilerParams(
            dimension_semantics=("arbitrary",),   # sequential recurrence over time chunks
            vmem_limit_bytes=48 * 1024 * 1024,
        ),
    )(x_flat, x_flat, lens_b, wxf, wxb, bf, bb, whh_blk)

    return hiddens_p[:, :B, :H]


def reference_forward(inputs, lengths, params):
    """Pure-JAX f32 reference replicating nn.LSTM(packed) final hiddens."""
    emb = params["embedding"][inputs]          # (B, T, E)
    B, T, _ = emb.shape
    H = params["hidden_size"]

    def run(w_ih, w_hh, b, order):
        h = jnp.zeros((B, H), jnp.float32)
        c = jnp.zeros((B, H), jnp.float32)
        for t in order:
            x_t = emb[:, t, :]
            gates = x_t @ w_ih.T + h @ w_hh.T + b
            i = jax.nn.sigmoid(gates[:, :H])
            f = jax.nn.sigmoid(gates[:, H:2 * H])
            g = jnp.tanh(gates[:, 2 * H:3 * H])
            o = jax.nn.sigmoid(gates[:, 3 * H:])
            c_new = f * c + i * g
            h_new = o * jnp.tanh(c_new)
            m = (t < lengths).astype(jnp.float32)[:, None]
            h = m * h_new + (1 - m) * h
            c = m * c_new + (1 - m) * c
        return h

    h_f = run(params["w_ih_f"], params["w_hh_f"],
              params["b_ih_f"] + params["b_hh_f"], range(T))
    h_b = run(params["w_ih_b"], params["w_hh_b"],
              params["b_ih_b"] + params["b_hh_b"], range(T - 1, -1, -1))
    return jnp.stack([h_f, h_b], axis=0)


if __name__ == "__main__":
    key = jax.random.PRNGKey(0)
    VOCAB, E, H = 50, 32, 32
    B, T = 2, 8

    params = init_params(key, VOCAB, E, H)

    # pack_padded_sequence default expects lengths sorted descending.
    lengths = jnp.array([8, 5], dtype=jnp.int32)
    tokens = jax.random.randint(jax.random.fold_in(key, 123), (B, T), 1, VOCAB,
                                dtype=jnp.int32)
    pad_mask = jnp.arange(T)[None, :] < lengths[:, None]
    tokens = jnp.where(pad_mask, tokens, 0)   # padded positions use padding_idx=0

    # chunk_t=4 -> two streamed time chunks, exercising the grid/state-carry path.
    out = sentence_encoder_forward(tokens, lengths, params, chunk_t=4)
    out = jax.block_until_ready(out)

    ref = reference_forward(tokens, lengths, params)
    assert out.shape == (2, B, H)
    # bf16 MXU operands with f32 accumulate -> compare against the f32
    # reference with a bf16-appropriate tolerance.
    assert np.allclose(np.asarray(out), np.asarray(ref), atol=2e-2, rtol=2e-2)

    print("KERNEL_OK")
</pallas_src>

<mosaic_0001>
module attributes {stable_mosaic.version = 11 : i64} {
  func.func @bilstm_kernel(%arg0: i32, %arg1: memref<32x32xbf16, #tpu.memory_space<vmem>>, %arg2: memref<32x32xbf16, #tpu.memory_space<vmem>>, %arg3: memref<8x128xi32, #tpu.memory_space<vmem>>, %arg4: memref<32x512xbf16, #tpu.memory_space<vmem>>, %arg5: memref<32x512xbf16, #tpu.memory_space<vmem>>, %arg6: memref<1x512xf32, #tpu.memory_space<vmem>>, %arg7: memref<1x512xf32, #tpu.memory_space<vmem>>, %arg8: memref<256x1024xbf16, #tpu.memory_space<vmem>>, %arg9: memref<2x8x128xf32, #tpu.memory_space<vmem>>, %arg10: memref<32x512xf32, #tpu.memory_space<vmem>>, %arg11: memref<32x512xf32, #tpu.memory_space<vmem>>, %arg12: memref<8x128xf32, #tpu.memory_space<vmem>>, %arg13: memref<8x128xf32, #tpu.memory_space<vmem>>, %arg14: memref<8x128xf32, #tpu.memory_space<vmem>>, %arg15: memref<8x128xf32, #tpu.memory_space<vmem>>) attributes {dimension_semantics = [#tpu.dimension_semantics<arbitrary>], iteration_bounds = array<i64: 2>, scalar_prefetch = 0 : i64, scratch_operands = 6 : i64, tpu.core_type = #tpu.core_type<tc>, window_params = [{transform_indices = @transform_0, window_bounds = array<i64: 32, 32>}, {transform_indices = @transform_1, window_bounds = array<i64: 32, 32>}, {pipeline_mode = #tpu.pipeline_mode<synchronous>, transform_indices = @transform_2, window_bounds = array<i64: 8, 128>}, {pipeline_mode = #tpu.pipeline_mode<synchronous>, transform_indices = @transform_3, window_bounds = array<i64: 32, 512>}, {pipeline_mode = #tpu.pipeline_mode<synchronous>, transform_indices = @transform_4, window_bounds = array<i64: 32, 512>}, {pipeline_mode = #tpu.pipeline_mode<synchronous>, transform_indices = @transform_5, window_bounds = array<i64: 1, 512>}, {pipeline_mode = #tpu.pipeline_mode<synchronous>, transform_indices = @transform_6, window_bounds = array<i64: 1, 512>}, {pipeline_mode = #tpu.pipeline_mode<synchronous>, transform_indices = @transform_7, window_bounds = array<i64: 256, 1024>}, {pipeline_mode = #tpu.pipeline_mode<synchronous>, transform_indices = @transform_8, window_bounds = array<i64: 2, 8, 128>}]} {
    %c0_i32 = arith.constant 0 : i32
    %0 = arith.cmpi eq, %arg0, %c0_i32 : i32
    %1 = arith.extui %0 : i1 to i32
    %c0_i32_0 = arith.constant 0 : i32
    %2 = arith.cmpi ne, %1, %c0_i32_0 : i32
    scf.if %2 {
      %cst_100 = arith.constant 0.000000e+00 : f32
      %344 = vector.broadcast %cst_100 : f32 to vector<8x128xf32>
      %c0_101 = arith.constant 0 : index
      %c0_102 = arith.constant 0 : index
      %345 = vector.load %arg12[%c0_101, %c0_102] : memref<8x128xf32, #tpu.memory_space<vmem>>, vector<8x128xf32>
      tpu.vector_store %arg12[%c0_101, %c0_102], %344 {strides = array<i32>} : memref<8x128xf32, #tpu.memory_space<vmem>>, vector<8x128xf32>,
      %cst_103 = arith.constant 0.000000e+00 : f32
      %346 = vector.broadcast %cst_103 : f32 to vector<8x128xf32>
      %c0_104 = arith.constant 0 : index
      %c0_105 = arith.constant 0 : index
      %347 = vector.load %arg13[%c0_104, %c0_105] : memref<8x128xf32, #tpu.memory_space<vmem>>, vector<8x128xf32>
      tpu.vector_store %arg13[%c0_104, %c0_105], %346 {strides = array<i32>} : memref<8x128xf32, #tpu.memory_space<vmem>>, vector<8x128xf32>,
      %cst_106 = arith.constant 0.000000e+00 : f32
      %348 = vector.broadcast %cst_106 : f32 to vector<8x128xf32>
      %c0_107 = arith.constant 0 : index
      %c0_108 = arith.constant 0 : index
      %349 = vector.load %arg14[%c0_107, %c0_108] : memref<8x128xf32, #tpu.memory_space<vmem>>, vector<8x128xf32>
      tpu.vector_store %arg14[%c0_107, %c0_108], %348 {strides = array<i32>} : memref<8x128xf32, #tpu.memory_space<vmem>>, vector<8x128xf32>,
      %cst_109 = arith.constant 0.000000e+00 : f32
      %350 = vector.broadcast %cst_109 : f32 to vector<8x128xf32>
      %c0_110 = arith.constant 0 : index
      %c0_111 = arith.constant 0 : index
      %351 = vector.load %arg15[%c0_110, %c0_111] : memref<8x128xf32, #tpu.memory_space<vmem>>, vector<8x128xf32>
      tpu.vector_store %arg15[%c0_110, %c0_111], %350 {strides = array<i32>} : memref<8x128xf32, #tpu.memory_space<vmem>>, vector<8x128xf32>,
    } else {
    }
    %c0 = arith.constant 0 : index
    %c0_1 = arith.constant 0 : index
    %3 = vector.load %arg1[%c0, %c0_1] : memref<32x32xbf16, #tpu.memory_space<vmem>>, vector<32x32xbf16>
    %c0_2 = arith.constant 0 : index
    %c0_3 = arith.constant 0 : index
    %4 = vector.load %arg4[%c0_2, %c0_3] : memref<32x512xbf16, #tpu.memory_space<vmem>>, vector<32x512xbf16>
    %cst = arith.constant dense<0.000000e+00> : vector<32x512xf32>
    %5 = tpu.matmul %3, %4, %cst {dimension_numbers = #tpu.dot_dimension_numbers<[1], [0], [0], [1], [0, 0, 1, 1], [], []>} : vector<32x32xbf16>, vector<32x512xbf16>, vector<32x512xf32> -> vector<32x512xf32>
    %c0_4 = arith.constant 0 : index
    %c0_5 = arith.constant 0 : index
    %6 = vector.load %arg6[%c0_4, %c0_5] : memref<1x512xf32, #tpu.memory_space<vmem>>, vector<1x512xf32>
    %7 = vector.broadcast %6 : vector<1x512xf32> to vector<32x512xf32>
    %8 = arith.addf %5, %7 : vector<32x512xf32>
    %c0_6 = arith.constant 0 : index
    %c0_7 = arith.constant 0 : index
    %9 = vector.load %arg10[%c0_6, %c0_7] : memref<32x512xf32, #tpu.memory_space<vmem>>, vector<32x512xf32>
    tpu.vector_store %arg10[%c0_6, %c0_7], %8 {strides = array<i32>} : memref<32x512xf32, #tpu.memory_space<vmem>>, vector<32x512xf32>,
    %c0_8 = arith.constant 0 : index
    %c0_9 = arith.constant 0 : index
    %10 = vector.load %arg2[%c0_8, %c0_9] : memref<32x32xbf16, #tpu.memory_space<vmem>>, vector<32x32xbf16>
    %c0_10 = arith.constant 0 : index
    %c0_11 = arith.constant 0 : index
    %11 = vector.load %arg5[%c0_10, %c0_11] : memref<32x512xbf16, #tpu.memory_space<vmem>>, vector<32x512xbf16>
    %cst_12 = arith.constant dense<0.000000e+00> : vector<32x512xf32>
    %12 = tpu.matmul %10, %11, %cst_12 {dimension_numbers = #tpu.dot_dimension_numbers<[1], [0], [0], [1], [0, 0, 1, 1], [], []>} : vector<32x32xbf16>, vector<32x512xbf16>, vector<32x512xf32> -> vector<32x512xf32>
    %c0_13 = arith.constant 0 : index
    %c0_14 = arith.constant 0 : index
    %13 = vector.load %arg7[%c0_13, %c0_14] : memref<1x512xf32, #tpu.memory_space<vmem>>, vector<1x512xf32>
    %14 = vector.broadcast %13 : vector<1x512xf32> to vector<32x512xf32>
    %15 = arith.addf %12, %14 : vector<32x512xf32>
    %c0_15 = arith.constant 0 : index
    %c0_16 = arith.constant 0 : index
    %16 = vector.load %arg11[%c0_15, %c0_16] : memref<32x512xf32, #tpu.memory_space<vmem>>, vector<32x512xf32>
    tpu.vector_store %arg11[%c0_15, %c0_16], %15 {strides = array<i32>} : memref<32x512xf32, #tpu.memory_space<vmem>>, vector<32x512xf32>,
    %c0_17 = arith.constant 0 : index
    %c0_18 = arith.constant 0 : index
    %17 = vector.load %arg3[%c0_17, %c0_18] : memref<8x128xi32, #tpu.memory_space<vmem>>, vector<8x128xi32>
    %c4_i32 = arith.constant 4 : i32
    %18 = arith.muli %arg0, %c4_i32 : i32
    %c1_i32 = arith.constant 1 : i32
    %19 = arith.subi %c1_i32, %arg0 : i32
    %c4_i32_19 = arith.constant 4 : i32
    %20 = arith.muli %19, %c4_i32_19 : i32
    %c0_20 = arith.constant 0 : index
    %c0_21 = arith.constant 0 : index
    %21 = vector.load %arg12[%c0_20, %c0_21] : memref<8x128xf32, #tpu.memory_space<vmem>>, vector<8x128xf32>
    %c0_22 = arith.constant 0 : index
    %c0_23 = arith.constant 0 : index
    %22 = vector.load %arg13[%c0_22, %c0_23] : memref<8x128xf32, #tpu.memory_space<vmem>>, vector<8x128xf32>
    %c0_24 = arith.constant 0 : index
    %c0_25 = arith.constant 0 : index
    %23 = vector.load %arg14[%c0_24, %c0_25] : memref<8x128xf32, #tpu.memory_space<vmem>>, vector<8x128xf32>
    %c0_26 = arith.constant 0 : index
    %c0_27 = arith.constant 0 : index
    %24 = vector.load %arg15[%c0_26, %c0_27] : memref<8x128xf32, #tpu.memory_space<vmem>>, vector<8x128xf32>
    %c0_i32_28 = arith.constant 0 : i32
    %c8_i32 = arith.constant 8 : i32
    %25 = arith.muli %c0_i32_28, %c8_i32 : i32
    %26 = tpu.assume_multiple %25, 8 : i32
    %c3_i32 = arith.constant 3 : i32
    %27 = arith.subi %c3_i32, %c0_i32_28 : i32
    %c8_i32_29 = arith.constant 8 : i32
    %28 = arith.muli %27, %c8_i32_29 : i32
    %29 = tpu.assume_multiple %28, 8 : i32
    %30 = tpu.concatenate %21, %23 in 1 : vector<8x128xf32>, vector<8x128xf32> -> vector<8x256xf32>
    %31 = arith.truncf %30 : vector<8x256xf32> to vector<8x256xbf16>
    %c0_30 = arith.constant 0 : index
    %c0_31 = arith.constant 0 : index
    %32 = vector.load %arg8[%c0_30, %c0_31] : memref<256x1024xbf16, #tpu.memory_space<vmem>>, vector<256x1024xbf16>
    %cst_32 = arith.constant dense<0.000000e+00> : vector<8x1024xf32>
    %33 = tpu.matmul %31, %32, %cst_32 {dimension_numbers = #tpu.dot_dimension_numbers<[1], [0], [0], [1], [0, 0, 1, 1], [], []>} : vector<8x256xbf16>, vector<256x1024xbf16>, vector<8x1024xf32> -> vector<8x1024xf32>
    %34 = arith.index_cast %26 : i32 to index
    %c0_33 = arith.constant 0 : index
    %35 = vector.load %arg10[%34, %c0_33] : memref<32x512xf32, #tpu.memory_space<vmem>>, vector<8x512xf32>
    %36 = vector.extract_strided_slice %33 {offsets = [0, 0], sizes = [8, 512], strides = [1, 1]} : vector<8x1024xf32> to vector<8x512xf32>
    %37 = arith.addf %35, %36 : vector<8x512xf32>
    %38 = arith.index_cast %29 : i32 to index
    %c0_34 = arith.constant 0 : index
    %39 = vector.load %arg11[%38, %c0_34] : memref<32x512xf32, #tpu.memory_space<vmem>>, vector<8x512xf32>
    %40 = vector.extract_strided_slice %33 {offsets = [0, 512], sizes = [8, 512], strides = [1, 1]} : vector<8x1024xf32> to vector<8x512xf32>
    %41 = arith.addf %39, %40 : vector<8x512xf32>
    %42 = vector.extract_strided_slice %37 {offsets = [0, 0], sizes = [8, 128], strides = [1, 1]} : vector<8x512xf32> to vector<8x128xf32>
    %43 = arith.negf %42 : vector<8x128xf32>
    %44 = math.exp %43 : vector<8x128xf32>
    %cst_35 = arith.constant 1.000000e+00 : f32
    %45 = vector.broadcast %cst_35 : f32 to vector<8x128xf32>
    %46 = arith.addf %45, %44 : vector<8x128xf32>
    %47 = arith.divf %45, %46 : vector<8x128xf32>
    %48 = vector.extract_strided_slice %37 {offsets = [0, 128], sizes = [8, 128], strides = [1, 1]} : vector<8x512xf32> to vector<8x128xf32>
    %49 = arith.negf %48 : vector<8x128xf32>
    %50 = math.exp %49 : vector<8x128xf32>
    %cst_36 = arith.constant 1.000000e+00 : f32
    %51 = vector.broadcast %cst_36 : f32 to vector<8x128xf32>
    %52 = arith.addf %51, %50 : vector<8x128xf32>
    %53 = arith.divf %51, %52 : vector<8x128xf32>
    %54 = vector.extract_strided_slice %37 {offsets = [0, 256], sizes = [8, 128], strides = [1, 1]} : vector<8x512xf32> to vector<8x128xf32>
    %55 = math.tanh %54 : vector<8x128xf32>
    %56 = vector.extract_strided_slice %37 {offsets = [0, 384], sizes = [8, 128], strides = [1, 1]} : vector<8x512xf32> to vector<8x128xf32>
    %57 = arith.negf %56 : vector<8x128xf32>
    %58 = math.exp %57 : vector<8x128xf32>
    %cst_37 = arith.constant 1.000000e+00 : f32
    %59 = vector.broadcast %cst_37 : f32 to vector<8x128xf32>
    %60 = arith.addf %59, %58 : vector<8x128xf32>
    %61 = arith.divf %59, %60 : vector<8x128xf32>
    %62 = arith.mulf %53, %22 : vector<8x128xf32>
    %63 = arith.mulf %47, %55 : vector<8x128xf32>
    %64 = arith.addf %62, %63 : vector<8x128xf32>
    %65 = math.tanh %64 : vector<8x128xf32>
    %66 = arith.mulf %61, %65 : vector<8x128xf32>
    %67 = vector.extract_strided_slice %41 {offsets = [0, 0], sizes = [8, 128], strides = [1, 1]} : vector<8x512xf32> to vector<8x128xf32>
    %68 = arith.negf %67 : vector<8x128xf32>
    %69 = math.exp %68 : vector<8x128xf32>
    %cst_38 = arith.constant 1.000000e+00 : f32
    %70 = vector.broadcast %cst_38 : f32 to vector<8x128xf32>
    %71 = arith.addf %70, %69 : vector<8x128xf32>
    %72 = arith.divf %70, %71 : vector<8x128xf32>
    %73 = vector.extract_strided_slice %41 {offsets = [0, 128], sizes = [8, 128], strides = [1, 1]} : vector<8x512xf32> to vector<8x128xf32>
    %74 = arith.negf %73 : vector<8x128xf32>
    %75 = math.exp %74 : vector<8x128xf32>
    %cst_39 = arith.constant 1.000000e+00 : f32
    %76 = vector.broadcast %cst_39 : f32 to vector<8x128xf32>
    %77 = arith.addf %76, %75 : vector<8x128xf32>
    %78 = arith.divf %76, %77 : vector<8x128xf32>
    %79 = vector.extract_strided_slice %41 {offsets = [0, 256], sizes = [8, 128], strides = [1, 1]} : vector<8x512xf32> to vector<8x128xf32>
    %80 = math.tanh %79 : vector<8x128xf32>
    %81 = vector.extract_strided_slice %41 {offsets = [0, 384], sizes = [8, 128], strides = [1, 1]} : vector<8x512xf32> to vector<8x128xf32>
    %82 = arith.negf %81 : vector<8x128xf32>
    %83 = math.exp %82 : vector<8x128xf32>
    %cst_40 = arith.constant 1.000000e+00 : f32
    %84 = vector.broadcast %cst_40 : f32 to vector<8x128xf32>
    %85 = arith.addf %84, %83 : vector<8x128xf32>
    %86 = arith.divf %84, %85 : vector<8x128xf32>
    %87 = arith.mulf %78, %24 : vector<8x128xf32>
    %88 = arith.mulf %72, %80 : vector<8x128xf32>
    %89 = arith.addf %87, %88 : vector<8x128xf32>
    %90 = math.tanh %89 : vector<8x128xf32>
    %91 = arith.mulf %86, %90 : vector<8x128xf32>
    %92 = arith.addi %18, %c0_i32_28 : i32
    %93 = vector.broadcast %92 : i32 to vector<8x128xi32>
    %94 = arith.cmpi sgt, %17, %93 : vector<8x128xi32>
    %c3_i32_41 = arith.constant 3 : i32
    %95 = arith.subi %c3_i32_41, %c0_i32_28 : i32
    %96 = arith.addi %20, %95 : i32
    %97 = vector.broadcast %96 : i32 to vector<8x128xi32>
    %98 = arith.cmpi sgt, %17, %97 : vector<8x128xi32>
    %99 = arith.select %94, %66, %21 : vector<8x128xi1>, vector<8x128xf32>
    %100 = arith.select %94, %64, %22 : vector<8x128xi1>, vector<8x128xf32>
    %101 = arith.select %98, %91, %23 : vector<8x128xi1>, vector<8x128xf32>
    %102 = arith.select %98, %89, %24 : vector<8x128xi1>, vector<8x128xf32>
    %c1_i32_42 = arith.constant 1 : i32
    %c8_i32_43 = arith.constant 8 : i32
    %103 = arith.muli %c1_i32_42, %c8_i32_43 : i32
    %104 = tpu.assume_multiple %103, 8 : i32
    %c3_i32_44 = arith.constant 3 : i32
    %105 = arith.subi %c3_i32_44, %c1_i32_42 : i32
    %c8_i32_45 = arith.constant 8 : i32
    %106 = arith.muli %105, %c8_i32_45 : i32
    %107 = tpu.assume_multiple %106, 8 : i32
    %108 = tpu.concatenate %99, %101 in 1 : vector<8x128xf32>, vector<8x128xf32> -> vector<8x256xf32>
    %109 = arith.truncf %108 : vector<8x256xf32> to vector<8x256xbf16>
    %c0_46 = arith.constant 0 : index
    %c0_47 = arith.constant 0 : index
    %110 = vector.load %arg8[%c0_46, %c0_47] : memref<256x1024xbf16, #tpu.memory_space<vmem>>, vector<256x1024xbf16>
    %cst_48 = arith.constant dense<0.000000e+00> : vector<8x1024xf32>
    %111 = tpu.matmul %109, %110, %cst_48 {dimension_numbers = #tpu.dot_dimension_numbers<[1], [0], [0], [1], [0, 0, 1, 1], [], []>} : vector<8x256xbf16>, vector<256x1024xbf16>, vector<8x1024xf32> -> vector<8x1024xf32>
    %112 = arith.index_cast %104 : i32 to index
    %c0_49 = arith.constant 0 : index
    %113 = vector.load %arg10[%112, %c0_49] : memref<32x512xf32, #tpu.memory_space<vmem>>, vector<8x512xf32>
    %114 = vector.extract_strided_slice %111 {offsets = [0, 0], sizes = [8, 512], strides = [1, 1]} : vector<8x1024xf32> to vector<8x512xf32>
    %115 = arith.addf %113, %114 : vector<8x512xf32>
    %116 = arith.index_cast %107 : i32 to index
    %c0_50 = arith.constant 0 : index
    %117 = vector.load %arg11[%116, %c0_50] : memref<32x512xf32, #tpu.memory_space<vmem>>, vector<8x512xf32>
    %118 = vector.extract_strided_slice %111 {offsets = [0, 512], sizes = [8, 512], strides = [1, 1]} : vector<8x1024xf32> to vector<8x512xf32>
    %119 = arith.addf %117, %118 : vector<8x512xf32>
    %120 = vector.extract_strided_slice %115 {offsets = [0, 0], sizes = [8, 128], strides = [1, 1]} : vector<8x512xf32> to vector<8x128xf32>
    %121 = arith.negf %120 : vector<8x128xf32>
    %122 = math.exp %121 : vector<8x128xf32>
    %cst_51 = arith.constant 1.000000e+00 : f32
    %123 = vector.broadcast %cst_51 : f32 to vector<8x128xf32>
    %124 = arith.addf %123, %122 : vector<8x128xf32>
    %125 = arith.divf %123, %124 : vector<8x128xf32>
    %126 = vector.extract_strided_slice %115 {offsets = [0, 128], sizes = [8, 128], strides = [1, 1]} : vector<8x512xf32> to vector<8x128xf32>
    %127 = arith.negf %126 : vector<8x128xf32>
    %128 = math.exp %127 : vector<8x128xf32>
    %cst_52 = arith.constant 1.000000e+00 : f32
    %129 = vector.broadcast %cst_52 : f32 to vector<8x128xf32>
    %130 = arith.addf %129, %128 : vector<8x128xf32>
    %131 = arith.divf %129, %130 : vector<8x128xf32>
    %132 = vector.extract_strided_slice %115 {offsets = [0, 256], sizes = [8, 128], strides = [1, 1]} : vector<8x512xf32> to vector<8x128xf32>
    %133 = math.tanh %132 : vector<8x128xf32>
    %134 = vector.extract_strided_slice %115 {offsets = [0, 384], sizes = [8, 128], strides = [1, 1]} : vector<8x512xf32> to vector<8x128xf32>
    %135 = arith.negf %134 : vector<8x128xf32>
    %136 = math.exp %135 : vector<8x128xf32>
    %cst_53 = arith.constant 1.000000e+00 : f32
    %137 = vector.broadcast %cst_53 : f32 to vector<8x128xf32>
    %138 = arith.addf %137, %136 : vector<8x128xf32>
    %139 = arith.divf %137, %138 : vector<8x128xf32>
    %140 = arith.mulf %131, %100 : vector<8x128xf32>
    %141 = arith.mulf %125, %133 : vector<8x128xf32>
    %142 = arith.addf %140, %141 : vector<8x128xf32>
    %143 = math.tanh %142 : vector<8x128xf32>
    %144 = arith.mulf %139, %143 : vector<8x128xf32>
    %145 = vector.extract_strided_slice %119 {offsets = [0, 0], sizes = [8, 128], strides = [1, 1]} : vector<8x512xf32> to vector<8x128xf32>
    %146 = arith.negf %145 : vector<8x128xf32>
    %147 = math.exp %146 : vector<8x128xf32>
    %cst_54 = arith.constant 1.000000e+00 : f32
    %148 = vector.broadcast %cst_54 : f32 to vector<8x128xf32>
    %149 = arith.addf %148, %147 : vector<8x128xf32>
    %150 = arith.divf %148, %149 : vector<8x128xf32>
    %151 = vector.extract_strided_slice %119 {offsets = [0, 128], sizes = [8, 128], strides = [1, 1]} : vector<8x512xf32> to vector<8x128xf32>
    %152 = arith.negf %151 : vector<8x128xf32>
    %153 = math.exp %152 : vector<8x128xf32>
    %cst_55 = arith.constant 1.000000e+00 : f32
    %154 = vector.broadcast %cst_55 : f32 to vector<8x128xf32>
    %155 = arith.addf %154, %153 : vector<8x128xf32>
    %156 = arith.divf %154, %155 : vector<8x128xf32>
    %157 = vector.extract_strided_slice %119 {offsets = [0, 256], sizes = [8, 128], strides = [1, 1]} : vector<8x512xf32> to vector<8x128xf32>
    %158 = math.tanh %157 : vector<8x128xf32>
    %159 = vector.extract_strided_slice %119 {offsets = [0, 384], sizes = [8, 128], strides = [1, 1]} : vector<8x512xf32> to vector<8x128xf32>
    %160 = arith.negf %159 : vector<8x128xf32>
    %161 = math.exp %160 : vector<8x128xf32>
    %cst_56 = arith.constant 1.000000e+00 : f32
    %162 = vector.broadcast %cst_56 : f32 to vector<8x128xf32>
    %163 = arith.addf %162, %161 : vector<8x128xf32>
    %164 = arith.divf %162, %163 : vector<8x128xf32>
    %165 = arith.mulf %156, %102 : vector<8x128xf32>
    %166 = arith.mulf %150, %158 : vector<8x128xf32>
    %167 = arith.addf %165, %166 : vector<8x128xf32>
    %168 = math.tanh %167 : vector<8x128xf32>
    %169 = arith.mulf %164, %168 : vector<8x128xf32>
    %170 = arith.addi %18, %c1_i32_42 : i32
    %171 = vector.broadcast %170 : i32 to vector<8x128xi32>
    %172 = arith.cmpi sgt, %17, %171 : vector<8x128xi32>
    %c3_i32_57 = arith.constant 3 : i32
    %173 = arith.subi %c3_i32_57, %c1_i32_42 : i32
    %174 = arith.addi %20, %173 : i32
    %175 = vector.broadcast %174 : i32 to vector<8x128xi32>
    %176 = arith.cmpi sgt, %17, %175 : vector<8x128xi32>
    %177 = arith.select %172, %144, %99 : vector<8x128xi1>, vector<8x128xf32>
    %178 = arith.select %172, %142, %100 : vector<8x128xi1>, vector<8x128xf32>
    %179 = arith.select %176, %169, %101 : vector<8x128xi1>, vector<8x128xf32>
    %180 = arith.select %176, %167, %102 : vector<8x128xi1>, vector<8x128xf32>
    %c2_i32 = arith.constant 2 : i32
    %c8_i32_58 = arith.constant 8 : i32
    %181 = arith.muli %c2_i32, %c8_i32_58 : i32
    %182 = tpu.assume_multiple %181, 8 : i32
    %c3_i32_59 = arith.constant 3 : i32
    %183 = arith.subi %c3_i32_59, %c2_i32 : i32
    %c8_i32_60 = arith.constant 8 : i32
    %184 = arith.muli %183, %c8_i32_60 : i32
    %185 = tpu.assume_multiple %184, 8 : i32
    %186 = tpu.concatenate %177, %179 in 1 : vector<8x128xf32>, vector<8x128xf32> -> vector<8x256xf32>
    %187 = arith.truncf %186 : vector<8x256xf32> to vector<8x256xbf16>
    %c0_61 = arith.constant 0 : index
    %c0_62 = arith.constant 0 : index
    %188 = vector.load %arg8[%c0_61, %c0_62] : memref<256x1024xbf16, #tpu.memory_space<vmem>>, vector<256x1024xbf16>
    %cst_63 = arith.constant dense<0.000000e+00> : vector<8x1024xf32>
    %189 = tpu.matmul %187, %188, %cst_63 {dimension_numbers = #tpu.dot_dimension_numbers<[1], [0], [0], [1], [0, 0, 1, 1], [], []>} : vector<8x256xbf16>, vector<256x1024xbf16>, vector<8x1024xf32> -> vector<8x1024xf32>
    %190 = arith.index_cast %182 : i32 to index
    %c0_64 = arith.constant 0 : index
    %191 = vector.load %arg10[%190, %c0_64] : memref<32x512xf32, #tpu.memory_space<vmem>>, vector<8x512xf32>
    %192 = vector.extract_strided_slice %189 {offsets = [0, 0], sizes = [8, 512], strides = [1, 1]} : vector<8x1024xf32> to vector<8x512xf32>
    %193 = arith.addf %191, %192 : vector<8x512xf32>
    %194 = arith.index_cast %185 : i32 to index
    %c0_65 = arith.constant 0 : index
    %195 = vector.load %arg11[%194, %c0_65] : memref<32x512xf32, #tpu.memory_space<vmem>>, vector<8x512xf32>
    %196 = vector.extract_strided_slice %189 {offsets = [0, 512], sizes = [8, 512], strides = [1, 1]} : vector<8x1024xf32> to vector<8x512xf32>
    %197 = arith.addf %195, %196 : vector<8x512xf32>
    %198 = vector.extract_strided_slice %193 {offsets = [0, 0], sizes = [8, 128], strides = [1, 1]} : vector<8x512xf32> to vector<8x128xf32>
    %199 = arith.negf %198 : vector<8x128xf32>
    %200 = math.exp %199 : vector<8x128xf32>
    %cst_66 = arith.constant 1.000000e+00 : f32
    %201 = vector.broadcast %cst_66 : f32 to vector<8x128xf32>
    %202 = arith.addf %201, %200 : vector<8x128xf32>
    %203 = arith.divf %201, %202 : vector<8x128xf32>
    %204 = vector.extract_strided_slice %193 {offsets = [0, 128], sizes = [8, 128], strides = [1, 1]} : vector<8x512xf32> to vector<8x128xf32>
    %205 = arith.negf %204 : vector<8x128xf32>
    %206 = math.exp %205 : vector<8x128xf32>
    %cst_67 = arith.constant 1.000000e+00 : f32
    %207 = vector.broadcast %cst_67 : f32 to vector<8x128xf32>
    %208 = arith.addf %207, %206 : vector<8x128xf32>
    %209 = arith.divf %207, %208 : vector<8x128xf32>
    %210 = vector.extract_strided_slice %193 {offsets = [0, 256], sizes = [8, 128], strides = [1, 1]} : vector<8x512xf32> to vector<8x128xf32>
    %211 = math.tanh %210 : vector<8x128xf32>
    %212 = vector.extract_strided_slice %193 {offsets = [0, 384], sizes = [8, 128], strides = [1, 1]} : vector<8x512xf32> to vector<8x128xf32>
    %213 = arith.negf %212 : vector<8x128xf32>
    %214 = math.exp %213 : vector<8x128xf32>
    %cst_68 = arith.constant 1.000000e+00 : f32
    %215 = vector.broadcast %cst_68 : f32 to vector<8x128xf32>
    %216 = arith.addf %215, %214 : vector<8x128xf32>
    %217 = arith.divf %215, %216 : vector<8x128xf32>
    %218 = arith.mulf %209, %178 : vector<8x128xf32>
    %219 = arith.mulf %203, %211 : vector<8x128xf32>
    %220 = arith.addf %218, %219 : vector<8x128xf32>
    %221 = math.tanh %220 : vector<8x128xf32>
    %222 = arith.mulf %217, %221 : vector<8x128xf32>
    %223 = vector.extract_strided_slice %197 {offsets = [0, 0], sizes = [8, 128], strides = [1, 1]} : vector<8x512xf32> to vector<8x128xf32>
    %224 = arith.negf %223 : vector<8x128xf32>
    %225 = math.exp %224 : vector<8x128xf32>
    %cst_69 = arith.constant 1.000000e+00 : f32
    %226 = vector.broadcast %cst_69 : f32 to vector<8x128xf32>
    %227 = arith.addf %226, %225 : vector<8x128xf32>
    %228 = arith.divf %226, %227 : vector<8x128xf32>
    %229 = vector.extract_strided_slice %197 {offsets = [0, 128], sizes = [8, 128], strides = [1, 1]} : vector<8x512xf32> to vector<8x128xf32>
    %230 = arith.negf %229 : vector<8x128xf32>
    %231 = math.exp %230 : vector<8x128xf32>
    %cst_70 = arith.constant 1.000000e+00 : f32
    %232 = vector.broadcast %cst_70 : f32 to vector<8x128xf32>
    %233 = arith.addf %232, %231 : vector<8x128xf32>
    %234 = arith.divf %232, %233 : vector<8x128xf32>
    %235 = vector.extract_strided_slice %197 {offsets = [0, 256], sizes = [8, 128], strides = [1, 1]} : vector<8x512xf32> to vector<8x128xf32>
    %236 = math.tanh %235 : vector<8x128xf32>
    %237 = vector.extract_strided_slice %197 {offsets = [0, 384], sizes = [8, 128], strides = [1, 1]} : vector<8x512xf32> to vector<8x128xf32>
    %238 = arith.negf %237 : vector<8x128xf32>
    %239 = math.exp %238 : vector<8x128xf32>
    %cst_71 = arith.constant 1.000000e+00 : f32
    %240 = vector.broadcast %cst_71 : f32 to vector<8x128xf32>
    %241 = arith.addf %240, %239 : vector<8x128xf32>
    %242 = arith.divf %240, %241 : vector<8x128xf32>
    %243 = arith.mulf %234, %180 : vector<8x128xf32>
    %244 = arith.mulf %228, %236 : vector<8x128xf32>
    %245 = arith.addf %243, %244 : vector<8x128xf32>
    %246 = math.tanh %245 : vector<8x128xf32>
    %247 = arith.mulf %242, %246 : vector<8x128xf32>
    %248 = arith.addi %18, %c2_i32 : i32
    %249 = vector.broadcast %248 : i32 to vector<8x128xi32>
    %250 = arith.cmpi sgt, %17, %249 : vector<8x128xi32>
    %c3_i32_72 = arith.constant 3 : i32
    %251 = arith.subi %c3_i32_72, %c2_i32 : i32
    %252 = arith.addi %20, %251 : i32
    %253 = vector.broadcast %252 : i32 to vector<8x128xi32>
    %254 = arith.cmpi sgt, %17, %253 : vector<8x128xi32>
    %255 = arith.select %250, %222, %177 : vector<8x128xi1>, vector<8x128xf32>
    %256 = arith.select %250, %220, %178 : vector<8x128xi1>, vector<8x128xf32>
    %257 = arith.select %254, %247, %179 : vector<8x128xi1>, vector<8x128xf32>
    %258 = arith.select %254, %245, %180 : vector<8x128xi1>, vector<8x128xf32>
    %c3_i32_73 = arith.constant 3 : i32
    %c8_i32_74 = arith.constant 8 : i32
    %259 = arith.muli %c3_i32_73, %c8_i32_74 : i32
    %260 = tpu.assume_multiple %259, 8 : i32
    %c3_i32_75 = arith.constant 3 : i32
    %261 = arith.subi %c3_i32_75, %c3_i32_73 : i32
    %c8_i32_76 = arith.constant 8 : i32
    %262 = arith.muli %261, %c8_i32_76 : i32
    %263 = tpu.assume_multiple %262, 8 : i32
    %264 = tpu.concatenate %255, %257 in 1 : vector<8x128xf32>, vector<8x128xf32> -> vector<8x256xf32>
    %265 = arith.truncf %264 : vector<8x256xf32> to vector<8x256xbf16>
    %c0_77 = arith.constant 0 : index
    %c0_78 = arith.constant 0 : index
    %266 = vector.load %arg8[%c0_77, %c0_78] : memref<256x1024xbf16, #tpu.memory_space<vmem>>, vector<256x1024xbf16>
    %cst_79 = arith.constant dense<0.000000e+00> : vector<8x1024xf32>
    %267 = tpu.matmul %265, %266, %cst_79 {dimension_numbers = #tpu.dot_dimension_numbers<[1], [0], [0], [1], [0, 0, 1, 1], [], []>} : vector<8x256xbf16>, vector<256x1024xbf16>, vector<8x1024xf32> -> vector<8x1024xf32>
    %268 = arith.index_cast %260 : i32 to index
    %c0_80 = arith.constant 0 : index
    %269 = vector.load %arg10[%268, %c0_80] : memref<32x512xf32, #tpu.memory_space<vmem>>, vector<8x512xf32>
    %270 = vector.extract_strided_slice %267 {offsets = [0, 0], sizes = [8, 512], strides = [1, 1]} : vector<8x1024xf32> to vector<8x512xf32>
    %271 = arith.addf %269, %270 : vector<8x512xf32>
    %272 = arith.index_cast %263 : i32 to index
    %c0_81 = arith.constant 0 : index
    %273 = vector.load %arg11[%272, %c0_81] : memref<32x512xf32, #tpu.memory_space<vmem>>, vector<8x512xf32>
    %274 = vector.extract_strided_slice %267 {offsets = [0, 512], sizes = [8, 512], strides = [1, 1]} : vector<8x1024xf32> to vector<8x512xf32>
    %275 = arith.addf %273, %274 : vector<8x512xf32>
    %276 = vector.extract_strided_slice %271 {offsets = [0, 0], sizes = [8, 128], strides = [1, 1]} : vector<8x512xf32> to vector<8x128xf32>
    %277 = arith.negf %276 : vector<8x128xf32>
    %278 = math.exp %277 : vector<8x128xf32>
    %cst_82 = arith.constant 1.000000e+00 : f32
    %279 = vector.broadcast %cst_82 : f32 to vector<8x128xf32>
    %280 = arith.addf %279, %278 : vector<8x128xf32>
    %281 = arith.divf %279, %280 : vector<8x128xf32>
    %282 = vector.extract_strided_slice %271 {offsets = [0, 128], sizes = [8, 128], strides = [1, 1]} : vector<8x512xf32> to vector<8x128xf32>
    %283 = arith.negf %282 : vector<8x128xf32>
    %284 = math.exp %283 : vector<8x128xf32>
    %cst_83 = arith.constant 1.000000e+00 : f32
    %285 = vector.broadcast %cst_83 : f32 to vector<8x128xf32>
    %286 = arith.addf %285, %284 : vector<8x128xf32>
    %287 = arith.divf %285, %286 : vector<8x128xf32>
    %288 = vector.extract_strided_slice %271 {offsets = [0, 256], sizes = [8, 128], strides = [1, 1]} : vector<8x512xf32> to vector<8x128xf32>
    %289 = math.tanh %288 : vector<8x128xf32>
    %290 = vector.extract_strided_slice %271 {offsets = [0, 384], sizes = [8, 128], strides = [1, 1]} : vector<8x512xf32> to vector<8x128xf32>
    %291 = arith.negf %290 : vector<8x128xf32>
    %292 = math.exp %291 : vector<8x128xf32>
    %cst_84 = arith.constant 1.000000e+00 : f32
    %293 = vector.broadcast %cst_84 : f32 to vector<8x128xf32>
    %294 = arith.addf %293, %292 : vector<8x128xf32>
    %295 = arith.divf %293, %294 : vector<8x128xf32>
    %296 = arith.mulf %287, %256 : vector<8x128xf32>
    %297 = arith.mulf %281, %289 : vector<8x128xf32>
    %298 = arith.addf %296, %297 : vector<8x128xf32>
    %299 = math.tanh %298 : vector<8x128xf32>
    %300 = arith.mulf %295, %299 : vector<8x128xf32>
    %301 = vector.extract_strided_slice %275 {offsets = [0, 0], sizes = [8, 128], strides = [1, 1]} : vector<8x512xf32> to vector<8x128xf32>
    %302 = arith.negf %301 : vector<8x128xf32>
    %303 = math.exp %302 : vector<8x128xf32>
    %cst_85 = arith.constant 1.000000e+00 : f32
    %304 = vector.broadcast %cst_85 : f32 to vector<8x128xf32>
    %305 = arith.addf %304, %303 : vector<8x128xf32>
    %306 = arith.divf %304, %305 : vector<8x128xf32>
    %307 = vector.extract_strided_slice %275 {offsets = [0, 128], sizes = [8, 128], strides = [1, 1]} : vector<8x512xf32> to vector<8x128xf32>
    %308 = arith.negf %307 : vector<8x128xf32>
    %309 = math.exp %308 : vector<8x128xf32>
    %cst_86 = arith.constant 1.000000e+00 : f32
    %310 = vector.broadcast %cst_86 : f32 to vector<8x128xf32>
    %311 = arith.addf %310, %309 : vector<8x128xf32>
    %312 = arith.divf %310, %311 : vector<8x128xf32>
    %313 = vector.extract_strided_slice %275 {offsets = [0, 256], sizes = [8, 128], strides = [1, 1]} : vector<8x512xf32> to vector<8x128xf32>
    %314 = math.tanh %313 : vector<8x128xf32>
    %315 = vector.extract_strided_slice %275 {offsets = [0, 384], sizes = [8, 128], strides = [1, 1]} : vector<8x512xf32> to vector<8x128xf32>
    %316 = arith.negf %315 : vector<8x128xf32>
    %317 = math.exp %316 : vector<8x128xf32>
    %cst_87 = arith.constant 1.000000e+00 : f32
    %318 = vector.broadcast %cst_87 : f32 to vector<8x128xf32>
    %319 = arith.addf %318, %317 : vector<8x128xf32>
    %320 = arith.divf %318, %319 : vector<8x128xf32>
    %321 = arith.mulf %312, %258 : vector<8x128xf32>
    %322 = arith.mulf %306, %314 : vector<8x128xf32>
    %323 = arith.addf %321, %322 : vector<8x128xf32>
    %324 = math.tanh %323 : vector<8x128xf32>
    %325 = arith.mulf %320, %324 : vector<8x128xf32>
    %326 = arith.addi %18, %c3_i32_73 : i32
    %327 = vector.broadcast %326 : i32 to vector<8x128xi32>
    %328 = arith.cmpi sgt, %17, %327 : vector<8x128xi32>
    %c3_i32_88 = arith.constant 3 : i32
    %329 = arith.subi %c3_i32_88, %c3_i32_73 : i32
    %330 = arith.addi %20, %329 : i32
    %331 = vector.broadcast %330 : i32 to vector<8x128xi32>
    %332 = arith.cmpi sgt, %17, %331 : vector<8x128xi32>
    %333 = arith.select %328, %300, %255 : vector<8x128xi1>, vector<8x128xf32>
    %334 = arith.select %328, %298, %256 : vector<8x128xi1>, vector<8x128xf32>
    %335 = arith.select %332, %325, %257 : vector<8x128xi1>, vector<8x128xf32>
    %336 = arith.select %332, %323, %258 : vector<8x128xi1>, vector<8x128xf32>
    %c4_i32_89 = arith.constant 4 : i32
    %c0_90 = arith.constant 0 : index
    %c0_91 = arith.constant 0 : index
    %337 = vector.load %arg12[%c0_90, %c0_91] : memref<8x128xf32, #tpu.memory_space<vmem>>, vector<8x128xf32>
    tpu.vector_store %arg12[%c0_90, %c0_91], %333 {strides = array<i32>} : memref<8x128xf32, #tpu.memory_space<vmem>>, vector<8x128xf32>,
    %c0_92 = arith.constant 0 : index
    %c0_93 = arith.constant 0 : index
    %338 = vector.load %arg13[%c0_92, %c0_93] : memref<8x128xf32, #tpu.memory_space<vmem>>, vector<8x128xf32>
    tpu.vector_store %arg13[%c0_92, %c0_93], %334 {strides = array<i32>} : memref<8x128xf32, #tpu.memory_space<vmem>>, vector<8x128xf32>,
    %c0_94 = arith.constant 0 : index
    %c0_95 = arith.constant 0 : index
    %339 = vector.load %arg14[%c0_94, %c0_95] : memref<8x128xf32, #tpu.memory_space<vmem>>, vector<8x128xf32>
    tpu.vector_store %arg14[%c0_94, %c0_95], %335 {strides = array<i32>} : memref<8x128xf32, #tpu.memory_space<vmem>>, vector<8x128xf32>,
    %c0_96 = arith.constant 0 : index
    %c0_97 = arith.constant 0 : index
    %340 = vector.load %arg15[%c0_96, %c0_97] : memref<8x128xf32, #tpu.memory_space<vmem>>, vector<8x128xf32>
    tpu.vector_store %arg15[%c0_96, %c0_97], %336 {strides = array<i32>} : memref<8x128xf32, #tpu.memory_space<vmem>>, vector<8x128xf32>,
    %c1_i32_98 = arith.constant 1 : i32
    %341 = arith.cmpi eq, %arg0, %c1_i32_98 : i32
    %342 = arith.extui %341 : i1 to i32
    %c0_i32_99 = arith.constant 0 : i32
    %343 = arith.cmpi ne, %342, %c0_i32_99 : i32
    scf.if %343 {
      %c0_100 = arith.constant 0 : index
      %c0_101 = arith.constant 0 : index
      %c0_102 = arith.constant 0 : index
      %344 = vector.load %arg9[%c0_100, %c0_101, %c0_102] : memref<2x8x128xf32, #tpu.memory_space<vmem>>, vector<1x8x128xf32>
      %345 = vector.shape_cast %344 : vector<1x8x128xf32> to vector<8x128xf32>
      %346 = vector.shape_cast %333 : vector<8x128xf32> to vector<1x8x128xf32>
      tpu.vector_store %arg9[%c0_100, %c0_101, %c0_102], %346 {strides = array<i32>} : memref<2x8x128xf32, #tpu.memory_space<vmem>>, vector<1x8x128xf32>,
      %c1 = arith.constant 1 : index
      %c0_103 = arith.constant 0 : index
      %c0_104 = arith.constant 0 : index
      %347 = vector.load %arg9[%c1, %c0_103, %c0_104] : memref<2x8x128xf32, #tpu.memory_space<vmem>>, vector<1x8x128xf32>
      %348 = vector.shape_cast %347 : vector<1x8x128xf32> to vector<8x128xf32>
      %349 = vector.shape_cast %335 : vector<8x128xf32> to vector<1x8x128xf32>
      tpu.vector_store %arg9[%c1, %c0_103, %c0_104], %349 {strides = array<i32>} : memref<2x8x128xf32, #tpu.memory_space<vmem>>, vector<1x8x128xf32>,
    } else {
    }
    return
  }
  func.func @transform_0(%arg0: i32) -> (i32, i32) {
    %c0_i32 = arith.constant 0 : i32
    %c0_i32_0 = arith.constant 0 : i32
    return %arg0, %c0_i32 : i32, i32
  }
  func.func @transform_1(%arg0: i32) -> (i32, i32) {
    %c1_i32 = arith.constant 1 : i32
    %0 = arith.subi %c1_i32, %arg0 : i32
    %c0_i32 = arith.constant 0 : i32
    %c0_i32_0 = arith.constant 0 : i32
    return %0, %c0_i32 : i32, i32
  }
  func.func @transform_2(%arg0: i32) -> (i32, i32) {
    %c0_i32 = arith.constant 0 : i32
    %c0_i32_0 = arith.constant 0 : i32
    %c0_i32_1 = arith.constant 0 : i32
    return %c0_i32, %c0_i32_0 : i32, i32
  }
  func.func @transform_3(%arg0: i32) -> (i32, i32) {
    %c0_i32 = arith.constant 0 : i32
    %c0_i32_0 = arith.constant 0 : i32
    %c0_i32_1 = arith.constant 0 : i32
    return %c0_i32, %c0_i32_0 : i32, i32
  }
  func.func @transform_4(%arg0: i32) -> (i32, i32) {
    %c0_i32 = arith.constant 0 : i32
    %c0_i32_0 = arith.constant 0 : i32
    %c0_i32_1 = arith.constant 0 : i32
    return %c0_i32, %c0_i32_0 : i32, i32
  }
  func.func @transform_5(%arg0: i32) -> (i32, i32) {
    %c0_i32 = arith.constant 0 : i32
    %c0_i32_0 = arith.constant 0 : i32
    %c0_i32_1 = arith.constant 0 : i32
    return %c0_i32, %c0_i32_0 : i32, i32
  }
  func.func @transform_6(%arg0: i32) -> (i32, i32) {
    %c0_i32 = arith.constant 0 : i32
    %c0_i32_0 = arith.constant 0 : i32
    %c0_i32_1 = arith.constant 0 : i32
    return %c0_i32, %c0_i32_0 : i32, i32
  }
  func.func @transform_7(%arg0: i32) -> (i32, i32) {
    %c0_i32 = arith.constant 0 : i32
    %c0_i32_0 = arith.constant 0 : i32
    %c0_i32_1 = arith.constant 0 : i32
    return %c0_i32, %c0_i32_0 : i32, i32
  }
  func.func @transform_8(%arg0: i32) -> (i32, i32, i32) {
    %c0_i32 = arith.constant 0 : i32
    %c0_i32_0 = arith.constant 0 : i32
    %c0_i32_1 = arith.constant 0 : i32
    %c0_i32_2 = arith.constant 0 : i32
    return %c0_i32, %c0_i32_0, %c0_i32_1 : i32, i32, i32
  }
}

</mosaic_0001>

<bundles_post_ra>
// kernel: tpu_custom_call.1
= control target key start
LH: loop header
LB: loop body
LE: loop exit
PB: predicated region body
PF: predicated region fallthrough
CT: control target
= control target key end

     0   :  { %13 = vsyncpa [#allocation9], 0  ;;  %s4373_s0 = inlined_call_operand.vmem [shape: bf16[64,32], index: 0, kind: input, shape index: {}]   ;;  %s4374_s1 = inlined_call_operand.vmem [shape: bf16[64,32], index: 1, kind: input, shape index: {}]   ;;  %s4375_s2 = inlined_call_operand.vmem [shape: s32[8,128], index: 2, kind: input, shape index: {}]   ;;  %s4376_s3 = inlined_call_operand.vmem [shape: bf16[32,512], index: 3, kind: input, shape index: {}]   ;;  %s4377_s4 = inlined_call_operand.hbm [shape: bf16[32,512], index: 4, kind: input, shape index: {}]   ;;  %s4378_s5 = inlined_call_operand.vmem [shape: f32[1,512], index: 5, kind: input, shape index: {}]   ;;  %s4379_s6 = inlined_call_operand.vmem [shape: f32[1,512], index: 6, kind: input, shape index: {}]   ;;  %s4380_s7 = inlined_call_operand.hbm [shape: bf16[256,1024], index: 7, kind: input, shape index: {}]   ;;  %s4381_s8 = inlined_call_operand.hbm [shape: f32[2,8,128], index: 8, kind: output, shape index: {}]  }
   0x1   :  { %14 = vsyncpa [#allocation12], 0 }
   0x2   :  { %15 = vsyncpa [#allocation10], 0  ;;  %s3194_s27 = smov 0  }
   0x3 LB: > { %s3138_s28 = smov [#allocation8]   ;;  %s3200_s30 = sadd.s32 4294967295, %s3136_s27   ;;  %s3136_s27 = sphi %s3194_s27, %s21_s27  }
   0x4   : > { %s245_s29 = sshll.u32 %s3138_s28, 4  ;;  %p2641_p0 = scmp.ge.s32.totalorder %s3136_s27, 1  ;;  %s246_s29 = int_to_ptr.vmem [resolvable:$true] %s245_s29 }
   0x5   : > { %p227_p1 = scmp.lt.s32.totalorder %s3136_s27, 3  ;;  %p2859_p4 = scmp.eq.s32.totalorder %s3200_s30, 0 }
   0x6   : > { %s3139_s10 = smov [#allocation11]   ;;  %s3053_s13 = scalar_lea.vmem %s246_s29, 1024 }
   0x7   : > { %p3205_p3 = pnand %p2641_p0, %p227_p1  ;;  %s264_s11 = sshll.u32 %s3139_s10, 4  ;;  %s265_s11 = int_to_ptr.vmem [resolvable:$true] %s264_s11 }
   0x8   : > { %p3054_p8 = scmp.ne.s32.totalorder %s246_s29, %s3053_s13  ;;  %p3061_p11 = scmp.lt.s32.totalorder %s246_s29, %s246_s29 }
   0x9   : > { %p2852_p5 = pneg %p3205_p3  ;;  %p3062_p12 = scmp.lt.s32.totalorder %s3053_s13, %s3053_s13 }
   0xb   : > { %p3214_p6 = pnand %p2859_p4, %p2852_p5  ;;  %p3063_p13 = por %p3062_p12, %p3061_p11 }
   0xd   : > { %p3044_p7 = pneg %p3214_p6 }
   0xf   : > { %p3056_p9 = pnand %p3054_p8, %p3044_p7 }
  0x11   : > { %p3057_p10 = pneg %p3056_p9 }
  0x13   : > { %p3064_p0 = pnand %p3063_p13, %p3057_p10 }
  0x15   : > { %3067 = shalt.err (!%p3064_p0)
}
  0x16   : > { %s3140_s14 = smov 256   ;;  %s3141_s15 = smov 16  }
  0x17   : > { %2855 = dma.hbm_to_vmem [thread:$0]  (!%p3214_p6), %s4377_s4, 1024, %s246_s29, [#allocation9], %s3140_s14, %s3140_s14, %s3141_s15  }
  0x18   : > { %s3079_s18 = scalar_lea.vmem %s265_s11, 16384  ;;  %p3087_p9 = scmp.lt.s32.totalorder %s265_s11, %s265_s11 }
  0x19   : > { %p3080_p1 = scmp.ne.s32.totalorder %s265_s11, %s3079_s18  ;;  %p3088_p2 = scmp.lt.s32.totalorder %s3079_s18, %s3079_s18 }
  0x1b   : > { %p3082_p5 = pnand %p3080_p1, %p3044_p7  ;;  %p3089_p11 = por %p3088_p2, %p3087_p9 }
  0x1d   : > { %p3083_p8 = pneg %p3082_p5 }
  0x1f   : > { %p3090_p10 = pnand %p3089_p11, %p3083_p8 }
  0x21   : > { %3093 = shalt.err (!%p3090_p10)
}
  0x22   : > { %s3142_s19 = smov 512   ;;  %s3143_s20 = smov 32  }
  0x23   : > { %2858 = dma.hbm_to_vmem [thread:$0]  (!%p3214_p6), %s4380_s7, 16384, %s265_s11, [#allocation12], %s3142_s19, %s3142_s19, %s3143_s20  }
  0x24   : > { %300 = sbr.rel (%p3205_p3) target bundleno = 1430 (0x596), region = 52 }
  0x29   : > { %3123 = dma.done.wait (%p2859_p4), [#allocation9], 1024  }
  0x2a   : > { %3125 = vsyncadd (%p2859_p4), [#allocation9], 4294966272 }
  0x2b   : > { %3127 = dma.done.wait (%p2859_p4), [#allocation12], 16384  }
  0x2c   : > { %3129 = vsyncadd (%p2859_p4), [#allocation12], 4294950912  ;;  %s3247_s23 = sshll.u32 %s3200_s30, 2  ;;  %s345_s24 = ssub.s32 1, %s3200_s30 }
  0x2d   : > { %p340_p2 = scmp.lt.s32.totalorder %s3247_s23, 7  ;;  %s3251_s25 = sshll.u32 %s345_s24, 2 }
  0x2e   : > { %p347_p3 = scmp.lt.s32.totalorder %s3251_s25, 7  ;;  %p4617_p4 = scmp.ne.s32.totalorder %s3200_s30, 0 }
  0x2f   : > { %s341_s26 = scalar_select %p340_p2, %s3247_s23, 7 }
  0x30   : > { %s348_s28 = scalar_select %p347_p3, %s3251_s25, 7 }
  0x31   : > { %s2649_s29 = sshll.u32 %s341_s26, 2  ;;  %357 = sbr.rel (%p4617_p4) target bundleno = 57 (0x39), region = 64 }
  0x32   : > { %s3259_s11 = scalar_lea.vmem %s4373_s0, %s2649_s29  ;;  %s2651_s12 = sshll.u32 %s348_s28, 2 }
  0x33   : > { %s3264_s15 = scalar_lea.vmem %s4374_s1, %s2651_s12 }
  0x36   : > { %v3144_v0 = vmov 0.0  }
  0x37   : > { %358 = vst [vmem:[#allocation4] sm:$0xff] %v3144_v0  ;;  %359 = vst [vmem:[#allocation5] sm:$0xff] %v3144_v0 }
  0x38   : > { %360 = vst [vmem:[#allocation6] sm:$0xff] %v3144_v0  ;;  %361 = vst [vmem:[#allocation7] sm:$0xff] %v3144_v0 }
  0x39 PF: > { %v2884_v1 = vld [vmem:[%s4376_s3 + $0x24] ss:$16 sps:$4 sm:$0xff]   ;;  %v2886_v2 = vld [vmem:[%s4376_s3 + $0x2c] ss:$16 sps:$4 sm:$0xff]   ;;  %v3145_v3 = vmov 0   ;;  %vm446_vm0 = vcmask 261120  }
  0x3a   : > { %485 = vmatprep.mubr.bf16.mxu0 %v3145_v3  ;;  %538 = vmatprep.mubr.bf16.mxu1 %v3145_v3  ;;  %v2888_v4 = vld [vmem:[%s4376_s3 + $0x20] ss:$16 sps:$4 sm:$0xff]   ;;  %v2889_v5 = vld [vmem:[%s4376_s3 + $0x28] ss:$16 sps:$4 sm:$0xff]   ;;  %v2890_v6 = vld [vmem:[%s4376_s3 + $0x4] ss:$16 sps:$4 sm:$0xff]  }
  0x3b   : > { %465 = vmatprep.subr.bf16.mxu0 %v2884_v1  ;;  %518 = vmatprep.subr.bf16.mxu1 %v2886_v2  ;;  %v2892_v7 = vld [vmem:[%s4376_s3 + $0xc] ss:$16 sps:$4 sm:$0xff]   ;;  %v2894_v8 = vld [vmem:[%s4376_s3] ss:$16 sps:$4 sm:$0xff]   ;;  %v2895_v9 = vld [vmem:[%s4376_s3 + $0x8] ss:$16 sps:$4 sm:$0xff]  }
  0x3c   : > { %466 = vmatpush1.bf16.msra.mxu0 %v2888_v4  ;;  %519 = vmatpush1.bf16.msra.mxu1 %v2889_v5  ;;  %v2896_v10 = vld [vmem:[%s3259_s11] sm:$0xff]   ;;  %v2902_v13 = vld [vmem:[#allocation8 + $0x2c] ss:$16 sps:$4 sm:$0xff]   ;;  %v2900_v14 = vld [vmem:[#allocation8 + $0x28] ss:$16 sps:$4 sm:$0xff]   ;;  %s1801_s20 = sadd.s32 3, %s3251_s25 }
  0x3d   : > { %467 = vmatprep.subr.bf16.mxu0 %v2890_v6  ;;  %520 = vmatprep.subr.bf16.mxu1 %v2892_v7  ;;  %v2899_v11 = vld [vmem:[#allocation8 + $0x24] ss:$16 sps:$4 sm:$0xff]   ;;  %v2897_v12 = vld [vmem:[#allocation8 + $0x20] ss:$16 sps:$4 sm:$0xff]   ;;  %v2909_v17 = vld [vmem:[#allocation8 + $0xc] ss:$16 sps:$4 sm:$0xff]  }
  0x3e   : > { %v2906_v15 = vld [vmem:[#allocation8 + $0x4] ss:$16 sps:$4 sm:$0xff]   ;;  %v2904_v16 = vld [vmem:[#allocation8] ss:$16 sps:$4 sm:$0xff]   ;;  %v2907_v19 = vld [vmem:[#allocation8 + $0x8] ss:$16 sps:$4 sm:$0xff]  }
  0x3f   : > { %v853_v18 = vld [vmem:[#allocation11 + $0x1c0] sm:$0xff]  ;;  %v854_v21 = vld [vmem:[#allocation11 + $0x1c8] sm:$0xff]  ;;  %v793_v58 = vld [vmem:[#allocation6] sm:$0xff]  ;;  %s2044_s21 = sadd.s32 1, %s3247_s23  ;;  %s2047_s22 = sadd.s32 2, %s3251_s25 }
  0x40   : > { %468 = vmatpush1.bf16.msra.mxu0 %v2894_v8  ;;  %521 = vmatpush1.bf16.msra.mxu1 %v2895_v9  ;;  %v857_v20 = vld [vmem:[#allocation11 + $0x1e0] sm:$0xff]  ;;  %v858_v23 = vld [vmem:[#allocation11 + $0x1e8] sm:$0xff]  ;;  %v3362_v62 = vpack.c.bf16 %v793_v58, %v793_v58  ;;  %s2288_s24 = sadd.s32 2, %s3247_s23  ;;  %s2291_s26 = sadd.s32 1, %s3251_s25 }
  0x41   : > { %677 = vmatprep.subr.bf16.mxu0 %v2899_v11  ;;  %730 = vmatprep.subr.bf16.mxu1 %v2902_v13  ;;  %v3299_v22 = vcombine.high %v853_v18, %v857_v20  ;;  %v2903_v24 = vld [vmem:[%s3259_s11 + $0x8] sm:$0xff]   ;;  %v3303_v25 = vcombine.high %v854_v21, %v858_v23  ;;  %v845_v26 = vld [vmem:[#allocation11 + $0x180] sm:$0xff]  ;;  %v3311_v31 = vcombine.low %v853_v18, %v857_v20  ;;  %s2532_s28 = sadd.s32 3, %s3247_s23  ;;  %p2835_p6 = scmp.ne.s32.totalorder %s3200_s30, 1 }
  0x42   : > { %v849_v27 = vld [vmem:[#allocation11 + $0x1a0] sm:$0xff]  ;;  %v846_v28 = vld [vmem:[#allocation11 + $0x188] sm:$0xff]  ;;  %v3313_v32 = vcombine.low %v854_v21, %v858_v23 }
  0x43   : > { %2663 = vmatmul.mubr.msk.bf16.vlgmr.msra.gmra.mxu0 %vm446_vm0, %v2896_v10  ;;  %2665 = vmatmul.mubr.msk.bf16.vlgmr.msra.gmra.mxu1 %vm446_vm0, %v2896_v10  ;;  %4618 = vst [vmem:[#allocation17_spill] sm:$0xff] %v3299_v22  ;;  %4619 = vst [vmem:[#allocation18_spill] sm:$0xff] %v3303_v25  ;;  %v850_v29 = vld [vmem:[#allocation11 + $0x1a8] sm:$0xff]  ;;  %v2910_v30 = vld [vmem:[%s3264_s15] sm:$0xff]   ;;  %v3315_v33 = vcombine.high %v845_v26, %v849_v27  ;;  %v3323_v39 = vcombine.low %v845_v26, %v849_v27 }
  0x44   : > { %678 = vmatpush1.bf16.msra.mxu0 %v2897_v12  ;;  %495 = vmatprep.mubr.bf16.mxu0 %v3145_v3  ;;  %4620 = vst [vmem:[#allocation19_spill] sm:$0xff] %v3311_v31  ;;  %4621 = vst [vmem:[#allocation20_spill] sm:$0xff] %v3313_v32  ;;  %v3317_v34 = vcombine.high %v846_v28, %v850_v29  ;;  %v837_v35 = vld [vmem:[#allocation11 + $0x140] sm:$0xff]  ;;  %v838_v37 = vld [vmem:[#allocation11 + $0x148] sm:$0xff]  ;;  %v3325_v40 = vcombine.low %v846_v28, %v850_v29 }
  0x45   : > { %548 = vmatprep.mubr.bf16.mxu1 %v3145_v3  ;;  %679 = vmatprep.subr.bf16.mxu0 %v2906_v15  ;;  %4622 = vst [vmem:[#allocation21_spill] sm:$0xff] %v3315_v33  ;;  %v841_v36 = vld [vmem:[#allocation11 + $0x160] sm:$0xff]  ;;  %v842_v38 = vld [vmem:[#allocation11 + $0x168] sm:$0xff]  ;;  %4624 = vst [vmem:[#allocation23_spill] sm:$0xff] %v3323_v39 }
  0x46   : > { %731 = vmatpush1.bf16.msra.mxu1 %v2900_v14  ;;  %4623 = vst [vmem:[#allocation22_spill] sm:$0xff] %v3317_v34  ;;  %4625 = vst [vmem:[#allocation24_spill] sm:$0xff] %v3325_v40  ;;  %v3329_v41 = vcombine.high %v837_v35, %v841_v36  ;;  %v3331_v42 = vcombine.high %v838_v37, %v842_v38  ;;  %v829_v43 = vld [vmem:[#allocation11 + $0x100] sm:$0xff]  ;;  %v830_v45 = vld [vmem:[#allocation11 + $0x108] sm:$0xff]  ;;  %v3338_v48 = vcombine.low %v837_v35, %v841_v36 }
  0x47   : > { %732 = vmatprep.subr.bf16.mxu1 %v2909_v17  ;;  %v833_v44 = vld [vmem:[#allocation11 + $0x120] sm:$0xff]  ;;  %v834_v46 = vld [vmem:[#allocation11 + $0x128] sm:$0xff]  ;;  %v3340_v49 = vcombine.low %v838_v37, %v842_v38 }
  0x48   : > { %680 = vmatpush1.bf16.msra.mxu0 %v2904_v16  ;;  %4626 = vst [vmem:[#allocation25_spill] sm:$0xff] %v3329_v41  ;;  %4627 = vst [vmem:[#allocation26_spill] sm:$0xff] %v3331_v42  ;;  %v2911_v47 = vld [vmem:[%s3264_s15 + $0x8] sm:$0xff]   ;;  %v3344_v50 = vcombine.high %v829_v43, %v833_v44  ;;  %v3346_v51 = vcombine.high %v830_v45, %v834_v46  ;;  %v821_v52 = vld [vmem:[#allocation11 + $0xc0] sm:$0xff]  ;;  %v3352_v56 = vcombine.low %v829_v43, %v833_v44 }
  0x49   : > { %1565 = vmatprep.subr.bf16.mxu0 %v3299_v22  ;;  %4628 = vst [vmem:[#allocation27_spill] sm:$0xff] %v3338_v48  ;;  %4629 = vst [vmem:[#allocation28_spill] sm:$0xff] %v3340_v49  ;;  %v825_v53 = vld [vmem:[#allocation11 + $0xe0] sm:$0xff]  ;;  %v822_v54 = vld [vmem:[#allocation11 + $0xc8] sm:$0xff]  ;;  %v3354_v57 = vcombine.low %v830_v45, %v834_v46 }
  0x4a   : > { %733 = vmatpush1.bf16.msra.mxu1 %v2907_v19  ;;  %4630 = vst [vmem:[#allocation29_spill] sm:$0xff] %v3344_v50  ;;  %4631 = vst [vmem:[#allocation30_spill] sm:$0xff] %v3346_v51  ;;  %v826_v55 = vld [vmem:[#allocation11 + $0xe8] sm:$0xff]  ;;  %v3358_v59 = vcombine.high %v821_v52, %v825_v53  ;;  %v813_v61 = vld [vmem:[#allocation11 + $0x80] sm:$0xff]  ;;  %v3368_v2 = vcombine.low %v821_v52, %v825_v53 }
  0x4b   : > { %2664 = vmatmul.mubr.msk.bf16.gmra.mxu0 %vm446_vm0, %v2903_v24  ;;  %2666 = vmatmul.mubr.msk.bf16.gmra.mxu1 %vm446_vm0, %v2903_v24  ;;  %4632 = vst [vmem:[#allocation31_spill] sm:$0xff] %v3352_v56  ;;  %4633 = vst [vmem:[#allocation32_spill] sm:$0xff] %v3354_v57  ;;  %v3360_v60 = vcombine.high %v822_v54, %v826_v55  ;;  %v817_v63 = vld [vmem:[#allocation11 + $0xa0] sm:$0xff]  ;;  %v814_v0 = vld [vmem:[#allocation11 + $0x88] sm:$0xff] }
  0x4c   : > { %697 = vmatprep.mubr.bf16.mxu0 %v3145_v3  ;;  %750 = vmatprep.mubr.bf16.mxu1 %v3145_v3  ;;  %4634 = vst [vmem:[#allocation33_spill] sm:$0xff] %v3358_v59  ;;  %v818_v1 = vld [vmem:[#allocation11 + $0xa8] sm:$0xff]  ;;  %4636 = vst [vmem:[#allocation35_spill] sm:$0xff] %v3368_v2  ;;  %v3374_v4 = vcombine.high %v813_v61, %v817_v63  ;;  %v805_v6 = vld [vmem:[#allocation11 + $0x40] sm:$0xff]  ;;  %v3380_v10 = vcombine.low %v813_v61, %v817_v63 }
  0x4d   : > { %1606 = vmatprep.subr.bf16.mxu1 %v3303_v25  ;;  %4635 = vst [vmem:[#allocation34_spill] sm:$0xff] %v3360_v60  ;;  %v3376_v5 = vcombine.high %v814_v0, %v818_v1  ;;  %v809_v7 = vld [vmem:[#allocation11 + $0x60] sm:$0xff]  ;;  %v806_v8 = vld [vmem:[#allocation11 + $0x48] sm:$0xff]  ;;  %v3382_v11 = vcombine.low %v814_v0, %v818_v1 }
  0x4e   : > { %4638 = vst [vmem:[#allocation37_spill] sm:$0xff] %v3374_v4  ;;  %v810_v9 = vld [vmem:[#allocation11 + $0x68] sm:$0xff]  ;;  %4640 = vst [vmem:[#allocation39_spill] sm:$0xff] %v3380_v10  ;;  %v3386_v12 = vcombine.high %v805_v6, %v809_v7  ;;  %v797_v14 = vld [vmem:[#allocation11] sm:$0xff]  ;;  %v3392_v18 = vcombine.low %v805_v6, %v809_v7 }
  0x4f   : > { %4639 = vst [vmem:[#allocation38_spill] sm:$0xff] %v3376_v5  ;;  %4641 = vst [vmem:[#allocation40_spill] sm:$0xff] %v3382_v11  ;;  %v3388_v13 = vcombine.high %v806_v8, %v810_v9  ;;  %v801_v15 = vld [vmem:[#allocation11 + $0x20] sm:$0xff]  ;;  %v798_v16 = vld [vmem:[#allocation11 + $0x8] sm:$0xff]  ;;  %v3394_v19 = vcombine.low %v806_v8, %v810_v9 }
  0x50   : > { %4642 = vst [vmem:[#allocation41_spill] sm:$0xff] %v3386_v12  ;;  %v802_v17 = vld [vmem:[#allocation11 + $0x28] sm:$0xff]  ;;  %4644 = vst [vmem:[#allocation43_spill] sm:$0xff] %v3392_v18  ;;  %v3398_v20 = vcombine.high %v797_v14, %v801_v15  ;;  %v917_v23 = vld [vmem:[#allocation11 + $0x3c0] sm:$0xff]  ;;  %v3404_v28 = vcombine.low %v797_v14, %v801_v15 }
  0x51   : > { %4643 = vst [vmem:[#allocation42_spill] sm:$0xff] %v3388_v13  ;;  %4645 = vst [vmem:[#allocation44_spill] sm:$0xff] %v3394_v19  ;;  %v3400_v21 = vcombine.high %v798_v16, %v802_v17  ;;  %v921_v24 = vld [vmem:[#allocation11 + $0x3e0] sm:$0xff]  ;;  %v918_v26 = vld [vmem:[#allocation11 + $0x3c8] sm:$0xff]  ;;  %v3406_v29 = vcombine.low %v798_v16, %v802_v17 }
  0x52   : > { %4646 = vst [vmem:[#allocation45_spill] sm:$0xff] %v3398_v20  ;;  %v922_v27 = vld [vmem:[#allocation11 + $0x3e8] sm:$0xff]  ;;  %4648 = vst [vmem:[#allocation47_spill] sm:$0xff] %v3404_v28  ;;  %v909_v36 = vld [vmem:[#allocation11 + $0x380] sm:$0xff]  ;;  %v3416_v44 = vcombine.low %v917_v23, %v921_v24 }
  0x53   : > { %2677 = vmatmul.mubr.msk.bf16.vlgmr.msra.gmra.mxu0 %vm446_vm0, %v2910_v30  ;;  %2679 = vmatmul.mubr.msk.bf16.vlgmr.msra.gmra.mxu1 %vm446_vm0, %v2910_v30  ;;  %4647 = vst [vmem:[#allocation46_spill] sm:$0xff] %v3400_v21  ;;  %4649 = vst [vmem:[#allocation48_spill] sm:$0xff] %v3406_v29  ;;  %v3410_v30 = vcombine.high %v917_v23, %v921_v24  ;;  %v3412_v35 = vcombine.high %v918_v26, %v922_v27  ;;  %v913_v37 = vld [vmem:[#allocation11 + $0x3a0] sm:$0xff]  ;;  %v910_v38 = vld [vmem:[#allocation11 + $0x388] sm:$0xff] }
  0x54   : > { %1566 = vmatpush1.bf16.msra.mxu0 %v3311_v31  ;;  %1607 = vmatpush1.bf16.msra.mxu1 %v3313_v32  ;;  %v914_v43 = vld [vmem:[#allocation11 + $0x3a8] sm:$0xff]  ;;  %4652 = vst [vmem:[#allocation51_spill] sm:$0xff] %v3416_v44  ;;  %v3418_v45 = vcombine.low %v918_v26, %v922_v27  ;;  %v3422_v46 = vcombine.high %v909_v36, %v913_v37  ;;  %v901_v52 = vld [vmem:[#allocation11 + $0x340] sm:$0xff] }
  0x55   : > { %1567 = vmatprep.subr.bf16.mxu0 %v3315_v33  ;;  %1608 = vmatprep.subr.bf16.mxu1 %v3317_v34  ;;  %4650 = vst [vmem:[#allocation49_spill] sm:$0xff] %v3410_v30  ;;  %4651 = vst [vmem:[#allocation50_spill] sm:$0xff] %v3412_v35  ;;  %v905_v53 = vld [vmem:[#allocation11 + $0x360] sm:$0xff]  ;;  %v3428_v58 = vcombine.low %v909_v36, %v913_v37  ;;  %v3430_v61 = vcombine.low %v910_v38, %v914_v43  ;;  %v894_v7 = vld [vmem:[#allocation11 + $0x308] sm:$0xff] }
  0x56   : > { %707 = vmatprep.mubr.bf16.mxu0 %v3145_v3  ;;  %760 = vmatprep.mubr.bf16.mxu1 %v3145_v3  ;;  %v3370_v3 = vcombine.low %v822_v54, %v826_v55  ;;  %4653 = vst [vmem:[#allocation52_spill] sm:$0xff] %v3418_v45  ;;  %4654 = vst [vmem:[#allocation53_spill] sm:$0xff] %v3422_v46  ;;  %v902_v54 = vld [vmem:[#allocation11 + $0x348] sm:$0xff]  ;;  %v3434_v63 = vcombine.high %v901_v52, %v905_v53  ;;  %v893_v1 = vld [vmem:[#allocation11 + $0x300] sm:$0xff] }
  0x57   : > { %v906_v55 = vld [vmem:[#allocation11 + $0x368] sm:$0xff]  ;;  %4656 = vst [vmem:[#allocation55_spill] sm:$0xff] %v3428_v58  ;;  %4657 = vst [vmem:[#allocation56_spill] sm:$0xff] %v3430_v61  ;;  %v897_v6 = vld [vmem:[#allocation11 + $0x320] sm:$0xff]  ;;  %v3440_v9 = vcombine.low %v901_v52, %v905_v53 }
  0x58   : > { %1568 = vmatpush1.bf16.msra.mxu0 %v3323_v39  ;;  %1609 = vmatpush1.bf16.msra.mxu1 %v3325_v40  ;;  %4637 = vst [vmem:[#allocation36_spill] sm:$0xff] %v3370_v3  ;;  %4658 = vst [vmem:[#allocation57_spill] sm:$0xff] %v3434_v63  ;;  %v3436_v0 = vcombine.high %v902_v54, %v906_v55  ;;  %v898_v8 = vld [vmem:[#allocation11 + $0x328] sm:$0xff]  ;;  %v3442_v14 = vcombine.low %v902_v54, %v906_v55  ;;  %v885_v17 = vld [vmem:[#allocation11 + $0x2c0] sm:$0xff] }
  0x59   : > { %1569 = vmatprep.subr.bf16.mxu0 %v3329_v41  ;;  %1610 = vmatprep.subr.bf16.mxu1 %v3331_v42  ;;  %4660 = vst [vmem:[#allocation59_spill] sm:$0xff] %v3440_v9  ;;  %v3446_v15 = vcombine.high %v893_v1, %v897_v6  ;;  %v3448_v16 = vcombine.high %v894_v7, %v898_v8  ;;  %v889_v23 = vld [vmem:[#allocation11 + $0x2e0] sm:$0xff]  ;;  %v886_v24 = vld [vmem:[#allocation11 + $0x2c8] sm:$0xff] }
  0x5a   : > { %4659 = vst [vmem:[#allocation58_spill] sm:$0xff] %v3436_v0  ;;  %4661 = vst [vmem:[#allocation60_spill] sm:$0xff] %v3442_v14  ;;  %v890_v26 = vld [vmem:[#allocation11 + $0x2e8] sm:$0xff]  ;;  %v3452_v27 = vcombine.low %v893_v1, %v897_v6  ;;  %v3454_v36 = vcombine.low %v894_v7, %v898_v8  ;;  %v3458_v37 = vcombine.high %v885_v17, %v889_v23  ;;  %v881_v52 = vld [vmem:[#allocation11 + $0x2a0] sm:$0xff] }
  0x5b   : > { %2678 = vmatmul.mubr.msk.bf16.gmra.mxu0 %vm446_vm0, %v2911_v47  ;;  %2680 = vmatmul.mubr.msk.bf16.gmra.mxu1 %vm446_vm0, %v2911_v47  ;;  %v3424_v47 = vcombine.high %v910_v38, %v914_v43  ;;  %4662 = vst [vmem:[#allocation61_spill] sm:$0xff] %v3446_v15  ;;  %4663 = vst [vmem:[#allocation62_spill] sm:$0xff] %v3448_v16  ;;  %v3460_v38 = vcombine.high %v886_v24, %v890_v26  ;;  %v877_v43 = vld [vmem:[#allocation11 + $0x280] sm:$0xff]  ;;  %v878_v53 = vld [vmem:[#allocation11 + $0x288] sm:$0xff] }
  0x5c   : > { %1570 = vmatpush1.bf16.msra.mxu0 %v3338_v48  ;;  %1611 = vmatpush1.bf16.msra.mxu1 %v3340_v49  ;;  %4664 = vst [vmem:[#allocation63_spill] sm:$0xff] %v3452_v27  ;;  %4665 = vst [vmem:[#allocation64_spill] sm:$0xff] %v3454_v36  ;;  %v882_v54 = vld [vmem:[#allocation11 + $0x2a8] sm:$0xff]  ;;  %v3464_v55 = vcombine.low %v885_v17, %v889_v23  ;;  %v3466_v1 = vcombine.low %v886_v24, %v890_v26  ;;  %v869_v8 = vld [vmem:[#allocation11 + $0x240] sm:$0xff] }
  0x5d   : > { %1571 = vmatprep.subr.bf16.mxu0 %v3344_v50  ;;  %1612 = vmatprep.subr.bf16.mxu1 %v3346_v51  ;;  %4655 = vst [vmem:[#allocation54_spill] sm:$0xff] %v3424_v47  ;;  %4666 = vst [vmem:[#allocation65_spill] sm:$0xff] %v3458_v37  ;;  %v3470_v6 = vcombine.high %v877_v43, %v881_v52  ;;  %v3472_v7 = vcombine.high %v878_v53, %v882_v54 }
  0x5e   : > { %1597 = vmatprep.mubr.bf16.mxu0 %v3362_v62  ;;  %1638 = vmatprep.mubr.bf16.mxu1 %v3362_v62  ;;  %4667 = vst [vmem:[#allocation66_spill] sm:$0xff] %v3460_v38  ;;  %4668 = vst [vmem:[#allocation67_spill] sm:$0xff] %v3464_v55  ;;  %v3476_v17 = vcombine.low %v877_v43, %v881_v52  ;;  %v3478_v23 = vcombine.low %v878_v53, %v882_v54 }
  0x5f   : > { %4669 = vst [vmem:[#allocation68_spill] sm:$0xff] %v3466_v1  ;;  %4670 = vst [vmem:[#allocation69_spill] sm:$0xff] %v3470_v6 }
  0x60   : > { %1572 = vmatpush1.bf16.msra.mxu0 %v3352_v56  ;;  %1613 = vmatpush1.bf16.msra.mxu1 %v3354_v57  ;;  %4671 = vst [vmem:[#allocation70_spill] sm:$0xff] %v3472_v7  ;;  %4672 = vst [vmem:[#allocation71_spill] sm:$0xff] %v3476_v17 }
  0x61   : > { %1573 = vmatprep.subr.bf16.mxu0 %v3358_v59  ;;  %1614 = vmatprep.subr.bf16.mxu1 %v3360_v60  ;;  %4673 = vst [vmem:[#allocation72_spill] sm:$0xff] %v3478_v23 }
  0x64   : > { %1574 = vmatpush1.bf16.msra.mxu0 %v3368_v2  ;;  %1615 = vmatpush1.bf16.msra.mxu1 %v3370_v3 }
  0x65   : > { %1575 = vmatprep.subr.bf16.mxu0 %v3374_v4  ;;  %1616 = vmatprep.subr.bf16.mxu1 %v3376_v5 }
  0x68   : > { %1576 = vmatpush1.bf16.msra.mxu0 %v3380_v10  ;;  %1617 = vmatpush1.bf16.msra.mxu1 %v3382_v11 }
  0x69   : > { %1577 = vmatprep.subr.bf16.mxu0 %v3386_v12  ;;  %1618 = vmatprep.subr.bf16.mxu1 %v3388_v13 }
  0x6c   : > { %1578 = vmatpush1.bf16.msra.mxu0 %v3392_v18  ;;  %1619 = vmatpush1.bf16.msra.mxu1 %v3394_v19 }
  0x6d   : > { %1579 = vmatprep.subr.bf16.mxu0 %v3398_v20  ;;  %1620 = vmatprep.subr.bf16.mxu1 %v3400_v21 }
  0x70   : > { %1580 = vmatpush1.bf16.msra.mxu0 %v3404_v28  ;;  %1621 = vmatpush1.bf16.msra.mxu1 %v3406_v29 }
  0x71   : > { %1581 = vmatprep.subr.bf16.mxu0 %v3410_v30  ;;  %1622 = vmatprep.subr.bf16.mxu1 %v3412_v35 }
  0x74   : > { %1582 = vmatpush2.bf16.msra.mxu0 %v3416_v44  ;;  %1623 = vmatpush2.bf16.msra.mxu1 %v3418_v45 }
  0x75   : > { %1583 = vmatprep.subr.bf16.mxu0 %v3422_v46  ;;  %1624 = vmatprep.subr.bf16.mxu1 %v3424_v47 }
  0x78   : > { %1584 = vmatpush2.bf16.msra.mxu0 %v3428_v58  ;;  %1625 = vmatpush2.bf16.msra.mxu1 %v3430_v61 }
  0x79   : > { %1585 = vmatprep.subr.bf16.mxu0 %v3434_v63  ;;  %1626 = vmatprep.subr.bf16.mxu1 %v3436_v0 }
  0x7c   : > { %1586 = vmatpush2.bf16.msra.mxu0 %v3440_v9  ;;  %1627 = vmatpush2.bf16.msra.mxu1 %v3442_v14  ;;  %v874_v14 = vld [vmem:[#allocation11 + $0x268] sm:$0xff]  ;;  %v844_v9 = vld [vmem:[#allocation11 + $0x178] sm:$0xff] }
  0x7d   : > { %1587 = vmatprep.subr.bf16.mxu0 %v3446_v15  ;;  %1628 = vmatprep.subr.bf16.mxu1 %v3448_v16  ;;  %v873_v16 = vld [vmem:[#allocation11 + $0x260] sm:$0xff]  ;;  %v870_v15 = vld [vmem:[#allocation11 + $0x248] sm:$0xff] }
  0x7e   : > { %v3482_v24 = vcombine.high %v869_v8, %v873_v16  ;;  %v3484_v26 = vcombine.high %v870_v15, %v874_v14  ;;  %v3488_v43 = vcombine.low %v869_v8, %v873_v16  ;;  %v3490_v52 = vcombine.low %v870_v15, %v874_v14  ;;  %v3504_v15 = vld [vmem:[#allocation4] sm:$0xff] }
  0x7f   : > { %4682 = vst [vmem:[#allocation81_spill] sm:$0xff] %v3504_v15 }
  0x80   : > { %1588 = vmatpush2.bf16.msra.mxu0 %v3452_v27  ;;  %1629 = vmatpush2.bf16.msra.mxu1 %v3454_v36  ;;  %4674 = vst [vmem:[#allocation73_spill] sm:$0xff] %v3482_v24  ;;  %4675 = vst [vmem:[#allocation74_spill] sm:$0xff] %v3484_v26  ;;  %v862_v36 = vld [vmem:[#allocation11 + $0x208] sm:$0xff] }
  0x81   : > { %1589 = vmatprep.subr.bf16.mxu0 %v3458_v37  ;;  %1630 = vmatprep.subr.bf16.mxu1 %v3460_v38  ;;  %v861_v38 = vld [vmem:[#allocation11 + $0x200] sm:$0xff]  ;;  %v866_v27 = vld [vmem:[#allocation11 + $0x228] sm:$0xff]  ;;  %4676 = vst [vmem:[#allocation75_spill] sm:$0xff] %v3488_v43  ;;  %4677 = vst [vmem:[#allocation76_spill] sm:$0xff] %v3490_v52 }
  0x82   : > { %v865_v37 = vld [vmem:[#allocation11 + $0x220] sm:$0xff]  ;;  %v3496_v54 = vcombine.high %v862_v36, %v866_v27  ;;  %v3502_v14 = vcombine.low %v862_v36, %v866_v27 }
  0x83   : > { %v3494_v53 = vcombine.high %v861_v38, %v865_v37  ;;  %v3500_v16 = vcombine.low %v861_v38, %v865_v37  ;;  %v3514_v37 = vpack.c.bf16 %v3504_v15, %v3504_v15  ;;  %v840_v15 = vld [vmem:[#allocation11 + $0x158] sm:$0xff] }
  0x84   : > { %1590 = vmatpush2.bf16.msra.mxu0 %v3464_v55  ;;  %1631 = vmatpush2.bf16.msra.mxu1 %v3466_v1  ;;  %4679 = vst [vmem:[#allocation78_spill] sm:$0xff] %v3496_v54  ;;  %v856_v1 = vld [vmem:[#allocation11 + $0x1d8] sm:$0xff]  ;;  %4681 = vst [vmem:[#allocation80_spill] sm:$0xff] %v3502_v14 }
  0x85   : > { %1591 = vmatprep.subr.bf16.mxu0 %v3470_v6  ;;  %1632 = vmatprep.subr.bf16.mxu1 %v3472_v7  ;;  %4678 = vst [vmem:[#allocation77_spill] sm:$0xff] %v3494_v53  ;;  %v855_v7 = vld [vmem:[#allocation11 + $0x1d0] sm:$0xff]  ;;  %v860_v55 = vld [vmem:[#allocation11 + $0x1f8] sm:$0xff]  ;;  %4680 = vst [vmem:[#allocation79_spill] sm:$0xff] %v3500_v16 }
  0x86   : > { %v859_v6 = vld [vmem:[#allocation11 + $0x1f0] sm:$0xff]  ;;  %v3520_v36 = vcombine.low %v856_v1, %v860_v55 }
  0x87   : > { %v3508_v8 = vcombine.high %v855_v7, %v859_v6  ;;  %v3518_v27 = vcombine.low %v855_v7, %v859_v6  ;;  %v3540_v7 = vcombine.high %v840_v15, %v844_v9 }
  0x88   : > { %1592 = vmatpush2.bf16.msra.mxu0 %v3476_v17  ;;  %1633 = vmatpush2.bf16.msra.mxu1 %v3478_v23  ;;  %v851_v23 = vld [vmem:[#allocation11 + $0x1b0] sm:$0xff]  ;;  %v848_v17 = vld [vmem:[#allocation11 + $0x198] sm:$0xff]  ;;  %4685 = vst [vmem:[#allocation84_spill] sm:$0xff] %v3520_v36 }
  0x89   : > { %1593 = vmatprep.subr.bf16.mxu0 %v3482_v24  ;;  %1634 = vmatprep.subr.bf16.mxu1 %v3484_v26  ;;  %4683 = vst [vmem:[#allocation82_spill] sm:$0xff] %v3508_v8  ;;  %v3510_v26 = vcombine.high %v856_v1, %v860_v55  ;;  %v847_v24 = vld [vmem:[#allocation11 + $0x190] sm:$0xff]  ;;  %4691 = vst [vmem:[#allocation90_spill] sm:$0xff] %v3540_v7 }
  0x8a   : > { %v3524_v38 = vcombine.high %v847_v24, %v851_v23  ;;  %v3532_v55 = vcombine.low %v847_v24, %v851_v23  ;;  %v3548_v23 = vcombine.low %v840_v15, %v844_v9 }
  0x8b   : > { %4684 = vst [vmem:[#allocation83_spill] sm:$0xff] %v3510_v26 }
  0x8c   : > { %1594 = vmatpush2.bf16.msra.mxu0 %v3488_v43  ;;  %1635 = vmatpush2.bf16.msra.mxu1 %v3490_v52  ;;  %v852_v43 = vld [vmem:[#allocation11 + $0x1b8] sm:$0xff]  ;;  %4686 = vst [vmem:[#allocation85_spill] sm:$0xff] %v3524_v38  ;;  %v843_v52 = vld [vmem:[#allocation11 + $0x170] sm:$0xff]  ;;  %4688 = vst [vmem:[#allocation87_spill] sm:$0xff] %v3532_v55 }
  0x8d   : > { %1595 = vmatprep.subr.bf16.mxu0 %v3494_v53  ;;  %1636 = vmatprep.subr.bf16.mxu1 %v3496_v54  ;;  %v3526_v54 = vcombine.high %v848_v17, %v852_v43  ;;  %v839_v53 = vld [vmem:[#allocation11 + $0x150] sm:$0xff]  ;;  %v3534_v1 = vcombine.low %v848_v17, %v852_v43  ;;  %4693 = vst [vmem:[#allocation92_spill] sm:$0xff] %v3548_v23 }
  0x8e   : > { %v3538_v6 = vcombine.high %v839_v53, %v843_v52  ;;  %v3546_v17 = vcombine.low %v839_v53, %v843_v52 }
  0x8f   : > { %4687 = vst [vmem:[#allocation86_spill] sm:$0xff] %v3526_v54  ;;  %4689 = vst [vmem:[#allocation88_spill] sm:$0xff] %v3534_v1 }
  0x90   : > { %1596 = vmatpush2.bf16.msra.mxu0 %v3500_v16  ;;  %1637 = vmatpush2.bf16.msra.mxu1 %v3502_v14  ;;  %4690 = vst [vmem:[#allocation89_spill] sm:$0xff] %v3538_v6  ;;  %v832_v14 = vld [vmem:[#allocation11 + $0x118] sm:$0xff]  ;;  %4692 = vst [vmem:[#allocation91_spill] sm:$0xff] %v3546_v17 }
  0x91   : > { %1647 = vmatprep.subr.bf16.mxu0 %v3508_v8  ;;  %1688 = vmatprep.subr.bf16.mxu1 %v3510_v26  ;;  %v831_v26 = vld [vmem:[#allocation11 + $0x110] sm:$0xff]  ;;  %v836_v16 = vld [vmem:[#allocation11 + $0x138] sm:$0xff] }
  0x92   : > { %v835_v8 = vld [vmem:[#allocation11 + $0x130] sm:$0xff]  ;;  %v3554_v43 = vcombine.high %v832_v14, %v836_v16  ;;  %v3560_v9 = vcombine.low %v832_v14, %v836_v16 }
  0x93   : > { %1598 = vmatmul.mubr.bf16.vlgmr.msra.gmra.mxu0 %v3514_v37  ;;  %1639 = vmatmul.mubr.bf16.vlgmr.msra.gmra.mxu1 %v3514_v37  ;;  %v3552_v24 = vcombine.high %v831_v26, %v835_v8  ;;  %v3558_v52 = vcombine.low %v831_v26, %v835_v8 }
  0x94   : > { %1648 = vmatpush1.bf16.msra.mxu0 %v3518_v27  ;;  %1689 = vmatpush1.bf16.msra.mxu1 %v3520_v36  ;;  %4695 = vst [vmem:[#allocation94_spill] sm:$0xff] %v3554_v43  ;;  %v824_v36 = vld [vmem:[#allocation11 + $0xd8] sm:$0xff]  ;;  %4697 = vst [vmem:[#allocation96_spill] sm:$0xff] %v3560_v9 }
  0x95   : > { %1649 = vmatprep.subr.bf16.mxu0 %v3524_v38  ;;  %1690 = vmatprep.subr.bf16.mxu1 %v3526_v54  ;;  %4694 = vst [vmem:[#allocation93_spill] sm:$0xff] %v3552_v24  ;;  %v823_v54 = vld [vmem:[#allocation11 + $0xd0] sm:$0xff]  ;;  %4696 = vst [vmem:[#allocation95_spill] sm:$0xff] %v3558_v52 }
  0x96   : > { %1679 = vmatprep.mubr.bf16.mxu0 %v3362_v62  ;;  %1720 = vmatprep.mubr.bf16.mxu1 %v3362_v62  ;;  %v827_v38 = vld [vmem:[#allocation11 + $0xf0] sm:$0xff]  ;;  %v828_v62 = vld [vmem:[#allocation11 + $0xf8] sm:$0xff] }
  0x97   : > { %v3564_v53 = vcombine.high %v823_v54, %v827_v38  ;;  %v3566_v15 = vcombine.high %v824_v36, %v828_v62  ;;  %v3570_v26 = vcombine.low %v823_v54, %v827_v38  ;;  %v3572_v16 = vcombine.low %v824_v36, %v828_v62 }
  0x98   : > { %1650 = vmatpush1.bf16.msra.mxu0 %v3532_v55  ;;  %1691 = vmatpush1.bf16.msra.mxu1 %v3534_v1  ;;  %v816_v1 = vld [vmem:[#allocation11 + $0x98] sm:$0xff] }
  0x99   : > { %1651 = vmatprep.subr.bf16.mxu0 %v3538_v6  ;;  %1692 = vmatprep.subr.bf16.mxu1 %v3540_v7  ;;  %4698 = vst [vmem:[#allocation97_spill] sm:$0xff] %v3564_v53  ;;  %4699 = vst [vmem:[#allocation98_spill] sm:$0xff] %v3566_v15  ;;  %v815_v7 = vld [vmem:[#allocation11 + $0x90] sm:$0xff]  ;;  %v820_v55 = vld [vmem:[#allocation11 + $0xb8] sm:$0xff] }
  0x9a   : > { %v819_v6 = vld [vmem:[#allocation11 + $0xb0] sm:$0xff]  ;;  %4700 = vst [vmem:[#allocation99_spill] sm:$0xff] %v3570_v26  ;;  %4701 = vst [vmem:[#allocation100_spill] sm:$0xff] %v3572_v16  ;;  %v3578_v8 = vcombine.high %v816_v1, %v820_v55  ;;  %v3584_v36 = vcombine.low %v816_v1, %v820_v55 }
  0x9b   : > { %v3576_v14 = vcombine.high %v815_v7, %v819_v6  ;;  %v3582_v54 = vcombine.low %v815_v7, %v819_v6 }
  0x9c   : > { %1652 = vmatpush1.bf16.msra.mxu0 %v3546_v17  ;;  %1693 = vmatpush1.bf16.msra.mxu1 %v3548_v23  ;;  %4703 = vst [vmem:[#allocation102_spill] sm:$0xff] %v3578_v8  ;;  %v808_v23 = vld [vmem:[#allocation11 + $0x58] sm:$0xff]  ;;  %4705 = vst [vmem:[#allocation104_spill] sm:$0xff] %v3584_v36 }
  0x9d   : > { %1653 = vmatprep.subr.bf16.mxu0 %v3552_v24  ;;  %1694 = vmatprep.subr.bf16.mxu1 %v3554_v43  ;;  %4702 = vst [vmem:[#allocation101_spill] sm:$0xff] %v3576_v14  ;;  %v807_v43 = vld [vmem:[#allocation11 + $0x50] sm:$0xff]  ;;  %v812_v17 = vld [vmem:[#allocation11 + $0x78] sm:$0xff]  ;;  %4704 = vst [vmem:[#allocation103_spill] sm:$0xff] %v3582_v54 }
  0x9e   : > { %v811_v24 = vld [vmem:[#allocation11 + $0x70] sm:$0xff]  ;;  %v3590_v62 = vcombine.high %v808_v23, %v812_v17  ;;  %v3596_v55 = vcombine.low %v808_v23, %v812_v17 }
  0x9f   : > { %v3588_v38 = vcombine.high %v807_v43, %v811_v24  ;;  %v3594_v6 = vcombine.low %v807_v43, %v811_v24 }
  0xa0   : > { %1654 = vmatpush1.bf16.msra.mxu0 %v3558_v52  ;;  %1695 = vmatpush1.bf16.msra.mxu1 %v3560_v9  ;;  %4707 = vst [vmem:[#allocation106_spill] sm:$0xff] %v3590_v62  ;;  %v800_v9 = vld [vmem:[#allocation11 + $0x18] sm:$0xff]  ;;  %4709 = vst [vmem:[#allocation108_spill] sm:$0xff] %v3596_v55 }
  0xa1   : > { %1655 = vmatprep.subr.bf16.mxu0 %v3564_v53  ;;  %1696 = vmatprep.subr.bf16.mxu1 %v3566_v15  ;;  %4706 = vst [vmem:[#allocation105_spill] sm:$0xff] %v3588_v38  ;;  %v799_v15 = vld [vmem:[#allocation11 + $0x10] sm:$0xff]  ;;  %v804_v52 = vld [vmem:[#allocation11 + $0x38] sm:$0xff]  ;;  %4708 = vst [vmem:[#allocation107_spill] sm:$0xff] %v3594_v6 }
  0xa2   : > { %v803_v53 = vld [vmem:[#allocation11 + $0x30] sm:$0xff]  ;;  %v3602_v7 = vcombine.high %v800_v9, %v804_v52  ;;  %v3608_v17 = vcombine.low %v800_v9, %v804_v52 }
  0xa3   : > { %v3600_v1 = vcombine.high %v799_v15, %v803_v53  ;;  %v3606_v24 = vcombine.low %v799_v15, %v803_v53 }
  0xa4   : > { %1656 = vmatpush1.bf16.msra.mxu0 %v3570_v26  ;;  %1697 = vmatpush1.bf16.msra.mxu1 %v3572_v16  ;;  %4711 = vst [vmem:[#allocation110_spill] sm:$0xff] %v3602_v7  ;;  %v920_v16 = vld [vmem:[#allocation11 + $0x3d8] sm:$0xff]  ;;  %4713 = vst [vmem:[#allocation112_spill] sm:$0xff] %v3608_v17 }
  0xa5   : > { %1657 = vmatprep.subr.bf16.mxu0 %v3576_v14  ;;  %1698 = vmatprep.subr.bf16.mxu1 %v3578_v8  ;;  %4710 = vst [vmem:[#allocation109_spill] sm:$0xff] %v3600_v1  ;;  %v919_v8 = vld [vmem:[#allocation11 + $0x3d0] sm:$0xff]  ;;  %v924_v26 = vld [vmem:[#allocation11 + $0x3f8] sm:$0xff]  ;;  %4712 = vst [vmem:[#allocation111_spill] sm:$0xff] %v3606_v24 }
  0xa6   : > { %v923_v14 = vld [vmem:[#allocation11 + $0x3f0] sm:$0xff]  ;;  %v3614_v43 = vcombine.high %v920_v16, %v924_v26  ;;  %v3620_v52 = vcombine.low %v920_v16, %v924_v26 }
  0xa7   : > { %v3612_v23 = vcombine.high %v919_v8, %v923_v14  ;;  %v3618_v53 = vcombine.low %v919_v8, %v923_v14 }
  0xa8   : > { %1658 = vmatpush1.bf16.msra.mxu0 %v3582_v54  ;;  %1699 = vmatpush1.bf16.msra.mxu1 %v3584_v36  ;;  %4715 = vst [vmem:[#allocation114_spill] sm:$0xff] %v3614_v43  ;;  %v912_v36 = vld [vmem:[#allocation11 + $0x398] sm:$0xff]  ;;  %4717 = vst [vmem:[#allocation116_spill] sm:$0xff] %v3620_v52 }
  0xa9   : > { %1659 = vmatprep.subr.bf16.mxu0 %v3588_v38  ;;  %1700 = vmatprep.subr.bf16.mxu1 %v3590_v62  ;;  %4714 = vst [vmem:[#allocation113_spill] sm:$0xff] %v3612_v23  ;;  %v911_v62 = vld [vmem:[#allocation11 + $0x390] sm:$0xff]  ;;  %v916_v54 = vld [vmem:[#allocation11 + $0x3b8] sm:$0xff]  ;;  %4716 = vst [vmem:[#allocation115_spill] sm:$0xff] %v3618_v53 }
  0xaa   : > { %v915_v38 = vld [vmem:[#allocation11 + $0x3b0] sm:$0xff]  ;;  %v3626_v15 = vcombine.high %v912_v36, %v916_v54  ;;  %v3632_v26 = vcombine.low %v912_v36, %v916_v54 }
  0xab   : > { %v3624_v9 = vcombine.high %v911_v62, %v915_v38  ;;  %v3630_v14 = vcombine.low %v911_v62, %v915_v38 }
  0xac   : > { %1660 = vmatpush1.bf16.msra.mxu0 %v3594_v6  ;;  %1701 = vmatpush1.bf16.msra.mxu1 %v3596_v55  ;;  %4719 = vst [vmem:[#allocation118_spill] sm:$0xff] %v3626_v15  ;;  %v904_v55 = vld [vmem:[#allocation11 + $0x358] sm:$0xff]  ;;  %4721 = vst [vmem:[#allocation120_spill] sm:$0xff] %v3632_v26 }
  0xad   : > { %1661 = vmatprep.subr.bf16.mxu0 %v3600_v1  ;;  %1702 = vmatprep.subr.bf16.mxu1 %v3602_v7  ;;  %4718 = vst [vmem:[#allocation117_spill] sm:$0xff] %v3624_v9  ;;  %v903_v7 = vld [vmem:[#allocation11 + $0x350] sm:$0xff]  ;;  %v908_v6 = vld [vmem:[#allocation11 + $0x378] sm:$0xff]  ;;  %4720 = vst [vmem:[#allocation119_spill] sm:$0xff] %v3630_v14 }
  0xae   : > { %v907_v1 = vld [vmem:[#allocation11 + $0x370] sm:$0xff]  ;;  %v3638_v8 = vcombine.high %v904_v55, %v908_v6  ;;  %v3644_v54 = vcombine.low %v904_v55, %v908_v6 }
  0xaf   : > { %v3636_v16 = vcombine.high %v903_v7, %v907_v1  ;;  %v3642_v38 = vcombine.low %v903_v7, %v907_v1 }
  0xb0   : > { %1662 = vmatpush1.bf16.msra.mxu0 %v3606_v24  ;;  %1703 = vmatpush1.bf16.msra.mxu1 %v3608_v17  ;;  %4723 = vst [vmem:[#allocation122_spill] sm:$0xff] %v3638_v8  ;;  %v896_v17 = vld [vmem:[#allocation11 + $0x318] sm:$0xff]  ;;  %4725 = vst [vmem:[#allocation124_spill] sm:$0xff] %v3644_v54 }
  0xb1   : > { %1663 = vmatprep.subr.bf16.mxu0 %v3612_v23  ;;  %1704 = vmatprep.subr.bf16.mxu1 %v3614_v43  ;;  %4722 = vst [vmem:[#allocation121_spill] sm:$0xff] %v3636_v16  ;;  %v895_v43 = vld [vmem:[#allocation11 + $0x310] sm:$0xff]  ;;  %v900_v24 = vld [vmem:[#allocation11 + $0x338] sm:$0xff]  ;;  %4724 = vst [vmem:[#allocation123_spill] sm:$0xff] %v3642_v38 }
  0xb2   : > { %v899_v23 = vld [vmem:[#allocation11 + $0x330] sm:$0xff]  ;;  %v3650_v62 = vcombine.high %v896_v17, %v900_v24  ;;  %v3656_v6 = vcombine.low %v896_v17, %v900_v24 }
  0xb3   : > { %v3648_v36 = vcombine.high %v895_v43, %v899_v23  ;;  %v3654_v1 = vcombine.low %v895_v43, %v899_v23 }
  0xb4   : > { %1664 = vmatpush2.bf16.msra.mxu0 %v3618_v53  ;;  %1705 = vmatpush2.bf16.msra.mxu1 %v3620_v52  ;;  %4727 = vst [vmem:[#allocation126_spill] sm:$0xff] %v3650_v62  ;;  %v888_v52 = vld [vmem:[#allocation11 + $0x2d8] sm:$0xff]  ;;  %4729 = vst [vmem:[#allocation128_spill] sm:$0xff] %v3656_v6 }
  0xb5   : > { %1665 = vmatprep.subr.bf16.mxu0 %v3624_v9  ;;  %1706 = vmatprep.subr.bf16.mxu1 %v3626_v15  ;;  %4726 = vst [vmem:[#allocation125_spill] sm:$0xff] %v3648_v36  ;;  %v887_v15 = vld [vmem:[#allocation11 + $0x2d0] sm:$0xff]  ;;  %v892_v53 = vld [vmem:[#allocation11 + $0x2f8] sm:$0xff]  ;;  %4728 = vst [vmem:[#allocation127_spill] sm:$0xff] %v3654_v1 }
  0xb6   : > { %v891_v9 = vld [vmem:[#allocation11 + $0x2f0] sm:$0xff]  ;;  %v3662_v7 = vcombine.high %v888_v52, %v892_v53  ;;  %v3668_v24 = vcombine.low %v888_v52, %v892_v53 }
  0xb7   : > { %v3660_v55 = vcombine.high %v887_v15, %v891_v9  ;;  %v3666_v23 = vcombine.low %v887_v15, %v891_v9 }
  0xb8   : > { %1666 = vmatpush2.bf16.msra.mxu0 %v3630_v14  ;;  %1707 = vmatpush2.bf16.msra.mxu1 %v3632_v26  ;;  %4731 = vst [vmem:[#allocation130_spill] sm:$0xff] %v3662_v7  ;;  %v880_v26 = vld [vmem:[#allocation11 + $0x298] sm:$0xff]  ;;  %4733 = vst [vmem:[#allocation132_spill] sm:$0xff] %v3668_v24 }
  0xb9   : > { %1667 = vmatprep.subr.bf16.mxu0 %v3636_v16  ;;  %1708 = vmatprep.subr.bf16.mxu1 %v3638_v8  ;;  %4730 = vst [vmem:[#allocation129_spill] sm:$0xff] %v3660_v55  ;;  %v879_v8 = vld [vmem:[#allocation11 + $0x290] sm:$0xff]  ;;  %v884_v14 = vld [vmem:[#allocation11 + $0x2b8] sm:$0xff]  ;;  %4732 = vst [vmem:[#allocation131_spill] sm:$0xff] %v3666_v23 }
  0xba   : > { %v883_v16 = vld [vmem:[#allocation11 + $0x2b0] sm:$0xff]  ;;  %v3674_v43 = vcombine.high %v880_v26, %v884_v14  ;;  %v3680_v53 = vcombine.low %v880_v26, %v884_v14 }
  0xbb   : > { %v3672_v17 = vcombine.high %v879_v8, %v883_v16  ;;  %v3678_v9 = vcombine.low %v879_v8, %v883_v16 }
  0xbc   : > { %1668 = vmatpush2.bf16.msra.mxu0 %v3642_v38  ;;  %1709 = vmatpush2.bf16.msra.mxu1 %v3644_v54  ;;  %4735 = vst [vmem:[#allocation134_spill] sm:$0xff] %v3674_v43  ;;  %v872_v54 = vld [vmem:[#allocation11 + $0x258] sm:$0xff]  ;;  %4737 = vst [vmem:[#allocation136_spill] sm:$0xff] %v3680_v53 }
  0xbd   : > { %1669 = vmatprep.subr.bf16.mxu0 %v3648_v36  ;;  %1710 = vmatprep.subr.bf16.mxu1 %v3650_v62  ;;  %4734 = vst [vmem:[#allocation133_spill] sm:$0xff] %v3672_v17  ;;  %v871_v62 = vld [vmem:[#allocation11 + $0x250] sm:$0xff]  ;;  %v876_v38 = vld [vmem:[#allocation11 + $0x278] sm:$0xff]  ;;  %4736 = vst [vmem:[#allocation135_spill] sm:$0xff] %v3678_v9 }
  0xbe   : > { %v875_v36 = vld [vmem:[#allocation11 + $0x270] sm:$0xff]  ;;  %v3686_v15 = vcombine.high %v872_v54, %v876_v38  ;;  %v3692_v14 = vcombine.low %v872_v54, %v876_v38  ;;  %v4746_v38 = vld [vmem:[#allocation59_spill] sm:$0xff]  ;;  %v4747_v54 = vld [vmem:[#allocation60_spill] sm:$0xff] }
  0xbf   : > { %v3684_v52 = vcombine.high %v871_v62, %v875_v36  ;;  %v3690_v16 = vcombine.low %v871_v62, %v875_v36  ;;  %v4748_v36 = vld [vmem:[#allocation61_spill] sm:$0xff]  ;;  %v4749_v62 = vld [vmem:[#allocation62_spill] sm:$0xff] }
  0xc0   : > { %1670 = vmatpush2.bf16.msra.mxu0 %v3654_v1  ;;  %1711 = vmatpush2.bf16.msra.mxu1 %v3656_v6  ;;  %4739 = vst [vmem:[#allocation138_spill] sm:$0xff] %v3686_v15  ;;  %v864_v6 = vld [vmem:[#allocation11 + $0x218] sm:$0xff]  ;;  %4741 = vst [vmem:[#allocation140_spill] sm:$0xff] %v3692_v14 }
  0xc1   : > { %1671 = vmatprep.subr.bf16.mxu0 %v3660_v55  ;;  %1712 = vmatprep.subr.bf16.mxu1 %v3662_v7  ;;  %4738 = vst [vmem:[#allocation137_spill] sm:$0xff] %v3684_v52  ;;  %v863_v7 = vld [vmem:[#allocation11 + $0x210] sm:$0xff]  ;;  %v868_v1 = vld [vmem:[#allocation11 + $0x238] sm:$0xff]  ;;  %4740 = vst [vmem:[#allocation139_spill] sm:$0xff] %v3690_v16 }
  0xc2   : > { %v867_v55 = vld [vmem:[#allocation11 + $0x230] sm:$0xff]  ;;  %v3698_v8 = vcombine.high %v864_v6, %v868_v1 }
  0xc3   : > { %v3696_v26 = vcombine.high %v863_v7, %v867_v55 }
  0xc4   : > { %1672 = vmatpush2.bf16.msra.mxu0 %v3666_v23  ;;  %1713 = vmatpush2.bf16.msra.mxu1 %v3668_v24  ;;  %4743 = vst [vmem:[#allocation142_spill] sm:$0xff] %v3698_v8 }
  0xc5   : > { %1673 = vmatprep.subr.bf16.mxu0 %v3672_v17  ;;  %1714 = vmatprep.subr.bf16.mxu1 %v3674_v43  ;;  %4742 = vst [vmem:[#allocation141_spill] sm:$0xff] %v3696_v26  ;;  %v3702_v43 = vcombine.low %v863_v7, %v867_v55  ;;  %v4750_v55 = vld [vmem:[#allocation63_spill] sm:$0xff]  ;;  %v4751_v7 = vld [vmem:[#allocation64_spill] sm:$0xff] }
  0xc7   : > { %4744 = vst [vmem:[#allocation143_spill] sm:$0xff] %v3702_v43 }
  0xc8   : > { %1674 = vmatpush2.bf16.msra.mxu0 %v3678_v9  ;;  %1715 = vmatpush2.bf16.msra.mxu1 %v3680_v53  ;;  %v3704_v9 = vcombine.low %v864_v6, %v868_v1 }
  0xc9   : > { %1675 = vmatprep.subr.bf16.mxu0 %v3684_v52  ;;  %1716 = vmatprep.subr.bf16.mxu1 %v3686_v15 }
  0xca   : > { %4745 = vst [vmem:[#allocation144_spill] sm:$0xff] %v3704_v9 }
  0xcc   : > { %1676 = vmatpush2.bf16.msra.mxu0 %v3690_v16  ;;  %1717 = vmatpush2.bf16.msra.mxu1 %v3692_v14 }
  0xcd   : > { %1677 = vmatprep.subr.bf16.mxu0 %v3696_v26  ;;  %1718 = vmatprep.subr.bf16.mxu1 %v3698_v8 }
  0xd0   : > { %1678 = vmatpush2.bf16.msra.mxu0 %v3702_v43  ;;  %1719 = vmatpush2.bf16.msra.mxu1 %v3704_v9 }
  0xd1   : > { %1810 = vmatprep.subr.bf16.mxu0 %v3299_v22  ;;  %1851 = vmatprep.subr.bf16.mxu1 %v3303_v25 }
  0xd3   : > { %1680 = vmatmul.mubr.bf16.vlgmr.msra.gmra.mxu0 %v3514_v37  ;;  %1721 = vmatmul.mubr.bf16.vlgmr.msra.gmra.mxu1 %v3514_v37  ;;  %v376_v37 = vlaneseq }
  0xd4   : > { %1811 = vmatpush1.bf16.msra.mxu0 %v3311_v31  ;;  %1852 = vmatpush1.bf16.msra.mxu1 %v3313_v32 }
  0xd5   : > { %1812 = vmatprep.subr.bf16.mxu0 %v3315_v33  ;;  %1853 = vmatprep.subr.bf16.mxu1 %v3317_v34  ;;  %v3758_v1 = vshrl.u32 %v376_v37, 7 }
  0xd7   : > { %v386_v6 = vsub.s32 2, %v3758_v1 }
  0xd8   : > { %1813 = vmatpush1.bf16.msra.mxu0 %v3323_v39  ;;  %1854 = vmatpush1.bf16.msra.mxu1 %v3325_v40 }
  0xd9   : > { %1814 = vmatprep.subr.bf16.mxu0 %v3329_v41  ;;  %1855 = vmatprep.subr.bf16.mxu1 %v3331_v42 }
  0xdc   : > { %1815 = vmatpush1.bf16.msra.mxu0 %v3338_v48  ;;  %1856 = vmatpush1.bf16.msra.mxu1 %v3340_v49 }
  0xdd   : > { %1816 = vmatprep.subr.bf16.mxu0 %v3344_v50  ;;  %1857 = vmatprep.subr.bf16.mxu1 %v3346_v51 }
  0xe0   : > { %1817 = vmatpush1.bf16.msra.mxu0 %v3352_v56  ;;  %1858 = vmatpush1.bf16.msra.mxu1 %v3354_v57 }
  0xe1   : > { %1818 = vmatprep.subr.bf16.mxu0 %v3358_v59  ;;  %1859 = vmatprep.subr.bf16.mxu1 %v3360_v60 }
  0xe4   : > { %1819 = vmatpush1.bf16.msra.mxu0 %v3368_v2  ;;  %1860 = vmatpush1.bf16.msra.mxu1 %v3370_v3 }
  0xe5   : > { %1820 = vmatprep.subr.bf16.mxu0 %v3374_v4  ;;  %1861 = vmatprep.subr.bf16.mxu1 %v3376_v5 }
  0xe8   : > { %1821 = vmatpush1.bf16.msra.mxu0 %v3380_v10  ;;  %1862 = vmatpush1.bf16.msra.mxu1 %v3382_v11 }
  0xe9   : > { %1822 = vmatprep.subr.bf16.mxu0 %v3386_v12  ;;  %1863 = vmatprep.subr.bf16.mxu1 %v3388_v13 }
  0xec   : > { %1823 = vmatpush1.bf16.msra.mxu0 %v3392_v18  ;;  %1864 = vmatpush1.bf16.msra.mxu1 %v3394_v19 }
  0xed   : > { %1824 = vmatprep.subr.bf16.mxu0 %v3398_v20  ;;  %1865 = vmatprep.subr.bf16.mxu1 %v3400_v21  ;;  %v4762_v21 = vld [vmem:[#allocation73_spill] sm:$0xff]  ;;  %v4763_v20 = vld [vmem:[#allocation74_spill] sm:$0xff] }
  0xf0   : > { %1825 = vmatpush1.bf16.msra.mxu0 %v3404_v28  ;;  %1866 = vmatpush1.bf16.msra.mxu1 %v3406_v29  ;;  %v4760_v29 = vld [vmem:[#allocation71_spill] sm:$0xff]  ;;  %v4761_v28 = vld [vmem:[#allocation72_spill] sm:$0xff] }
  0xf1   : > { %1826 = vmatprep.subr.bf16.mxu0 %v3410_v30  ;;  %1867 = vmatprep.subr.bf16.mxu1 %v3412_v35 }
  0xf4   : > { %1827 = vmatpush2.bf16.msra.mxu0 %v3416_v44  ;;  %1868 = vmatpush2.bf16.msra.mxu1 %v3418_v45 }
  0xf5   : > { %1828 = vmatprep.subr.bf16.mxu0 %v3422_v46  ;;  %1869 = vmatprep.subr.bf16.mxu1 %v3424_v47  ;;  %v4756_v47 = vld [vmem:[#allocation69_spill] sm:$0xff]  ;;  %v4757_v46 = vld [vmem:[#allocation70_spill] sm:$0xff] }
  0xf8   : > { %1829 = vmatpush2.bf16.msra.mxu0 %v3428_v58  ;;  %1870 = vmatpush2.bf16.msra.mxu1 %v3430_v61 }
  0xf9   : > { %1830 = vmatprep.subr.bf16.mxu0 %v3434_v63  ;;  %1871 = vmatprep.subr.bf16.mxu1 %v3436_v0  ;;  %v4752_v63 = vld [vmem:[#allocation65_spill] sm:$0xff]  ;;  %v4753_v0 = vld [vmem:[#allocation66_spill] sm:$0xff] }
  0xfc   : > { %1831 = vmatpush2.bf16.msra.mxu0 %v4746_v38  ;;  %1872 = vmatpush2.bf16.msra.mxu1 %v4747_v54  ;;  %v378_v38 = vsub.s32 0, %v3758_v1  ;;  %v390_v54 = vsub.s32 3, %v3758_v1 }
  0xfd   : > { %1832 = vmatprep.subr.bf16.mxu0 %v4748_v36  ;;  %1873 = vmatprep.subr.bf16.mxu1 %v4749_v62  ;;  %v374_v62 = vld [vmem:[%s4378_s5] sm:$0xf] }
  0xfe   : > { %v3775_v61 = vrot.slane %v374_v62, %v386_v6  ;;  %v3785_v45 = vrot.slane %v374_v62, %v378_v38  ;;  %v3787_v44 = vrot.slane %v374_v62, %v390_v54 }
 0x100   : > { %1833 = vmatpush2.bf16.msra.mxu0 %v4750_v55  ;;  %1874 = vmatpush2.bf16.msra.mxu1 %v4751_v7  ;;  %v382_v55 = vsub.s32 1, %v3758_v1  ;;  %v4754_v7 = vld [vmem:[#allocation67_spill] sm:$0xff] }
 0x101   : > { %1834 = vmatprep.subr.bf16.mxu0 %v4752_v63  ;;  %1875 = vmatprep.subr.bf16.mxu1 %v4753_v0  ;;  %v4755_v63 = vld [vmem:[#allocation68_spill] sm:$0xff] }
 0x102   : > { %v3789_v30 = vrot.slane %v374_v62, %v382_v55 }
 0x103   : > { %v3770_v37 = vpop.f32.mrf.mxu0  ;;  %v3772_v36 = vpop.f32.mrf.mxu1 }
 0x104   : > { %1835 = vmatpush2.bf16.msra.mxu0 %v4754_v7  ;;  %1876 = vmatpush2.bf16.msra.mxu1 %v4755_v63 }
 0x105   : > { %v3779_v0 = vpop.f32.mrf.mxu0  ;;  %v3781_v58 = vpop.f32.mrf.mxu1  ;;  %1836 = vmatprep.subr.bf16.mxu0 %v4756_v47  ;;  %1877 = vmatprep.subr.bf16.mxu1 %v4757_v46 }
 0x107   : > { %v491_v35 = vpop.f32.mrf.mxu0  ;;  %v544_v1 = vpop.f32.mrf.mxu1 }
 0x108   : > { %v3792_v7 = vadd.f32 %v491_v35, %v3785_v45  ;;  %v3795_v63 = vadd.f32 %v544_v1, %v3775_v61  ;;  %1837 = vmatpush2.bf16.msra.mxu0 %v4760_v29  ;;  %1878 = vmatpush2.bf16.msra.mxu1 %v4761_v28 }
 0x109   : > { %v493_v47 = vpop.f32.mrf.mxu0  ;;  %v546_v46 = vpop.f32.mrf.mxu1  ;;  %1838 = vmatprep.subr.bf16.mxu0 %v4762_v21  ;;  %1879 = vmatprep.subr.bf16.mxu1 %v4763_v20  ;;  %v4768_v21 = vld [vmem:[#allocation75_spill] sm:$0xff]  ;;  %v4769_v20 = vld [vmem:[#allocation76_spill] sm:$0xff] }
 0x10a   : > { %4758 = vst [vmem:[#allocation145_spill] sm:$0xff] %v3792_v7  ;;  %4759 = vst [vmem:[#allocation146_spill] sm:$0xff] %v3795_v63  ;;  %v3802_v19 = vadd.f32 %v493_v47, %v3789_v30  ;;  %v3805_v62 = vadd.f32 %v546_v46, %v3787_v44  ;;  %v587_v63 = vld [vmem:[%s4379_s6] sm:$0xf]  ;;  %v4770_v46 = vld [vmem:[#allocation77_spill] sm:$0xff] }
 0x10b   : > { %v497_v35 = vpop.f32.mrf.mxu0  ;;  %v550_v7 = vpop.f32.mrf.mxu1  ;;  %v3826_v18 = vrot.slane %v587_v63, %v378_v38 }
 0x10c   : > { %4764 = vst [vmem:[#allocation147_spill] sm:$0xff] %v3802_v19  ;;  %4765 = vst [vmem:[#allocation148_spill] sm:$0xff] %v3805_v62  ;;  %v3808_v1 = vadd.f32 %v497_v35, %v3785_v45  ;;  %v3814_v28 = vadd.f32 %v550_v7, %v3775_v61  ;;  %1839 = vmatpush2.bf16.msra.mxu0 %v4768_v21  ;;  %1880 = vmatpush2.bf16.msra.mxu1 %v4769_v20  ;;  %v4771_v62 = vld [vmem:[#allocation78_spill] sm:$0xff] }
 0x10d   : > { %v499_v47 = vpop.f32.mrf.mxu0  ;;  %v552_v19 = vpop.f32.mrf.mxu1  ;;  %1840 = vmatprep.subr.bf16.mxu0 %v4770_v46  ;;  %1881 = vmatprep.subr.bf16.mxu1 %v4771_v62  ;;  %v3834_v21 = vrot.slane %v587_v63, %v386_v6  ;;  %v4776_v46 = vld [vmem:[#allocation79_spill] sm:$0xff]  ;;  %v4777_v62 = vld [vmem:[#allocation80_spill] sm:$0xff]  ;;  %v3848_v6 = vrot.slane %v587_v63, %v390_v54 }
 0x10e   : > { %4766 = vst [vmem:[#allocation149_spill] sm:$0xff] %v3808_v1  ;;  %4767 = vst [vmem:[#allocation150_spill] sm:$0xff] %v3814_v28  ;;  %v3821_v35 = vadd.f32 %v499_v47, %v3789_v30  ;;  %v3824_v1 = vadd.f32 %v552_v19, %v3787_v44  ;;  %v4778_v19 = vld [vmem:[#allocation82_spill] sm:$0xff] }
 0x10f   : > { %v501_v29 = vpop.f32.mrf.mxu0  ;;  %v554_v7 = vpop.f32.mrf.mxu1 }
 0x110   : > { %4772 = vst [vmem:[#allocation151_spill] sm:$0xff] %v3821_v35  ;;  %4773 = vst [vmem:[#allocation152_spill] sm:$0xff] %v3824_v1  ;;  %v3829_v28 = vadd.f32 %v501_v29, %v3785_v45  ;;  %v3832_v20 = vadd.f32 %v554_v7, %v3775_v61  ;;  %1841 = vmatpush2.bf16.msra.mxu0 %v4776_v46  ;;  %1882 = vmatpush2.bf16.msra.mxu1 %v4777_v62  ;;  %v4779_v1 = vld [vmem:[#allocation83_spill] sm:$0xff] }
 0x111   : > { %v503_v47 = vpop.f32.mrf.mxu0  ;;  %v556_v35 = vpop.f32.mrf.mxu1  ;;  %1892 = vmatprep.subr.bf16.mxu0 %v4778_v19  ;;  %1933 = vmatprep.subr.bf16.mxu1 %v4779_v1  ;;  %v3843_v29 = vrot.slane %v587_v63, %v382_v55 }
 0x112   : > { %4774 = vst [vmem:[#allocation153_spill] sm:$0xff] %v3829_v28  ;;  %4775 = vst [vmem:[#allocation154_spill] sm:$0xff] %v3832_v20  ;;  %v3841_v38 = vadd.f32 %v503_v47, %v3789_v30  ;;  %v3846_v7 = vadd.f32 %v556_v35, %v3787_v44 }
 0x113   : > { %v699_v20 = vpop.f32.mrf.mxu0  ;;  %v752_v28 = vpop.f32.mrf.mxu1 }
 0x114   : > { %4780 = vst [vmem:[#allocation155_spill] sm:$0xff] %v3841_v38  ;;  %4781 = vst [vmem:[#allocation156_spill] sm:$0xff] %v3846_v7  ;;  %v3851_v62 = vadd.f32 %v699_v20, %v3826_v18  ;;  %v3854_v46 = vadd.f32 %v752_v28, %v3834_v21 }
 0x115   : > { %v701_v19 = vpop.f32.mrf.mxu0  ;;  %v754_v1 = vpop.f32.mrf.mxu1 }
 0x116   : > { %4782 = vst [vmem:[#allocation157_spill] sm:$0xff] %v3851_v62  ;;  %4783 = vst [vmem:[#allocation158_spill] sm:$0xff] %v3854_v46  ;;  %v3857_v47 = vadd.f32 %v701_v19, %v3843_v29  ;;  %v3860_v55 = vadd.f32 %v754_v1, %v3848_v6 }
 0x117   : > { %v703_v35 = vpop.f32.mrf.mxu0  ;;  %v756_v7 = vpop.f32.mrf.mxu1 }
 0x118   : > { %4784 = vst [vmem:[#allocation159_spill] sm:$0xff] %v3857_v47  ;;  %4785 = vst [vmem:[#allocation160_spill] sm:$0xff] %v3860_v55  ;;  %v3863_v63 = vadd.f32 %v703_v35, %v3826_v18  ;;  %v3866_v54 = vadd.f32 %v756_v7, %v3834_v21 }
 0x119   : > { %v705_v20 = vpop.f32.mrf.mxu0  ;;  %v758_v62 = vpop.f32.mrf.mxu1 }
 0x11a   : > { %4786 = vst [vmem:[#allocation161_spill] sm:$0xff] %v3863_v63  ;;  %4787 = vst [vmem:[#allocation162_spill] sm:$0xff] %v3866_v54  ;;  %v3869_v28 = vadd.f32 %v705_v20, %v3843_v29  ;;  %v3872_v46 = vadd.f32 %v758_v62, %v3848_v6 }
 0x11b   : > { %v709_v19 = vpop.f32.mrf.mxu0  ;;  %v762_v47 = vpop.f32.mrf.mxu1 }
 0x11c   : > { %4788 = vst [vmem:[#allocation163_spill] sm:$0xff] %v3869_v28  ;;  %4789 = vst [vmem:[#allocation164_spill] sm:$0xff] %v3872_v46  ;;  %v3875_v1 = vadd.f32 %v709_v19, %v3826_v18  ;;  %v3878_v55 = vadd.f32 %v762_v47, %v3834_v21  ;;  %v488_v19 = vadd.f32 %v3770_v37, %v3785_v45 }
 0x11d   : > { %v711_v35 = vpop.f32.mrf.mxu0  ;;  %v764_v38 = vpop.f32.mrf.mxu1  ;;  %v541_v47 = vadd.f32 %v3772_v36, %v3775_v61 }
 0x11e   : > { %4790 = vst [vmem:[#allocation165_spill] sm:$0xff] %v3875_v1  ;;  %4791 = vst [vmem:[#allocation166_spill] sm:$0xff] %v3878_v55  ;;  %v3881_v7 = vadd.f32 %v711_v35, %v3843_v29  ;;  %v3884_v54 = vadd.f32 %v764_v38, %v3848_v6  ;;  %v490_v35 = vadd.f32 %v3779_v0, %v3789_v30 }
 0x11f   : > { %v3886_v20 = vpop.f32.mrf.mxu1  ;;  %v713_v62 = vpop.f32.mrf.mxu0  ;;  %v543_v38 = vadd.f32 %v3781_v58, %v3787_v44 }
 0x120   : > { %4792 = vst [vmem:[#allocation167_spill] sm:$0xff] %v3881_v7  ;;  %4793 = vst [vmem:[#allocation168_spill] sm:$0xff] %v3884_v54 }
 0x121   : > { %v3888_v46 = vpop.f32.mrf.mxu1  ;;  %v715_v28 = vpop.f32.mrf.mxu0 }
 0x153   : > { %v1599_v63 = vpop.f32.mrf.mxu0  ;;  %v1640_v55 = vpop.f32.mrf.mxu1 }
 0x154   : > { %v1736_v54 = vadd.f32 %v1599_v63, %v488_v19  ;;  %v1738_v7 = vadd.f32 %v1640_v55, %v541_v47 }
 0x155   : > { %v1601_v1 = vpop.f32.mrf.mxu0  ;;  %v1642_v13 = vpop.f32.mrf.mxu1 }
 0x156   : > { %v2811_v12 = vmul.f32 -1.442695, %v1736_v54  ;;  %v1737_v11 = vadd.f32 %v1601_v1, %v490_v35  ;;  %v1739_v10 = vadd.f32 %v1642_v13, %v543_v38 }
 0x157   : > { %v1603_v5 = vpop.f32.mrf.mxu0  ;;  %v1644_v45 = vpop.f32.mrf.mxu1 }
 0x158   : > { %2912 = vpow2.f32 %v2811_v12  ;;  %v2812_v37 = vmul.f32 -1.442695, %v1737_v11  ;;  %v2813_v4 = vmul.f32 -1.442695, %v1739_v10  ;;  %v792_v5 = vld [vmem:[#allocation5] sm:$0xff]  ;;  %v3901_v11 = vld [vmem:[%s4375_s2] sm:$0xff]  ;;  %v1799_v12 = vstv %s3247_s23 }
 0x159   : > { %v1604_v61 = vpop.f32.mrf.mxu0  ;;  %v1645_v36 = vpop.f32.mrf.mxu1  ;;  %vm3905_vm1 = vcmp.gt.s32.totalorder %v3901_v11, %v1799_v12 }
 0x15a   : > { %2914 = vpow2.f32 %v2812_v37  ;;  %v714_v37 = vadd.f32 %v713_v62, %v3826_v18  ;;  %v769_v18 = vadd.f32 %v3888_v46, %v3848_v6  ;;  %v1802_v6 = vstv %s1801_s20 }
 0x15b   : > { %2916 = vtanh.f32 %v1738_v7  ;;  %vm1803_vm2 = vcmp.gt.s32.totalorder %v3901_v11, %v1802_v6  ;;  %v4811_v6 = vld [vmem:[#allocation98_spill] sm:$0xff] }
 0x15c   : > { %2918 = vpow2.f32 %v2813_v4  ;;  %v4797_v4 = vld [vmem:[#allocation84_spill] sm:$0xff] }
 0x165   : > { %v2913_v30 = vpop.eup %2912 }
 0x166   : > { %v1754_v0 = vadd.f32 1.0, %v2913_v30  ;;  %v716_v30 = vadd.f32 %v715_v28, %v3843_v29  ;;  %v767_v29 = vadd.f32 %v3886_v20, %v3834_v21 }
 0x167   : > { %v2915_v44 = vpop.eup %2914 }
 0x168   : > { %2920 = vrcp.f32 %v1754_v0  ;;  %v1760_v58 = vadd.f32 1.0, %v2915_v44  ;;  %v2917_v55 = vpop.eup %2916 }
 0x169   : > { %v2919_v63 = vpop.eup %2918 }
 0x16a   : > { %2922 = vrcp.f32 %v1760_v58  ;;  %v1767_v1 = vadd.f32 1.0, %v2919_v63 }
 0x16c   : > { %2924 = vrcp.f32 %v1767_v1 }
 0x175   : > { %v2921_v13 = vpop.eup %2920 }
 0x176   : > { %v1771_v54 = vmul.f32 %v2921_v13, %v2917_v55 }
 0x177   : > { %v2923_v10 = vpop.eup %2922 }
 0x178   : > { %v1770_v19 = vmul.f32 %v2923_v10, %v792_v5 }
 0x179   : > { %v2925_v35 = vpop.eup %2924 }
 0x17a   : > { %v1772_v7 = vadd.f32 %v1771_v54, %v1770_v19 }
 0x17c   : > { %2926 = vtanh.f32 %v1772_v7  ;;  %v3911_v47 = vsel %vm3905_vm1, %v1772_v7, %v792_v5 }
 0x189   : > { %v2927_v38 = vpop.eup %2926 }
 0x18a   : > { %v1774_v45 = vmul.f32 %v2927_v38, %v2925_v35 }
 0x193   : > { %v1681_v61 = vpop.f32.mrf.mxu0  ;;  %v1722_v36 = vpop.f32.mrf.mxu1 }
 0x194   : > { %v1747_v0 = vadd.f32 %v1681_v61, %v714_v37  ;;  %v1749_v28 = vadd.f32 %v1722_v36, %v767_v29  ;;  %v4799_v29 = vld [vmem:[#allocation86_spill] sm:$0xff] }
 0x195   : > { %v1683_v44 = vpop.f32.mrf.mxu0  ;;  %v1724_v58 = vpop.f32.mrf.mxu1 }
 0x196   : > { %v2814_v55 = vmul.f32 -1.442695, %v1747_v0  ;;  %v1748_v63 = vadd.f32 %v1683_v44, %v716_v30  ;;  %v1750_v62 = vadd.f32 %v1724_v58, %v769_v18  ;;  %v794_v0 = vld [vmem:[#allocation7] sm:$0xff] }
 0x197   : > { %v1685_v13 = vpop.f32.mrf.mxu0  ;;  %v1726_v54 = vpop.f32.mrf.mxu1 }
 0x198   : > { %2928 = vpow2.f32 %v2814_v55  ;;  %v2815_v12 = vmul.f32 -1.442695, %v1748_v63  ;;  %v2816_v1 = vmul.f32 -1.442695, %v1750_v62  ;;  %v4796_v54 = vld [vmem:[#allocation81_spill] sm:$0xff] }
 0x199   : > { %v1686_v5 = vpop.f32.mrf.mxu0  ;;  %v1727_v10 = vpop.f32.mrf.mxu1 }
 0x19a   : > { %2930 = vpow2.f32 %v2815_v12  ;;  %v3926_v12 = vsel %vm3905_vm1, %v1774_v45, %v4796_v54  ;;  %v3040_v5 = vld [vmem:[#allocation6] sm:$0xff]  ;;  %v4819_v54 = vld [vmem:[#allocation106_spill] sm:$0xff] }
 0x19b   : > { %2932 = vtanh.f32 %v1749_v28  ;;  %v3934_v62 = vpack.c.bf16 %v3926_v12, %v3926_v12  ;;  %v4798_v45 = vld [vmem:[#allocation85_spill] sm:$0xff]  ;;  %v4800_v28 = vld [vmem:[#allocation87_spill] sm:$0xff] }
 0x19c   : > { %2934 = vpow2.f32 %v2816_v1  ;;  %v4801_v1 = vld [vmem:[#allocation88_spill] sm:$0xff] }
 0x1a5   : > { %v2929_v19 = vpop.eup %2928 }
 0x1a6   : > { %v1778_v7 = vadd.f32 1.0, %v2929_v19  ;;  %v4802_v19 = vld [vmem:[#allocation89_spill] sm:$0xff] }
 0x1a7   : > { %v2931_v35 = vpop.eup %2930 }
 0x1a8   : > { %2936 = vrcp.f32 %v1778_v7  ;;  %v1784_v38 = vadd.f32 1.0, %v2931_v35  ;;  %v2933_v37 = vpop.eup %2932  ;;  %v4803_v7 = vld [vmem:[#allocation90_spill] sm:$0xff]  ;;  %v4804_v35 = vld [vmem:[#allocation91_spill] sm:$0xff] }
 0x1a9   : > { %v2935_v61 = vpop.eup %2934 }
 0x1aa   : > { %2938 = vrcp.f32 %v1784_v38  ;;  %v1791_v58 = vadd.f32 1.0, %v2935_v61  ;;  %v4805_v38 = vld [vmem:[#allocation92_spill] sm:$0xff]  ;;  %v4807_v61 = vld [vmem:[#allocation94_spill] sm:$0xff] }
 0x1ac   : > { %2940 = vrcp.f32 %v1791_v58  ;;  %v4813_v58 = vld [vmem:[#allocation100_spill] sm:$0xff] }
 0x1b5   : > { %v2937_v30 = vpop.eup %2936 }
 0x1b6   : > { %v1795_v46 = vmul.f32 %v2937_v30, %v2933_v37  ;;  %v4806_v37 = vld [vmem:[#allocation93_spill] sm:$0xff]  ;;  %v4808_v30 = vld [vmem:[#allocation95_spill] sm:$0xff] }
 0x1b7   : > { %v2939_v44 = vpop.eup %2938 }
 0x1b8   : > { %v1794_v21 = vmul.f32 %v2939_v44, %v794_v0  ;;  %v4812_v44 = vld [vmem:[#allocation99_spill] sm:$0xff] }
 0x1b9   : > { %v2941_v55 = vpop.eup %2940 }
 0x1ba   : > { %v1796_v20 = vadd.f32 %v1795_v46, %v1794_v21  ;;  %v4810_v46 = vld [vmem:[#allocation97_spill] sm:$0xff] }
 0x1bb   : > { %v4814_v21 = vld [vmem:[#allocation101_spill] sm:$0xff] }
 0x1bc   : > { %2942 = vtanh.f32 %v1796_v20  ;;  %v3921_v36 = vsel %vm1803_vm2, %v1796_v20, %v794_v0  ;;  %v4809_v0 = vld [vmem:[#allocation96_spill] sm:$0xff]  ;;  %v4815_v20 = vld [vmem:[#allocation102_spill] sm:$0xff] }
 0x1c9   : > { %v2943_v63 = vpop.eup %2942 }
 0x1ca   : > { %v1798_v13 = vmul.f32 %v2943_v63, %v2941_v55  ;;  %v4816_v55 = vld [vmem:[#allocation103_spill] sm:$0xff]  ;;  %v4817_v63 = vld [vmem:[#allocation104_spill] sm:$0xff] }
 0x1cc   : > { %v3928_v10 = vsel %vm1803_vm2, %v1798_v13, %v3040_v5  ;;  %v4818_v13 = vld [vmem:[#allocation105_spill] sm:$0xff]  ;;  %v4820_v5 = vld [vmem:[#allocation107_spill] sm:$0xff] }
 0x1cd   : > { %v1809_v18 = vpack.c.bf16 %v3928_v10, %v3928_v10 }
 0x1cf   : > { %1842 = vmatprep.mubr.bf16.mxu0 %v1809_v18  ;;  %1883 = vmatprep.mubr.bf16.mxu1 %v1809_v18 }
 0x1d0   : > { %1843 = vmatmul.mubr.bf16.vlgmr.msra.gmra.mxu0 %v3934_v62  ;;  %1884 = vmatmul.mubr.bf16.vlgmr.msra.gmra.mxu1 %v3934_v62 }
 0x1d1   : > { %1893 = vmatpush1.bf16.msra.mxu0 %v3518_v27  ;;  %1934 = vmatpush1.bf16.msra.mxu1 %v4797_v4 }
 0x1d2   : > { %1924 = vmatprep.mubr.bf16.mxu0 %v1809_v18  ;;  %1965 = vmatprep.mubr.bf16.mxu1 %v1809_v18  ;;  %v4821_v18 = vld [vmem:[#allocation108_spill] sm:$0xff] }
 0x1d3   : > { %1894 = vmatprep.subr.bf16.mxu0 %v4798_v45  ;;  %1935 = vmatprep.subr.bf16.mxu1 %v4799_v29 }
 0x1d5   : > { %1895 = vmatpush1.bf16.msra.mxu0 %v4800_v28  ;;  %1936 = vmatpush1.bf16.msra.mxu1 %v4801_v1 }
 0x1d6   : > { %1896 = vmatprep.subr.bf16.mxu0 %v4802_v19  ;;  %1937 = vmatprep.subr.bf16.mxu1 %v4803_v7 }
 0x1d9   : > { %1897 = vmatpush1.bf16.msra.mxu0 %v4804_v35  ;;  %1938 = vmatpush1.bf16.msra.mxu1 %v4805_v38 }
 0x1da   : > { %1898 = vmatprep.subr.bf16.mxu0 %v4806_v37  ;;  %1939 = vmatprep.subr.bf16.mxu1 %v4807_v61 }
 0x1dd   : > { %1899 = vmatpush1.bf16.msra.mxu0 %v4808_v30  ;;  %1940 = vmatpush1.bf16.msra.mxu1 %v4809_v0 }
 0x1de   : > { %1900 = vmatprep.subr.bf16.mxu0 %v4810_v46  ;;  %1941 = vmatprep.subr.bf16.mxu1 %v4811_v6  ;;  %v4822_v6 = vld [vmem:[#allocation109_spill] sm:$0xff] }
 0x1e1   : > { %1901 = vmatpush1.bf16.msra.mxu0 %v4812_v44  ;;  %1942 = vmatpush1.bf16.msra.mxu1 %v4813_v58  ;;  %v4823_v44 = vld [vmem:[#allocation110_spill] sm:$0xff]  ;;  %v4824_v58 = vld [vmem:[#allocation111_spill] sm:$0xff] }
 0x1e2   : > { %1902 = vmatprep.subr.bf16.mxu0 %v4814_v21  ;;  %1943 = vmatprep.subr.bf16.mxu1 %v4815_v20  ;;  %v4825_v21 = vld [vmem:[#allocation112_spill] sm:$0xff]  ;;  %v4826_v20 = vld [vmem:[#allocation113_spill] sm:$0xff] }
 0x1e5   : > { %1903 = vmatpush1.bf16.msra.mxu0 %v4816_v55  ;;  %1944 = vmatpush1.bf16.msra.mxu1 %v4817_v63  ;;  %v4827_v55 = vld [vmem:[#allocation114_spill] sm:$0xff]  ;;  %v4828_v63 = vld [vmem:[#allocation115_spill] sm:$0xff] }
 0x1e6   : > { %1904 = vmatprep.subr.bf16.mxu0 %v4818_v13  ;;  %1945 = vmatprep.subr.bf16.mxu1 %v4819_v54  ;;  %v4829_v13 = vld [vmem:[#allocation116_spill] sm:$0xff]  ;;  %v4830_v54 = vld [vmem:[#allocation117_spill] sm:$0xff] }
 0x1e9   : > { %1905 = vmatpush1.bf16.msra.mxu0 %v4820_v5  ;;  %1946 = vmatpush1.bf16.msra.mxu1 %v4821_v18  ;;  %v4831_v5 = vld [vmem:[#allocation118_spill] sm:$0xff]  ;;  %v4832_v18 = vld [vmem:[#allocation119_spill] sm:$0xff] }
 0x1ea   : > { %1906 = vmatprep.subr.bf16.mxu0 %v4822_v6  ;;  %1947 = vmatprep.subr.bf16.mxu1 %v4823_v44  ;;  %v4833_v6 = vld [vmem:[#allocation120_spill] sm:$0xff]  ;;  %v4834_v44 = vld [vmem:[#allocation121_spill] sm:$0xff] }
 0x1ed   : > { %1907 = vmatpush1.bf16.msra.mxu0 %v4824_v58  ;;  %1948 = vmatpush1.bf16.msra.mxu1 %v4825_v21  ;;  %v4835_v58 = vld [vmem:[#allocation122_spill] sm:$0xff]  ;;  %v4836_v21 = vld [vmem:[#allocation123_spill] sm:$0xff] }
 0x1ee   : > { %1908 = vmatprep.subr.bf16.mxu0 %v4826_v20  ;;  %1949 = vmatprep.subr.bf16.mxu1 %v4827_v55  ;;  %v4837_v20 = vld [vmem:[#allocation124_spill] sm:$0xff]  ;;  %v4838_v55 = vld [vmem:[#allocation125_spill] sm:$0xff] }
 0x1f1   : > { %1909 = vmatpush2.bf16.msra.mxu0 %v4828_v63  ;;  %1950 = vmatpush2.bf16.msra.mxu1 %v4829_v13  ;;  %v4839_v63 = vld [vmem:[#allocation126_spill] sm:$0xff]  ;;  %v4840_v13 = vld [vmem:[#allocation127_spill] sm:$0xff] }
 0x1f2   : > { %1910 = vmatprep.subr.bf16.mxu0 %v4830_v54  ;;  %1951 = vmatprep.subr.bf16.mxu1 %v4831_v5  ;;  %v4841_v54 = vld [vmem:[#allocation128_spill] sm:$0xff]  ;;  %v4842_v5 = vld [vmem:[#allocation129_spill] sm:$0xff] }
 0x1f5   : > { %1911 = vmatpush2.bf16.msra.mxu0 %v4832_v18  ;;  %1952 = vmatpush2.bf16.msra.mxu1 %v4833_v6  ;;  %v4843_v18 = vld [vmem:[#allocation130_spill] sm:$0xff] }
 0x1f6   : > { %1912 = vmatprep.subr.bf16.mxu0 %v4834_v44  ;;  %1953 = vmatprep.subr.bf16.mxu1 %v4835_v58 }
 0x1f9   : > { %1913 = vmatpush2.bf16.msra.mxu0 %v4836_v21  ;;  %1954 = vmatpush2.bf16.msra.mxu1 %v4837_v20  ;;  %v4844_v21 = vld [vmem:[#allocation134_spill] sm:$0xff]  ;;  %v4845_v20 = vld [vmem:[#allocation135_spill] sm:$0xff] }
 0x1fa   : > { %1914 = vmatprep.subr.bf16.mxu0 %v4838_v55  ;;  %1955 = vmatprep.subr.bf16.mxu1 %v4839_v63 }
 0x1fd   : > { %1915 = vmatpush2.bf16.msra.mxu0 %v4840_v13  ;;  %1956 = vmatpush2.bf16.msra.mxu1 %v4841_v54 }
 0x1fe   : > { %1916 = vmatprep.subr.bf16.mxu0 %v4842_v5  ;;  %1957 = vmatprep.subr.bf16.mxu1 %v4843_v18 }
 0x201   : > { %1917 = vmatpush2.bf16.msra.mxu0 %v3666_v23  ;;  %1958 = vmatpush2.bf16.msra.mxu1 %v3668_v24 }
 0x202   : > { %1918 = vmatprep.subr.bf16.mxu0 %v3672_v17  ;;  %1959 = vmatprep.subr.bf16.mxu1 %v4844_v21 }
 0x205   : > { %1919 = vmatpush2.bf16.msra.mxu0 %v4845_v20  ;;  %1960 = vmatpush2.bf16.msra.mxu1 %v3680_v53 }
 0x206   : > { %1920 = vmatprep.subr.bf16.mxu0 %v3684_v52  ;;  %1961 = vmatprep.subr.bf16.mxu1 %v3686_v15 }
 0x209   : > { %1921 = vmatpush2.bf16.msra.mxu0 %v3690_v16  ;;  %1962 = vmatpush2.bf16.msra.mxu1 %v3692_v14 }
 0x20a   : > { %1922 = vmatprep.subr.bf16.mxu0 %v3696_v26  ;;  %1963 = vmatprep.subr.bf16.mxu1 %v3698_v8 }
 0x20d   : > { %1923 = vmatpush2.bf16.msra.mxu0 %v3702_v43  ;;  %1964 = vmatpush2.bf16.msra.mxu1 %v3704_v9 }
 0x20e   : > { %2056 = vmatprep.subr.bf16.mxu0 %v3299_v22  ;;  %2097 = vmatprep.subr.bf16.mxu1 %v3303_v25 }
 0x210   : > { %1925 = vmatmul.mubr.bf16.vlgmr.msra.gmra.mxu0 %v3934_v62  ;;  %1966 = vmatmul.mubr.bf16.vlgmr.msra.gmra.mxu1 %v3934_v62  ;;  %v4846_v62 = vld [vmem:[#allocation37_spill] sm:$0xff] }
 0x211   : > { %2057 = vmatpush1.bf16.msra.mxu0 %v3311_v31  ;;  %2098 = vmatpush1.bf16.msra.mxu1 %v3313_v32 }
 0x212   : > { %2058 = vmatprep.subr.bf16.mxu0 %v3315_v33  ;;  %2099 = vmatprep.subr.bf16.mxu1 %v3317_v34 }
 0x215   : > { %2059 = vmatpush1.bf16.msra.mxu0 %v3323_v39  ;;  %2100 = vmatpush1.bf16.msra.mxu1 %v3325_v40 }
 0x216   : > { %2060 = vmatprep.subr.bf16.mxu0 %v3329_v41  ;;  %2101 = vmatprep.subr.bf16.mxu1 %v3331_v42  ;;  %v4892_v42 = vld [vmem:[#allocation145_spill] sm:$0xff]  ;;  %v4893_v41 = vld [vmem:[#allocation146_spill] sm:$0xff] }
 0x219   : > { %2061 = vmatpush1.bf16.msra.mxu0 %v3338_v48  ;;  %2102 = vmatpush1.bf16.msra.mxu1 %v3340_v49  ;;  %v4847_v48 = vld [vmem:[#allocation38_spill] sm:$0xff]  ;;  %v4848_v49 = vld [vmem:[#allocation39_spill] sm:$0xff] }
 0x21a   : > { %2062 = vmatprep.subr.bf16.mxu0 %v3344_v50  ;;  %2103 = vmatprep.subr.bf16.mxu1 %v3346_v51  ;;  %v4849_v50 = vld [vmem:[#allocation40_spill] sm:$0xff]  ;;  %v4850_v51 = vld [vmem:[#allocation41_spill] sm:$0xff] }
 0x21d   : > { %2063 = vmatpush1.bf16.msra.mxu0 %v3352_v56  ;;  %2104 = vmatpush1.bf16.msra.mxu1 %v3354_v57  ;;  %v4851_v56 = vld [vmem:[#allocation42_spill] sm:$0xff]  ;;  %v4852_v57 = vld [vmem:[#allocation43_spill] sm:$0xff] }
 0x21e   : > { %2064 = vmatprep.subr.bf16.mxu0 %v3358_v59  ;;  %2105 = vmatprep.subr.bf16.mxu1 %v3360_v60  ;;  %v4853_v59 = vld [vmem:[#allocation44_spill] sm:$0xff]  ;;  %v4854_v60 = vld [vmem:[#allocation45_spill] sm:$0xff] }
 0x221   : > { %2065 = vmatpush1.bf16.msra.mxu0 %v3368_v2  ;;  %2106 = vmatpush1.bf16.msra.mxu1 %v3370_v3  ;;  %v4855_v2 = vld [vmem:[#allocation46_spill] sm:$0xff]  ;;  %v4856_v3 = vld [vmem:[#allocation47_spill] sm:$0xff] }
 0x222   : > { %2066 = vmatprep.subr.bf16.mxu0 %v4846_v62  ;;  %2107 = vmatprep.subr.bf16.mxu1 %v4847_v48  ;;  %v4857_v62 = vld [vmem:[#allocation48_spill] sm:$0xff]  ;;  %v4858_v48 = vld [vmem:[#allocation49_spill] sm:$0xff] }
 0x225   : > { %2067 = vmatpush1.bf16.msra.mxu0 %v4848_v49  ;;  %2108 = vmatpush1.bf16.msra.mxu1 %v4849_v50  ;;  %v4859_v49 = vld [vmem:[#allocation50_spill] sm:$0xff]  ;;  %v4860_v50 = vld [vmem:[#allocation51_spill] sm:$0xff] }
 0x226   : > { %2068 = vmatprep.subr.bf16.mxu0 %v4850_v51  ;;  %2109 = vmatprep.subr.bf16.mxu1 %v4851_v56  ;;  %v4861_v51 = vld [vmem:[#allocation52_spill] sm:$0xff]  ;;  %v4862_v56 = vld [vmem:[#allocation53_spill] sm:$0xff] }
 0x229   : > { %2069 = vmatpush1.bf16.msra.mxu0 %v4852_v57  ;;  %2110 = vmatpush1.bf16.msra.mxu1 %v4853_v59  ;;  %v4863_v57 = vld [vmem:[#allocation54_spill] sm:$0xff]  ;;  %v4864_v59 = vld [vmem:[#allocation55_spill] sm:$0xff] }
 0x22a   : > { %2070 = vmatprep.subr.bf16.mxu0 %v4854_v60  ;;  %2111 = vmatprep.subr.bf16.mxu1 %v4855_v2  ;;  %v4865_v60 = vld [vmem:[#allocation56_spill] sm:$0xff]  ;;  %v4866_v2 = vld [vmem:[#allocation57_spill] sm:$0xff] }
 0x22d   : > { %2071 = vmatpush1.bf16.msra.mxu0 %v4856_v3  ;;  %2112 = vmatpush1.bf16.msra.mxu1 %v4857_v62  ;;  %v4867_v3 = vld [vmem:[#allocation58_spill] sm:$0xff]  ;;  %v4868_v62 = vld [vmem:[#allocation59_spill] sm:$0xff] }
 0x22e   : > { %2072 = vmatprep.subr.bf16.mxu0 %v4858_v48  ;;  %2113 = vmatprep.subr.bf16.mxu1 %v4859_v49  ;;  %v4869_v48 = vld [vmem:[#allocation60_spill] sm:$0xff]  ;;  %v4870_v49 = vld [vmem:[#allocation61_spill] sm:$0xff] }
 0x231   : > { %2073 = vmatpush2.bf16.msra.mxu0 %v4860_v50  ;;  %2114 = vmatpush2.bf16.msra.mxu1 %v4861_v51  ;;  %v4871_v50 = vld [vmem:[#allocation62_spill] sm:$0xff]  ;;  %v4872_v51 = vld [vmem:[#allocation63_spill] sm:$0xff] }
 0x232   : > { %2074 = vmatprep.subr.bf16.mxu0 %v4862_v56  ;;  %2115 = vmatprep.subr.bf16.mxu1 %v4863_v57  ;;  %v4873_v56 = vld [vmem:[#allocation64_spill] sm:$0xff]  ;;  %v4874_v57 = vld [vmem:[#allocation65_spill] sm:$0xff] }
 0x235   : > { %2075 = vmatpush2.bf16.msra.mxu0 %v4864_v59  ;;  %2116 = vmatpush2.bf16.msra.mxu1 %v4865_v60  ;;  %v4875_v59 = vld [vmem:[#allocation66_spill] sm:$0xff]  ;;  %v4876_v60 = vld [vmem:[#allocation67_spill] sm:$0xff] }
 0x236   : > { %2076 = vmatprep.subr.bf16.mxu0 %v4866_v2  ;;  %2117 = vmatprep.subr.bf16.mxu1 %v4867_v3  ;;  %v4877_v2 = vld [vmem:[#allocation68_spill] sm:$0xff]  ;;  %v4878_v3 = vld [vmem:[#allocation69_spill] sm:$0xff] }
 0x239   : > { %2077 = vmatpush2.bf16.msra.mxu0 %v4868_v62  ;;  %2118 = vmatpush2.bf16.msra.mxu1 %v4869_v48  ;;  %v4879_v62 = vld [vmem:[#allocation70_spill] sm:$0xff]  ;;  %v4880_v48 = vld [vmem:[#allocation71_spill] sm:$0xff] }
 0x23a   : > { %2078 = vmatprep.subr.bf16.mxu0 %v4870_v49  ;;  %2119 = vmatprep.subr.bf16.mxu1 %v4871_v50  ;;  %v4881_v49 = vld [vmem:[#allocation72_spill] sm:$0xff]  ;;  %v4882_v50 = vld [vmem:[#allocation73_spill] sm:$0xff] }
 0x23d   : > { %2079 = vmatpush2.bf16.msra.mxu0 %v4872_v51  ;;  %2120 = vmatpush2.bf16.msra.mxu1 %v4873_v56  ;;  %v4883_v51 = vld [vmem:[#allocation74_spill] sm:$0xff]  ;;  %v4884_v56 = vld [vmem:[#allocation75_spill] sm:$0xff] }
 0x23e   : > { %2080 = vmatprep.subr.bf16.mxu0 %v4874_v57  ;;  %2121 = vmatprep.subr.bf16.mxu1 %v4875_v59  ;;  %v4885_v57 = vld [vmem:[#allocation76_spill] sm:$0xff]  ;;  %v4886_v59 = vld [vmem:[#allocation77_spill] sm:$0xff] }
 0x241   : > { %2081 = vmatpush2.bf16.msra.mxu0 %v4876_v60  ;;  %2122 = vmatpush2.bf16.msra.mxu1 %v4877_v2  ;;  %v4887_v60 = vld [vmem:[#allocation78_spill] sm:$0xff]  ;;  %v4888_v2 = vld [vmem:[#allocation79_spill] sm:$0xff] }
 0x242   : > { %2082 = vmatprep.subr.bf16.mxu0 %v4878_v3  ;;  %2123 = vmatprep.subr.bf16.mxu1 %v4879_v62  ;;  %v4889_v3 = vld [vmem:[#allocation80_spill] sm:$0xff]  ;;  %v4890_v62 = vld [vmem:[#allocation82_spill] sm:$0xff] }
 0x245   : > { %2083 = vmatpush2.bf16.msra.mxu0 %v4880_v48  ;;  %2124 = vmatpush2.bf16.msra.mxu1 %v4881_v49  ;;  %v4891_v48 = vld [vmem:[#allocation83_spill] sm:$0xff] }
 0x246   : > { %2084 = vmatprep.subr.bf16.mxu0 %v4882_v50  ;;  %2125 = vmatprep.subr.bf16.mxu1 %v4883_v51 }
 0x249   : > { %2085 = vmatpush2.bf16.msra.mxu0 %v4884_v56  ;;  %2126 = vmatpush2.bf16.msra.mxu1 %v4885_v57 }
 0x24a   : > { %2086 = vmatprep.subr.bf16.mxu0 %v4886_v59  ;;  %2127 = vmatprep.subr.bf16.mxu1 %v4887_v60  ;;  %v4894_v59 = vld [vmem:[#allocation147_spill] sm:$0xff]  ;;  %v4895_v60 = vld [vmem:[#allocation148_spill] sm:$0xff] }
 0x24d   : > { %2087 = vmatpush2.bf16.msra.mxu0 %v4888_v2  ;;  %2128 = vmatpush2.bf16.msra.mxu1 %v4889_v3 }
 0x24e   : > { %2138 = vmatprep.subr.bf16.mxu0 %v4890_v62  ;;  %2179 = vmatprep.subr.bf16.mxu1 %v4891_v48 }
 0x290   : > { %v1844_v49 = vpop.f32.mrf.mxu0  ;;  %v1885_v50 = vpop.f32.mrf.mxu1 }
 0x291   : > { %v1981_v51 = vadd.f32 %v1844_v49, %v4892_v42  ;;  %v1983_v56 = vadd.f32 %v1885_v50, %v4893_v41 }
 0x292   : > { %v1846_v40 = vpop.f32.mrf.mxu0  ;;  %v1887_v57 = vpop.f32.mrf.mxu1 }
 0x293   : > { %v2817_v39 = vmul.f32 -1.442695, %v1981_v51  ;;  %v1982_v34 = vadd.f32 %v1846_v40, %v4894_v59  ;;  %v1984_v33 = vadd.f32 %v1887_v57, %v4895_v60  ;;  %v2045_v57 = vstv %s2044_s21 }
 0x294   : > { %v1848_v2 = vpop.f32.mrf.mxu0  ;;  %v1889_v32 = vpop.f32.mrf.mxu1  ;;  %vm2046_vm3 = vcmp.gt.s32.totalorder %v3901_v11, %v2045_v57  ;;  %v4904_v57 = vld [vmem:[#allocation101_spill] sm:$0xff] }
 0x295   : > { %2944 = vpow2.f32 %v2817_v39  ;;  %v2818_v62 = vmul.f32 -1.442695, %v1982_v34  ;;  %v2819_v31 = vmul.f32 -1.442695, %v1984_v33 }
 0x296   : > { %v1849_v3 = vpop.f32.mrf.mxu0  ;;  %v1890_v48 = vpop.f32.mrf.mxu1 }
 0x297   : > { %2946 = vpow2.f32 %v2818_v62  ;;  %v4897_v3 = vld [vmem:[#allocation165_spill] sm:$0xff] }
 0x298   : > { %2948 = vtanh.f32 %v1983_v56 }
 0x299   : > { %2950 = vpow2.f32 %v2819_v31 }
 0x2a2   : > { %v2945_v25 = vpop.eup %2944 }
 0x2a3   : > { %v1999_v42 = vadd.f32 1.0, %v2945_v25 }
 0x2a4   : > { %v2947_v41 = vpop.eup %2946 }
 0x2a5   : > { %2952 = vrcp.f32 %v1999_v42  ;;  %v2005_v49 = vadd.f32 1.0, %v2947_v41  ;;  %v2949_v40 = vpop.eup %2948 }
 0x2a6   : > { %v2951_v50 = vpop.eup %2950 }
 0x2a7   : > { %2954 = vrcp.f32 %v2005_v49  ;;  %v2012_v34 = vadd.f32 1.0, %v2951_v50 }
 0x2a9   : > { %2956 = vrcp.f32 %v2012_v34 }
 0x2b2   : > { %v2953_v51 = vpop.eup %2952 }
 0x2b3   : > { %v2016_v32 = vmul.f32 %v2953_v51, %v2949_v40  ;;  %v4898_v40 = vld [vmem:[#allocation167_spill] sm:$0xff] }
 0x2b4   : > { %v2955_v39 = vpop.eup %2954 }
 0x2b5   : > { %v2015_v48 = vmul.f32 %v2955_v39, %v3911_v47 }
 0x2b6   : > { %v2957_v31 = vpop.eup %2956 }
 0x2b7   : > { %v2017_v33 = vadd.f32 %v2016_v32, %v2015_v48  ;;  %v4899_v48 = vld [vmem:[#allocation168_spill] sm:$0xff] }
 0x2b9   : > { %2958 = vtanh.f32 %v2017_v33  ;;  %v4078_v25 = vsel %vm2046_vm3, %v2017_v33, %v3911_v47 }
 0x2ba   : > { %4896 = vst [vmem:[#allocation81_spill] sm:$0xff] %v4078_v25 }
 0x2c6   : > { %v2959_v56 = vpop.eup %2958 }
 0x2c7   : > { %v2019_v59 = vmul.f32 %v2959_v56, %v2957_v31  ;;  %v4900_v31 = vld [vmem:[#allocation166_spill] sm:$0xff] }
 0x2d0   : > { %v1926_v60 = vpop.f32.mrf.mxu0  ;;  %v1967_v2 = vpop.f32.mrf.mxu1 }
 0x2d1   : > { %v1992_v62 = vadd.f32 %v1926_v60, %v4897_v3  ;;  %v1994_v56 = vadd.f32 %v1967_v2, %v4900_v31 }
 0x2d2   : > { %v1928_v42 = vpop.f32.mrf.mxu0  ;;  %v1969_v41 = vpop.f32.mrf.mxu1 }
 0x2d3   : > { %v2820_v49 = vmul.f32 -1.442695, %v1992_v62  ;;  %v1993_v50 = vadd.f32 %v1928_v42, %v4898_v40  ;;  %v1995_v33 = vadd.f32 %v1969_v41, %v4899_v48  ;;  %v4093_v48 = vsel %vm2046_vm3, %v2019_v59, %v3926_v12  ;;  %v4902_v12 = vld [vmem:[#allocation99_spill] sm:$0xff]  ;;  %v4905_v59 = vld [vmem:[#allocation102_spill] sm:$0xff] }
 0x2d4   : > { %v1930_v51 = vpop.f32.mrf.mxu0  ;;  %v1971_v32 = vpop.f32.mrf.mxu1 }
 0x2d5   : > { %2960 = vpow2.f32 %v2820_v49  ;;  %v2821_v39 = vmul.f32 -1.442695, %v1993_v50  ;;  %v2822_v25 = vmul.f32 -1.442695, %v1995_v33  ;;  %v2048_v51 = vstv %s2047_s22 }
 0x2d6   : > { %v1931_v34 = vpop.f32.mrf.mxu0  ;;  %v1972_v47 = vpop.f32.mrf.mxu1  ;;  %vm2049_vm4 = vcmp.gt.s32.totalorder %v3901_v11, %v2048_v51  ;;  %v4913_v51 = vld [vmem:[#allocation110_spill] sm:$0xff] }
 0x2d7   : > { %2962 = vpow2.f32 %v2821_v39 }
 0x2d8   : > { %2964 = vtanh.f32 %v1994_v56  ;;  %v4102_v56 = vpack.c.bf16 %v4093_v48, %v4093_v48 }
 0x2d9   : > { %2966 = vpow2.f32 %v2822_v25 }
 0x2e2   : > { %v2961_v22 = vpop.eup %2960 }
 0x2e3   : > { %v2023_v60 = vadd.f32 1.0, %v2961_v22 }
 0x2e4   : > { %v2963_v3 = vpop.eup %2962 }
 0x2e5   : > { %2968 = vrcp.f32 %v2023_v60  ;;  %v2029_v62 = vadd.f32 1.0, %v2963_v3  ;;  %v2965_v42 = vpop.eup %2964  ;;  %v4906_v60 = vld [vmem:[#allocation103_spill] sm:$0xff]  ;;  %v4907_v3 = vld [vmem:[#allocation104_spill] sm:$0xff] }
 0x2e6   : > { %v2967_v49 = vpop.eup %2966 }
 0x2e7   : > { %2970 = vrcp.f32 %v2029_v62  ;;  %v2036_v39 = vadd.f32 1.0, %v2967_v49  ;;  %v4908_v62 = vld [vmem:[#allocation105_spill] sm:$0xff]  ;;  %v4910_v49 = vld [vmem:[#allocation107_spill] sm:$0xff] }
 0x2e9   : > { %2972 = vrcp.f32 %v2036_v39  ;;  %v4915_v39 = vld [vmem:[#allocation112_spill] sm:$0xff] }
 0x2f2   : > { %v2969_v40 = vpop.eup %2968 }
 0x2f3   : > { %v2040_v50 = vmul.f32 %v2969_v40, %v2965_v42  ;;  %v4909_v42 = vld [vmem:[#allocation106_spill] sm:$0xff]  ;;  %v4911_v40 = vld [vmem:[#allocation108_spill] sm:$0xff] }
 0x2f4   : > { %v2971_v32 = vpop.eup %2970 }
 0x2f5   : > { %v2039_v41 = vmul.f32 %v2971_v32, %v3921_v36  ;;  %v4914_v32 = vld [vmem:[#allocation111_spill] sm:$0xff] }
 0x2f6   : > { %v2973_v25 = vpop.eup %2972 }
 0x2f7   : > { %v2041_v2 = vadd.f32 %v2040_v50, %v2039_v41  ;;  %v4912_v50 = vld [vmem:[#allocation109_spill] sm:$0xff] }
 0x2f8   : > { %v4916_v41 = vld [vmem:[#allocation113_spill] sm:$0xff] }
 0x2f9   : > { %2974 = vtanh.f32 %v2041_v2  ;;  %v4088_v22 = vsel %vm2049_vm4, %v2041_v2, %v3921_v36  ;;  %v4901_v36 = vld [vmem:[#allocation98_spill] sm:$0xff] }
 0x2fa   : > { %v4917_v2 = vld [vmem:[#allocation114_spill] sm:$0xff] }
 0x306   : > { %v2975_v34 = vpop.eup %2974 }
 0x307   : > { %v2043_v47 = vmul.f32 %v2975_v34, %v2973_v25  ;;  %v4918_v25 = vld [vmem:[#allocation115_spill] sm:$0xff]  ;;  %v4919_v34 = vld [vmem:[#allocation116_spill] sm:$0xff] }
 0x309   : > { %v4096_v33 = vsel %vm2049_vm4, %v2043_v47, %v3928_v10  ;;  %v4903_v10 = vld [vmem:[#allocation100_spill] sm:$0xff]  ;;  %v4920_v47 = vld [vmem:[#allocation117_spill] sm:$0xff] }
 0x30a   : > { %v2055_v31 = vpack.c.bf16 %v4096_v33, %v4096_v33 }
 0x30c   : > { %2088 = vmatprep.mubr.bf16.mxu0 %v2055_v31  ;;  %2129 = vmatprep.mubr.bf16.mxu1 %v2055_v31 }
 0x30d   : > { %2089 = vmatmul.mubr.bf16.vlgmr.msra.gmra.mxu0 %v4102_v56  ;;  %2130 = vmatmul.mubr.bf16.vlgmr.msra.gmra.mxu1 %v4102_v56 }
 0x30e   : > { %2139 = vmatpush1.bf16.msra.mxu0 %v3518_v27  ;;  %2180 = vmatpush1.bf16.msra.mxu1 %v4797_v4 }
 0x30f   : > { %2170 = vmatprep.mubr.bf16.mxu0 %v2055_v31  ;;  %2211 = vmatprep.mubr.bf16.mxu1 %v2055_v31  ;;  %v4921_v31 = vld [vmem:[#allocation118_spill] sm:$0xff] }
 0x310   : > { %2140 = vmatprep.subr.bf16.mxu0 %v4798_v45  ;;  %2181 = vmatprep.subr.bf16.mxu1 %v4799_v29 }
 0x312   : > { %2141 = vmatpush1.bf16.msra.mxu0 %v4800_v28  ;;  %2182 = vmatpush1.bf16.msra.mxu1 %v4801_v1 }
 0x313   : > { %2142 = vmatprep.subr.bf16.mxu0 %v4802_v19  ;;  %2183 = vmatprep.subr.bf16.mxu1 %v4803_v7 }
 0x316   : > { %2143 = vmatpush1.bf16.msra.mxu0 %v4804_v35  ;;  %2184 = vmatpush1.bf16.msra.mxu1 %v4805_v38 }
 0x317   : > { %2144 = vmatprep.subr.bf16.mxu0 %v4806_v37  ;;  %2185 = vmatprep.subr.bf16.mxu1 %v4807_v61 }
 0x31a   : > { %2145 = vmatpush1.bf16.msra.mxu0 %v4808_v30  ;;  %2186 = vmatpush1.bf16.msra.mxu1 %v4809_v0 }
 0x31b   : > { %2146 = vmatprep.subr.bf16.mxu0 %v4810_v46  ;;  %2187 = vmatprep.subr.bf16.mxu1 %v4901_v36 }
 0x31e   : > { %2147 = vmatpush1.bf16.msra.mxu0 %v4902_v12  ;;  %2188 = vmatpush1.bf16.msra.mxu1 %v4903_v10 }
 0x31f   : > { %2148 = vmatprep.subr.bf16.mxu0 %v4904_v57  ;;  %2189 = vmatprep.subr.bf16.mxu1 %v4905_v59 }
 0x322   : > { %2149 = vmatpush1.bf16.msra.mxu0 %v4906_v60  ;;  %2190 = vmatpush1.bf16.msra.mxu1 %v4907_v3 }
 0x323   : > { %2150 = vmatprep.subr.bf16.mxu0 %v4908_v62  ;;  %2191 = vmatprep.subr.bf16.mxu1 %v4909_v42 }
 0x326   : > { %2151 = vmatpush1.bf16.msra.mxu0 %v4910_v49  ;;  %2192 = vmatpush1.bf16.msra.mxu1 %v4911_v40  ;;  %v4922_v40 = vld [vmem:[#allocation119_spill] sm:$0xff] }
 0x327   : > { %2152 = vmatprep.subr.bf16.mxu0 %v4912_v50  ;;  %2193 = vmatprep.subr.bf16.mxu1 %v4913_v51 }
 0x32a   : > { %2153 = vmatpush1.bf16.msra.mxu0 %v4914_v32  ;;  %2194 = vmatpush1.bf16.msra.mxu1 %v4915_v39  ;;  %v4923_v39 = vld [vmem:[#allocation123_spill] sm:$0xff] }
 0x32b   : > { %2154 = vmatprep.subr.bf16.mxu0 %v4916_v41  ;;  %2195 = vmatprep.subr.bf16.mxu1 %v4917_v2  ;;  %v4924_v41 = vld [vmem:[#allocation124_spill] sm:$0xff] }
 0x32e   : > { %2155 = vmatpush2.bf16.msra.mxu0 %v4918_v25  ;;  %2196 = vmatpush2.bf16.msra.mxu1 %v4919_v34 }
 0x32f   : > { %2156 = vmatprep.subr.bf16.mxu0 %v4920_v47  ;;  %2197 = vmatprep.subr.bf16.mxu1 %v4921_v31 }
 0x332   : > { %2157 = vmatpush2.bf16.msra.mxu0 %v4922_v40  ;;  %2198 = vmatpush2.bf16.msra.mxu1 %v4833_v6 }
 0x333   : > { %2158 = vmatprep.subr.bf16.mxu0 %v4834_v44  ;;  %2199 = vmatprep.subr.bf16.mxu1 %v4835_v58 }
 0x336   : > { %2159 = vmatpush2.bf16.msra.mxu0 %v4923_v39  ;;  %2200 = vmatpush2.bf16.msra.mxu1 %v4924_v41 }
 0x337   : > { %2160 = vmatprep.subr.bf16.mxu0 %v4838_v55  ;;  %2201 = vmatprep.subr.bf16.mxu1 %v4839_v63 }
 0x33a   : > { %2161 = vmatpush2.bf16.msra.mxu0 %v4840_v13  ;;  %2202 = vmatpush2.bf16.msra.mxu1 %v4841_v54 }
 0x33b   : > { %2162 = vmatprep.subr.bf16.mxu0 %v4842_v5  ;;  %2203 = vmatprep.subr.bf16.mxu1 %v4843_v18 }
 0x33e   : > { %2163 = vmatpush2.bf16.msra.mxu0 %v3666_v23  ;;  %2204 = vmatpush2.bf16.msra.mxu1 %v3668_v24 }
 0x33f   : > { %2164 = vmatprep.subr.bf16.mxu0 %v3672_v17  ;;  %2205 = vmatprep.subr.bf16.mxu1 %v4844_v21  ;;  %v4925_v21 = vld [vmem:[#allocation17_spill] sm:$0xff]  ;;  %v4992_v17 = vld [vmem:[#allocation150_spill] sm:$0xff] }
 0x342   : > { %2165 = vmatpush2.bf16.msra.mxu0 %v4845_v20  ;;  %2206 = vmatpush2.bf16.msra.mxu1 %v3680_v53  ;;  %v4926_v20 = vld [vmem:[#allocation18_spill] sm:$0xff]  ;;  %v4991_v53 = vld [vmem:[#allocation149_spill] sm:$0xff] }
 0x343   : > { %2166 = vmatprep.subr.bf16.mxu0 %v3684_v52  ;;  %2207 = vmatprep.subr.bf16.mxu1 %v3686_v15  ;;  %v4927_v15 = vld [vmem:[#allocation19_spill] sm:$0xff]  ;;  %v4936_v52 = vld [vmem:[#allocation28_spill] sm:$0xff] }
 0x346   : > { %2167 = vmatpush2.bf16.msra.mxu0 %v3690_v16  ;;  %2208 = vmatpush2.bf16.msra.mxu1 %v3692_v14  ;;  %v4928_v16 = vld [vmem:[#allocation20_spill] sm:$0xff]  ;;  %v4929_v14 = vld [vmem:[#allocation21_spill] sm:$0xff] }
 0x347   : > { %2168 = vmatprep.subr.bf16.mxu0 %v3696_v26  ;;  %2209 = vmatprep.subr.bf16.mxu1 %v3698_v8  ;;  %v4930_v26 = vld [vmem:[#allocation22_spill] sm:$0xff]  ;;  %v4931_v8 = vld [vmem:[#allocation23_spill] sm:$0xff] }
 0x34a   : > { %2169 = vmatpush2.bf16.msra.mxu0 %v3702_v43  ;;  %2210 = vmatpush2.bf16.msra.mxu1 %v3704_v9  ;;  %v4932_v43 = vld [vmem:[#allocation24_spill] sm:$0xff]  ;;  %v4933_v9 = vld [vmem:[#allocation25_spill] sm:$0xff] }
 0x34b   : > { %2300 = vmatprep.subr.bf16.mxu0 %v4925_v21  ;;  %2341 = vmatprep.subr.bf16.mxu1 %v4926_v20  ;;  %v4934_v21 = vld [vmem:[#allocation26_spill] sm:$0xff]  ;;  %v4935_v20 = vld [vmem:[#allocation27_spill] sm:$0xff] }
 0x34d   : > { %2171 = vmatmul.mubr.bf16.vlgmr.msra.gmra.mxu0 %v4102_v56  ;;  %2212 = vmatmul.mubr.bf16.vlgmr.msra.gmra.mxu1 %v4102_v56  ;;  %v4937_v56 = vld [vmem:[#allocation29_spill] sm:$0xff] }
 0x34e   : > { %2301 = vmatpush1.bf16.msra.mxu0 %v4927_v15  ;;  %2342 = vmatpush1.bf16.msra.mxu1 %v4928_v16  ;;  %v4938_v15 = vld [vmem:[#allocation30_spill] sm:$0xff]  ;;  %v4939_v16 = vld [vmem:[#allocation31_spill] sm:$0xff] }
 0x34f   : > { %2302 = vmatprep.subr.bf16.mxu0 %v4929_v14  ;;  %2343 = vmatprep.subr.bf16.mxu1 %v4930_v26  ;;  %v4940_v14 = vld [vmem:[#allocation32_spill] sm:$0xff]  ;;  %v4941_v26 = vld [vmem:[#allocation33_spill] sm:$0xff] }
 0x352   : > { %2303 = vmatpush1.bf16.msra.mxu0 %v4931_v8  ;;  %2344 = vmatpush1.bf16.msra.mxu1 %v4932_v43  ;;  %v4942_v8 = vld [vmem:[#allocation34_spill] sm:$0xff]  ;;  %v4943_v43 = vld [vmem:[#allocation35_spill] sm:$0xff] }
 0x353   : > { %2304 = vmatprep.subr.bf16.mxu0 %v4933_v9  ;;  %2345 = vmatprep.subr.bf16.mxu1 %v4934_v21  ;;  %v4944_v9 = vld [vmem:[#allocation36_spill] sm:$0xff]  ;;  %v4945_v21 = vld [vmem:[#allocation37_spill] sm:$0xff] }
 0x356   : > { %2305 = vmatpush1.bf16.msra.mxu0 %v4935_v20  ;;  %2346 = vmatpush1.bf16.msra.mxu1 %v4936_v52  ;;  %v4946_v20 = vld [vmem:[#allocation38_spill] sm:$0xff]  ;;  %v4947_v52 = vld [vmem:[#allocation39_spill] sm:$0xff] }
 0x357   : > { %2306 = vmatprep.subr.bf16.mxu0 %v4937_v56  ;;  %2347 = vmatprep.subr.bf16.mxu1 %v4938_v15  ;;  %v4948_v56 = vld [vmem:[#allocation40_spill] sm:$0xff]  ;;  %v4949_v15 = vld [vmem:[#allocation41_spill] sm:$0xff] }
 0x35a   : > { %2307 = vmatpush1.bf16.msra.mxu0 %v4939_v16  ;;  %2348 = vmatpush1.bf16.msra.mxu1 %v4940_v14  ;;  %v4950_v16 = vld [vmem:[#allocation42_spill] sm:$0xff]  ;;  %v4951_v14 = vld [vmem:[#allocation43_spill] sm:$0xff] }
 0x35b   : > { %2308 = vmatprep.subr.bf16.mxu0 %v4941_v26  ;;  %2349 = vmatprep.subr.bf16.mxu1 %v4942_v8  ;;  %v4952_v26 = vld [vmem:[#allocation44_spill] sm:$0xff]  ;;  %v4953_v8 = vld [vmem:[#allocation45_spill] sm:$0xff] }
 0x35e   : > { %2309 = vmatpush1.bf16.msra.mxu0 %v4943_v43  ;;  %2350 = vmatpush1.bf16.msra.mxu1 %v4944_v9  ;;  %v4954_v43 = vld [vmem:[#allocation46_spill] sm:$0xff]  ;;  %v4955_v9 = vld [vmem:[#allocation47_spill] sm:$0xff] }
 0x35f   : > { %2310 = vmatprep.subr.bf16.mxu0 %v4945_v21  ;;  %2351 = vmatprep.subr.bf16.mxu1 %v4946_v20  ;;  %v4956_v21 = vld [vmem:[#allocation48_spill] sm:$0xff]  ;;  %v4957_v20 = vld [vmem:[#allocation49_spill] sm:$0xff] }
 0x362   : > { %2311 = vmatpush1.bf16.msra.mxu0 %v4947_v52  ;;  %2352 = vmatpush1.bf16.msra.mxu1 %v4948_v56  ;;  %v4958_v52 = vld [vmem:[#allocation50_spill] sm:$0xff]  ;;  %v4959_v56 = vld [vmem:[#allocation51_spill] sm:$0xff] }
 0x363   : > { %2312 = vmatprep.subr.bf16.mxu0 %v4949_v15  ;;  %2353 = vmatprep.subr.bf16.mxu1 %v4950_v16  ;;  %v4960_v15 = vld [vmem:[#allocation52_spill] sm:$0xff]  ;;  %v4961_v16 = vld [vmem:[#allocation53_spill] sm:$0xff] }
 0x366   : > { %2313 = vmatpush1.bf16.msra.mxu0 %v4951_v14  ;;  %2354 = vmatpush1.bf16.msra.mxu1 %v4952_v26  ;;  %v4962_v14 = vld [vmem:[#allocation54_spill] sm:$0xff]  ;;  %v4963_v26 = vld [vmem:[#allocation55_spill] sm:$0xff] }
 0x367   : > { %2314 = vmatprep.subr.bf16.mxu0 %v4953_v8  ;;  %2355 = vmatprep.subr.bf16.mxu1 %v4954_v43  ;;  %v4964_v8 = vld [vmem:[#allocation56_spill] sm:$0xff]  ;;  %v4965_v43 = vld [vmem:[#allocation57_spill] sm:$0xff] }
 0x36a   : > { %2315 = vmatpush1.bf16.msra.mxu0 %v4955_v9  ;;  %2356 = vmatpush1.bf16.msra.mxu1 %v4956_v21  ;;  %v4966_v9 = vld [vmem:[#allocation58_spill] sm:$0xff]  ;;  %v4967_v21 = vld [vmem:[#allocation59_spill] sm:$0xff] }
 0x36b   : > { %2316 = vmatprep.subr.bf16.mxu0 %v4957_v20  ;;  %2357 = vmatprep.subr.bf16.mxu1 %v4958_v52  ;;  %v4968_v20 = vld [vmem:[#allocation60_spill] sm:$0xff]  ;;  %v4969_v52 = vld [vmem:[#allocation61_spill] sm:$0xff] }
 0x36e   : > { %2317 = vmatpush2.bf16.msra.mxu0 %v4959_v56  ;;  %2358 = vmatpush2.bf16.msra.mxu1 %v4960_v15  ;;  %v4970_v56 = vld [vmem:[#allocation62_spill] sm:$0xff]  ;;  %v4971_v15 = vld [vmem:[#allocation63_spill] sm:$0xff] }
 0x36f   : > { %2318 = vmatprep.subr.bf16.mxu0 %v4961_v16  ;;  %2359 = vmatprep.subr.bf16.mxu1 %v4962_v14  ;;  %v4972_v16 = vld [vmem:[#allocation64_spill] sm:$0xff]  ;;  %v4973_v14 = vld [vmem:[#allocation65_spill] sm:$0xff] }
 0x372   : > { %2319 = vmatpush2.bf16.msra.mxu0 %v4963_v26  ;;  %2360 = vmatpush2.bf16.msra.mxu1 %v4964_v8  ;;  %v4974_v26 = vld [vmem:[#allocation66_spill] sm:$0xff]  ;;  %v4975_v8 = vld [vmem:[#allocation67_spill] sm:$0xff] }
 0x373   : > { %2320 = vmatprep.subr.bf16.mxu0 %v4965_v43  ;;  %2361 = vmatprep.subr.bf16.mxu1 %v4966_v9  ;;  %v4976_v43 = vld [vmem:[#allocation68_spill] sm:$0xff]  ;;  %v4977_v9 = vld [vmem:[#allocation69_spill] sm:$0xff] }
 0x376   : > { %2321 = vmatpush2.bf16.msra.mxu0 %v4967_v21  ;;  %2362 = vmatpush2.bf16.msra.mxu1 %v4968_v20  ;;  %v4978_v21 = vld [vmem:[#allocation70_spill] sm:$0xff]  ;;  %v4979_v20 = vld [vmem:[#allocation71_spill] sm:$0xff] }
 0x377   : > { %2322 = vmatprep.subr.bf16.mxu0 %v4969_v52  ;;  %2363 = vmatprep.subr.bf16.mxu1 %v4970_v56  ;;  %v4980_v52 = vld [vmem:[#allocation72_spill] sm:$0xff]  ;;  %v4981_v56 = vld [vmem:[#allocation73_spill] sm:$0xff] }
 0x37a   : > { %2323 = vmatpush2.bf16.msra.mxu0 %v4971_v15  ;;  %2364 = vmatpush2.bf16.msra.mxu1 %v4972_v16  ;;  %v4982_v15 = vld [vmem:[#allocation74_spill] sm:$0xff]  ;;  %v4983_v16 = vld [vmem:[#allocation75_spill] sm:$0xff] }
 0x37b   : > { %2324 = vmatprep.subr.bf16.mxu0 %v4973_v14  ;;  %2365 = vmatprep.subr.bf16.mxu1 %v4974_v26  ;;  %v4984_v14 = vld [vmem:[#allocation76_spill] sm:$0xff]  ;;  %v4985_v26 = vld [vmem:[#allocation77_spill] sm:$0xff] }
 0x37e   : > { %2325 = vmatpush2.bf16.msra.mxu0 %v4975_v8  ;;  %2366 = vmatpush2.bf16.msra.mxu1 %v4976_v43  ;;  %v4986_v8 = vld [vmem:[#allocation78_spill] sm:$0xff]  ;;  %v4987_v43 = vld [vmem:[#allocation79_spill] sm:$0xff] }
 0x37f   : > { %2326 = vmatprep.subr.bf16.mxu0 %v4977_v9  ;;  %2367 = vmatprep.subr.bf16.mxu1 %v4978_v21  ;;  %v4988_v9 = vld [vmem:[#allocation80_spill] sm:$0xff]  ;;  %v4989_v21 = vld [vmem:[#allocation82_spill] sm:$0xff] }
 0x382   : > { %2327 = vmatpush2.bf16.msra.mxu0 %v4979_v20  ;;  %2368 = vmatpush2.bf16.msra.mxu1 %v4980_v52  ;;  %v4990_v20 = vld [vmem:[#allocation83_spill] sm:$0xff] }
 0x383   : > { %2328 = vmatprep.subr.bf16.mxu0 %v4981_v56  ;;  %2369 = vmatprep.subr.bf16.mxu1 %v4982_v15 }
 0x386   : > { %2329 = vmatpush2.bf16.msra.mxu0 %v4983_v16  ;;  %2370 = vmatpush2.bf16.msra.mxu1 %v4984_v14 }
 0x387   : > { %2330 = vmatprep.subr.bf16.mxu0 %v4985_v26  ;;  %2371 = vmatprep.subr.bf16.mxu1 %v4986_v8  ;;  %v4993_v26 = vld [vmem:[#allocation151_spill] sm:$0xff]  ;;  %v4994_v8 = vld [vmem:[#allocation152_spill] sm:$0xff] }
 0x38a   : > { %2331 = vmatpush2.bf16.msra.mxu0 %v4987_v43  ;;  %2372 = vmatpush2.bf16.msra.mxu1 %v4988_v9 }
 0x38b   : > { %2382 = vmatprep.subr.bf16.mxu0 %v4989_v21  ;;  %2423 = vmatprep.subr.bf16.mxu1 %v4990_v20 }
 0x3cd   : > { %v2090_v52 = vpop.f32.mrf.mxu0  ;;  %v2131_v56 = vpop.f32.mrf.mxu1 }
 0x3ce   : > { %v2226_v15 = vadd.f32 %v2090_v52, %v4991_v53  ;;  %v2228_v16 = vadd.f32 %v2131_v56, %v4992_v17 }
 0x3cf   : > { %v2092_v24 = vpop.f32.mrf.mxu0  ;;  %v2133_v14 = vpop.f32.mrf.mxu1 }
 0x3d0   : > { %v2823_v23 = vmul.f32 -1.442695, %v2226_v15  ;;  %v2227_v18 = vadd.f32 %v2092_v24, %v4993_v26  ;;  %v2229_v5 = vadd.f32 %v2133_v14, %v4994_v8  ;;  %v2289_v14 = vstv %s2288_s24  ;;  %v4995_v26 = vld [vmem:[#allocation81_spill] sm:$0xff] }
 0x3d1   : > { %v2094_v43 = vpop.f32.mrf.mxu0  ;;  %v2135_v54 = vpop.f32.mrf.mxu1  ;;  %vm2290_vm5 = vcmp.gt.s32.totalorder %v3901_v11, %v2289_v14 }
 0x3d2   : > { %2976 = vpow2.f32 %v2823_v23  ;;  %v2824_v9 = vmul.f32 -1.442695, %v2227_v18  ;;  %v2825_v13 = vmul.f32 -1.442695, %v2229_v5 }
 0x3d3   : > { %v2095_v21 = vpop.f32.mrf.mxu0  ;;  %v2136_v20 = vpop.f32.mrf.mxu1 }
 0x3d4   : > { %2978 = vpow2.f32 %v2824_v9  ;;  %v4997_v20 = vld [vmem:[#allocation161_spill] sm:$0xff] }
 0x3d5   : > { %2980 = vtanh.f32 %v2228_v16 }
 0x3d6   : > { %2982 = vpow2.f32 %v2825_v13 }
 0x3df   : > { %v2977_v63 = vpop.eup %2976 }
 0x3e0   : > { %v2243_v53 = vadd.f32 1.0, %v2977_v63 }
 0x3e1   : > { %v2979_v17 = vpop.eup %2978 }
 0x3e2   : > { %2984 = vrcp.f32 %v2243_v53  ;;  %v2249_v52 = vadd.f32 1.0, %v2979_v17  ;;  %v2981_v24 = vpop.eup %2980 }
 0x3e3   : > { %v2983_v56 = vpop.eup %2982 }
 0x3e4   : > { %2986 = vrcp.f32 %v2249_v52  ;;  %v2256_v18 = vadd.f32 1.0, %v2983_v56  ;;  %v4998_v56 = vld [vmem:[#allocation163_spill] sm:$0xff] }
 0x3e6   : > { %2988 = vrcp.f32 %v2256_v18 }
 0x3ef   : > { %v2985_v15 = vpop.eup %2984 }
 0x3f0   : > { %v2260_v54 = vmul.f32 %v2985_v15, %v2981_v24 }
 0x3f1   : > { %v2987_v23 = vpop.eup %2986 }
 0x3f2   : > { %v2259_v8 = vmul.f32 %v2987_v23, %v4995_v26 }
 0x3f3   : > { %v2989_v13 = vpop.eup %2988 }
 0x3f4   : > { %v2261_v5 = vadd.f32 %v2260_v54, %v2259_v8 }
 0x3f6   : > { %2990 = vtanh.f32 %v2261_v5  ;;  %v4246_v63 = vsel %vm2290_vm5, %v2261_v5, %v4995_v26  ;;  %v4999_v5 = vld [vmem:[#allocation164_spill] sm:$0xff] }
 0x3f7   : > { %4996 = vst [vmem:[#allocation84_spill] sm:$0xff] %v4246_v63 }
 0x403   : > { %v2991_v16 = vpop.eup %2990 }
 0x404   : > { %v2263_v43 = vmul.f32 %v2991_v16, %v2989_v13  ;;  %v5000_v13 = vld [vmem:[#allocation162_spill] sm:$0xff] }
 0x40d   : > { %v2172_v9 = vpop.f32.mrf.mxu0  ;;  %v2213_v21 = vpop.f32.mrf.mxu1 }
 0x40e   : > { %v2236_v53 = vadd.f32 %v2172_v9, %v4997_v20  ;;  %v2238_v16 = vadd.f32 %v2213_v21, %v5000_v13 }
 0x40f   : > { %v2174_v17 = vpop.f32.mrf.mxu0  ;;  %v2215_v52 = vpop.f32.mrf.mxu1 }
 0x410   : > { %v2826_v24 = vmul.f32 -1.442695, %v2236_v53  ;;  %v2237_v15 = vadd.f32 %v2174_v17, %v4998_v56  ;;  %v2239_v63 = vadd.f32 %v2215_v52, %v4999_v5 }
 0x411   : > { %v2176_v54 = vpop.f32.mrf.mxu0  ;;  %v2217_v23 = vpop.f32.mrf.mxu1 }
 0x412   : > { %2992 = vpow2.f32 %v2826_v24  ;;  %v2827_v18 = vmul.f32 -1.442695, %v2237_v15  ;;  %v2828_v55 = vmul.f32 -1.442695, %v2239_v63  ;;  %v2292_v54 = vstv %s2291_s26 }
 0x413   : > { %v2177_v8 = vpop.f32.mrf.mxu0  ;;  %v2218_v26 = vpop.f32.mrf.mxu1  ;;  %vm2293_vm6 = vcmp.gt.s32.totalorder %v3901_v11, %v2292_v54  ;;  %v5002_v11 = vld [vmem:[#allocation112_spill] sm:$0xff]  ;;  %v2533_v54 = vstv %s2532_s28 }
 0x414   : > { %2994 = vpow2.f32 %v2827_v18  ;;  %v4261_v26 = vsel %vm2290_vm5, %v2263_v43, %v4093_v48  ;;  %v5021_v48 = vld [vmem:[#allocation141_spill] sm:$0xff] }
 0x415   : > { %2996 = vtanh.f32 %v2238_v16  ;;  %v4270_v16 = vpack.c.bf16 %v4261_v26, %v4261_v26 }
 0x416   : > { %2998 = vpow2.f32 %v2828_v55 }
 0x41f   : > { %v2993_v41 = vpop.eup %2992 }
 0x420   : > { %v2267_v9 = vadd.f32 1.0, %v2993_v41 }
 0x421   : > { %v2995_v20 = vpop.eup %2994 }
 0x422   : > { %3000 = vrcp.f32 %v2267_v9  ;;  %v2273_v53 = vadd.f32 1.0, %v2995_v20  ;;  %v2997_v17 = vpop.eup %2996 }
 0x423   : > { %v2999_v24 = vpop.eup %2998 }
 0x424   : > { %3002 = vrcp.f32 %v2273_v53  ;;  %v2280_v18 = vadd.f32 1.0, %v2999_v24 }
 0x426   : > { %3004 = vrcp.f32 %v2280_v18 }
 0x42f   : > { %v3001_v56 = vpop.eup %3000 }
 0x430   : > { %v2284_v15 = vmul.f32 %v3001_v56, %v2997_v17 }
 0x431   : > { %v3003_v23 = vpop.eup %3002 }
 0x432   : > { %v2283_v52 = vmul.f32 %v3003_v23, %v4088_v22 }
 0x433   : > { %v3005_v41 = vpop.eup %3004 }
 0x434   : > { %v2285_v63 = vadd.f32 %v2284_v15, %v2283_v52  ;;  %v5029_v52 = vld [vmem:[#allocation84_spill] sm:$0xff] }
 0x436   : > { %3006 = vtanh.f32 %v2285_v63  ;;  %v4256_v55 = vsel %vm2293_vm6, %v2285_v63, %v4088_v22  ;;  %v5020_v22 = vld [vmem:[#allocation140_spill] sm:$0xff] }
 0x443   : > { %v3007_v21 = vpop.eup %3006 }
 0x444   : > { %v2287_v8 = vmul.f32 %v3007_v21, %v3005_v41  ;;  %v3041_v41 = vld [vmem:[%s4375_s2] sm:$0xff] }
 0x445   : > { %vm2534_vm7 = vcmp.gt.s32.totalorder %v3041_v41, %v2533_v54 }
 0x446   : > { %v4264_v5 = vsel %vm2293_vm6, %v2287_v8, %v4096_v33  ;;  %v5022_v33 = vld [vmem:[#allocation142_spill] sm:$0xff] }
 0x447   : > { %v2299_v13 = vpack.c.bf16 %v4264_v5, %v4264_v5 }
 0x449   : > { %2332 = vmatprep.mubr.bf16.mxu0 %v2299_v13  ;;  %2373 = vmatprep.mubr.bf16.mxu1 %v2299_v13 }
 0x44a   : > { %2333 = vmatmul.mubr.bf16.vlgmr.msra.gmra.mxu0 %v4270_v16  ;;  %2374 = vmatmul.mubr.bf16.vlgmr.msra.gmra.mxu1 %v4270_v16 }
 0x44b   : > { %2383 = vmatpush1.bf16.msra.mxu0 %v3518_v27  ;;  %2424 = vmatpush1.bf16.msra.mxu1 %v4797_v4  ;;  %v5001_v27 = vld [vmem:[#allocation108_spill] sm:$0xff]  ;;  %v5003_v4 = vld [vmem:[#allocation113_spill] sm:$0xff] }
 0x44c   : > { %2414 = vmatprep.mubr.bf16.mxu0 %v2299_v13  ;;  %2455 = vmatprep.mubr.bf16.mxu1 %v2299_v13 }
 0x44d   : > { %2384 = vmatprep.subr.bf16.mxu0 %v4798_v45  ;;  %2425 = vmatprep.subr.bf16.mxu1 %v4799_v29  ;;  %v5004_v45 = vld [vmem:[#allocation124_spill] sm:$0xff]  ;;  %v5005_v29 = vld [vmem:[#allocation125_spill] sm:$0xff] }
 0x44f   : > { %2385 = vmatpush1.bf16.msra.mxu0 %v4800_v28  ;;  %2426 = vmatpush1.bf16.msra.mxu1 %v4801_v1  ;;  %v5006_v28 = vld [vmem:[#allocation126_spill] sm:$0xff]  ;;  %v5007_v1 = vld [vmem:[#allocation127_spill] sm:$0xff] }
 0x450   : > { %2386 = vmatprep.subr.bf16.mxu0 %v4802_v19  ;;  %2427 = vmatprep.subr.bf16.mxu1 %v4803_v7  ;;  %v5008_v19 = vld [vmem:[#allocation128_spill] sm:$0xff]  ;;  %v5009_v7 = vld [vmem:[#allocation129_spill] sm:$0xff] }
 0x453   : > { %2387 = vmatpush1.bf16.msra.mxu0 %v4804_v35  ;;  %2428 = vmatpush1.bf16.msra.mxu1 %v4805_v38  ;;  %v5010_v35 = vld [vmem:[#allocation130_spill] sm:$0xff]  ;;  %v5011_v38 = vld [vmem:[#allocation131_spill] sm:$0xff] }
 0x454   : > { %2388 = vmatprep.subr.bf16.mxu0 %v4806_v37  ;;  %2429 = vmatprep.subr.bf16.mxu1 %v4807_v61  ;;  %v5012_v37 = vld [vmem:[#allocation132_spill] sm:$0xff]  ;;  %v5013_v61 = vld [vmem:[#allocation133_spill] sm:$0xff] }
 0x457   : > { %2389 = vmatpush1.bf16.msra.mxu0 %v4808_v30  ;;  %2430 = vmatpush1.bf16.msra.mxu1 %v4809_v0  ;;  %v5014_v30 = vld [vmem:[#allocation134_spill] sm:$0xff]  ;;  %v5015_v0 = vld [vmem:[#allocation135_spill] sm:$0xff] }
 0x458   : > { %2390 = vmatprep.subr.bf16.mxu0 %v4810_v46  ;;  %2431 = vmatprep.subr.bf16.mxu1 %v4901_v36  ;;  %v5016_v46 = vld [vmem:[#allocation136_spill] sm:$0xff]  ;;  %v5023_v36 = vld [vmem:[#allocation143_spill] sm:$0xff] }
 0x45b   : > { %2391 = vmatpush1.bf16.msra.mxu0 %v4902_v12  ;;  %2432 = vmatpush1.bf16.msra.mxu1 %v4903_v10  ;;  %v5024_v12 = vld [vmem:[#allocation144_spill] sm:$0xff] }
 0x45c   : > { %2392 = vmatprep.subr.bf16.mxu0 %v4904_v57  ;;  %2433 = vmatprep.subr.bf16.mxu1 %v4905_v59  ;;  %v5025_v59 = vld [vmem:[#allocation153_spill] sm:$0xff] }
 0x45f   : > { %2393 = vmatpush1.bf16.msra.mxu0 %v4906_v60  ;;  %2434 = vmatpush1.bf16.msra.mxu1 %v4907_v3 }
 0x460   : > { %2394 = vmatprep.subr.bf16.mxu0 %v4908_v62  ;;  %2435 = vmatprep.subr.bf16.mxu1 %v4909_v42 }
 0x463   : > { %2395 = vmatpush1.bf16.msra.mxu0 %v4910_v49  ;;  %2436 = vmatpush1.bf16.msra.mxu1 %v5001_v27  ;;  %v5026_v49 = vld [vmem:[#allocation155_spill] sm:$0xff] }
 0x464   : > { %2396 = vmatprep.subr.bf16.mxu0 %v4912_v50  ;;  %2437 = vmatprep.subr.bf16.mxu1 %v4913_v51 }
 0x467   : > { %2397 = vmatpush1.bf16.msra.mxu0 %v4914_v32  ;;  %2438 = vmatpush1.bf16.msra.mxu1 %v5002_v11 }
 0x468   : > { %2398 = vmatprep.subr.bf16.mxu0 %v5003_v4  ;;  %2439 = vmatprep.subr.bf16.mxu1 %v4917_v2 }
 0x46b   : > { %2399 = vmatpush2.bf16.msra.mxu0 %v4918_v25  ;;  %2440 = vmatpush2.bf16.msra.mxu1 %v4919_v34  ;;  %v5027_v25 = vld [vmem:[#allocation156_spill] sm:$0xff] }
 0x46c   : > { %2400 = vmatprep.subr.bf16.mxu0 %v4920_v47  ;;  %2441 = vmatprep.subr.bf16.mxu1 %v4921_v31  ;;  %v5028_v47 = vld [vmem:[#allocation154_spill] sm:$0xff] }
 0x46f   : > { %2401 = vmatpush2.bf16.msra.mxu0 %v4922_v40  ;;  %2442 = vmatpush2.bf16.msra.mxu1 %v4833_v6  ;;  %v5017_v6 = vld [vmem:[#allocation137_spill] sm:$0xff] }
 0x470   : > { %2402 = vmatprep.subr.bf16.mxu0 %v4834_v44  ;;  %2443 = vmatprep.subr.bf16.mxu1 %v4835_v58  ;;  %v5018_v44 = vld [vmem:[#allocation138_spill] sm:$0xff]  ;;  %v5019_v58 = vld [vmem:[#allocation139_spill] sm:$0xff] }
 0x473   : > { %2403 = vmatpush2.bf16.msra.mxu0 %v4923_v39  ;;  %2444 = vmatpush2.bf16.msra.mxu1 %v5004_v45 }
 0x474   : > { %2404 = vmatprep.subr.bf16.mxu0 %v5005_v29  ;;  %2445 = vmatprep.subr.bf16.mxu1 %v5006_v28  ;;  %v5030_v29 = vld [vmem:[#allocation157_spill] sm:$0xff] }
 0x477   : > { %2405 = vmatpush2.bf16.msra.mxu0 %v5007_v1  ;;  %2446 = vmatpush2.bf16.msra.mxu1 %v5008_v19 }
 0x478   : > { %2406 = vmatprep.subr.bf16.mxu0 %v5009_v7  ;;  %2447 = vmatprep.subr.bf16.mxu1 %v5010_v35  ;;  %v5031_v35 = vld [vmem:[#allocation159_spill] sm:$0xff] }
 0x47b   : > { %2407 = vmatpush2.bf16.msra.mxu0 %v5011_v38  ;;  %2448 = vmatpush2.bf16.msra.mxu1 %v5012_v37 }
 0x47c   : > { %2408 = vmatprep.subr.bf16.mxu0 %v5013_v61  ;;  %2449 = vmatprep.subr.bf16.mxu1 %v5014_v30 }
 0x47f   : > { %2409 = vmatpush2.bf16.msra.mxu0 %v5015_v0  ;;  %2450 = vmatpush2.bf16.msra.mxu1 %v5016_v46 }
 0x480   : > { %2410 = vmatprep.subr.bf16.mxu0 %v5017_v6  ;;  %2451 = vmatprep.subr.bf16.mxu1 %v5018_v44  ;;  %v5032_v6 = vld [vmem:[#allocation160_spill] sm:$0xff]  ;;  %v5033_v44 = vld [vmem:[#allocation158_spill] sm:$0xff] }
 0x483   : > { %2411 = vmatpush2.bf16.msra.mxu0 %v5019_v58  ;;  %2452 = vmatpush2.bf16.msra.mxu1 %v5020_v22 }
 0x484   : > { %2412 = vmatprep.subr.bf16.mxu0 %v5021_v48  ;;  %2453 = vmatprep.subr.bf16.mxu1 %v5022_v33 }
 0x487   : > { %2413 = vmatpush2.bf16.msra.mxu0 %v5023_v36  ;;  %2454 = vmatpush2.bf16.msra.mxu1 %v5024_v12 }
 0x48a   : > { %2415 = vmatmul.mubr.bf16.vlgmr.msra.gmra.mxu0 %v4270_v16  ;;  %2456 = vmatmul.mubr.bf16.vlgmr.msra.gmra.mxu1 %v4270_v16 }
 0x50a   : > { %v2334_v10 = vpop.f32.mrf.mxu0  ;;  %v2375_v57 = vpop.f32.mrf.mxu1 }
 0x50b   : > { %v2470_v60 = vadd.f32 %v2334_v10, %v5025_v59  ;;  %v2472_v31 = vadd.f32 %v2375_v57, %v5028_v47 }
 0x50c   : > { %v2336_v3 = vpop.f32.mrf.mxu0  ;;  %v2377_v62 = vpop.f32.mrf.mxu1 }
 0x50d   : > { %v2829_v42 = vmul.f32 -1.442695, %v2470_v60  ;;  %v2471_v40 = vadd.f32 %v2336_v3, %v5026_v49  ;;  %v2473_v34 = vadd.f32 %v2377_v62, %v5027_v25  ;;  %v2535_v3 = vstv %s3251_s25 }
 0x50e   : > { %v2338_v50 = vpop.f32.mrf.mxu0  ;;  %v2379_v51 = vpop.f32.mrf.mxu1  ;;  %vm2536_vm8 = vcmp.gt.s32.totalorder %v3041_v41, %v2535_v3 }
 0x50f   : > { %3008 = vpow2.f32 %v2829_v42  ;;  %v2830_v32 = vmul.f32 -1.442695, %v2471_v40  ;;  %v2831_v14 = vmul.f32 -1.442695, %v2473_v34 }
 0x510   : > { %v2339_v39 = vpop.f32.mrf.mxu0  ;;  %v2380_v2 = vpop.f32.mrf.mxu1 }
 0x511   : > { %3010 = vpow2.f32 %v2830_v32 }
 0x512   : > { %3012 = vtanh.f32 %v2472_v31 }
 0x513   : > { %3014 = vpow2.f32 %v2831_v14 }
 0x51c   : > { %v3009_v43 = vpop.eup %3008 }
 0x51d   : > { %v2487_v9 = vadd.f32 1.0, %v3009_v43 }
 0x51e   : > { %v3011_v20 = vpop.eup %3010 }
 0x51f   : > { %3016 = vrcp.f32 %v2487_v9  ;;  %v2493_v53 = vadd.f32 1.0, %v3011_v20  ;;  %v3013_v17 = vpop.eup %3012 }
 0x520   : > { %v3015_v24 = vpop.eup %3014 }
 0x521   : > { %3018 = vrcp.f32 %v2493_v53  ;;  %v2500_v18 = vadd.f32 1.0, %v3015_v24 }
 0x523   : > { %3020 = vrcp.f32 %v2500_v18 }
 0x52c   : > { %v3017_v56 = vpop.eup %3016 }
 0x52d   : > { %v2504_v15 = vmul.f32 %v3017_v56, %v3013_v17 }
 0x52e   : > { %v3019_v23 = vpop.eup %3018 }
 0x52f   : > { %v2503_v63 = vmul.f32 %v3019_v23, %v5029_v52 }
 0x530   : > { %v3021_v13 = vpop.eup %3020 }
 0x531   : > { %v2505_v21 = vadd.f32 %v2504_v15, %v2503_v63 }
 0x533   : > { %3022 = vtanh.f32 %v2505_v21  ;;  %v2538_v8 = vsel %vm2534_vm7, %v2505_v21, %v5029_v52 }
 0x534   : > { %2542 = vst [vmem:[#allocation5] sm:$0xff] %v2538_v8 }
 0x540   : > { %v3023_v16 = vpop.eup %3022 }
 0x541   : > { %v2507_v27 = vmul.f32 %v3023_v16, %v3021_v13 }
 0x543   : > { %v2537_v11 = vsel %vm2534_vm7, %v2507_v27, %v4261_v26 }
 0x544   : > { %2541 = vst [vmem:[#allocation4] sm:$0xff] %v2537_v11 }
 0x54a   : > { %v2416_v4 = vpop.f32.mrf.mxu0  ;;  %v2457_v45 = vpop.f32.mrf.mxu1 }
 0x54b   : > { %v2480_v28 = vadd.f32 %v2416_v4, %v5030_v29  ;;  %v2482_v58 = vadd.f32 %v2457_v45, %v5033_v44 }
 0x54c   : > { %v2418_v1 = vpop.f32.mrf.mxu0  ;;  %v2459_v19 = vpop.f32.mrf.mxu1 }
 0x54d   : > { %v2832_v7 = vmul.f32 -1.442695, %v2480_v28  ;;  %v2481_v38 = vadd.f32 %v2418_v1, %v5031_v35  ;;  %v2483_v26 = vadd.f32 %v2459_v19, %v5032_v6 }
 0x54e   : > { %v2420_v37 = vpop.f32.mrf.mxu0  ;;  %v2461_v61 = vpop.f32.mrf.mxu1 }
 0x54f   : > { %3024 = vpow2.f32 %v2832_v7  ;;  %v2833_v30 = vmul.f32 -1.442695, %v2481_v38  ;;  %v2834_v22 = vmul.f32 -1.442695, %v2483_v26 }
 0x550   : > { %v2421_v0 = vpop.f32.mrf.mxu0  ;;  %v2462_v46 = vpop.f32.mrf.mxu1 }
 0x551   : > { %3026 = vpow2.f32 %v2833_v30 }
 0x552   : > { %3028 = vtanh.f32 %v2482_v58 }
 0x553   : > { %3030 = vpow2.f32 %v2834_v22 }
 0x55c   : > { %v3025_v48 = vpop.eup %3024 }
 0x55d   : > { %v2511_v33 = vadd.f32 1.0, %v3025_v48 }
 0x55e   : > { %v3027_v36 = vpop.eup %3026 }
 0x55f   : > { %3032 = vrcp.f32 %v2511_v33  ;;  %v2517_v12 = vadd.f32 1.0, %v3027_v36  ;;  %v3029_v10 = vpop.eup %3028 }
 0x560   : > { %v3031_v57 = vpop.eup %3030 }
 0x561   : > { %3034 = vrcp.f32 %v2517_v12  ;;  %v2524_v42 = vadd.f32 1.0, %v3031_v57 }
 0x563   : > { %3036 = vrcp.f32 %v2524_v42 }
 0x56c   : > { %v3033_v59 = vpop.eup %3032 }
 0x56d   : > { %v2528_v60 = vmul.f32 %v3033_v59, %v3029_v10 }
 0x56e   : > { %v3035_v62 = vpop.eup %3034 }
 0x56f   : > { %v2527_v49 = vmul.f32 %v3035_v62, %v4256_v55 }
 0x570   : > { %v3037_v51 = vpop.eup %3036 }
 0x571   : > { %v2529_v40 = vadd.f32 %v2528_v60, %v2527_v49 }
 0x573   : > { %3038 = vtanh.f32 %v2529_v40  ;;  %v2540_v50 = vsel %vm2536_vm8, %v2529_v40, %v4256_v55 }
 0x574   : > { %2544 = vst [vmem:[#allocation7] sm:$0xff] %v2540_v50 }
 0x580   : > { %v3039_v32 = vpop.eup %3038  ;;  %2548 = sbr.rel (%p2835_p6) target bundleno = 1414 (0x586), region = 68 }
 0x581   : > { %v2531_v39 = vmul.f32 %v3039_v32, %v3037_v51 }
 0x583   : > { %v2539_v2 = vsel %vm2536_vm8, %v2531_v39, %v4264_v5 }
 0x584   : > { %2543 = vst [vmem:[#allocation6] sm:$0xff] %v2539_v2 }
 0x585   : > { %2549 = vst [vmem:[#allocation13] sm:$0xff] %v2537_v11  ;;  %2551 = vst [vmem:[#allocation13 + $0x8] sm:$0xff] %v2539_v2 }
 0x586 PF: > { %p2863_p7 = scmp.eq.s32.totalorder %s3200_s30, 1  ;;  %s3146_s23 = smov [#allocation13]  }
 0x587   : > { %s2558_s25 = sshll.u32 %s3146_s23, 4  ;;  %s2559_s25 = int_to_ptr.vmem [resolvable:$true] %s2558_s25 }
 0x588   : > { %s3094_s10 = scalar_lea.vmem %s2559_s25, 256  ;;  %p3101_p1 = scmp.lt.s32.totalorder %s2559_s25, %s2559_s25 }
 0x589   : > { %p3095_p12 = scmp.ne.s32.totalorder %s2559_s25, %s3094_s10  ;;  %p3102_p5 = scmp.lt.s32.totalorder %s3094_s10, %s3094_s10 }
 0x58b   : > { %p3096_p13 = pnand %p3095_p12, %p2863_p7  ;;  %p3103_p8 = por %p3102_p5, %p3101_p1 }
 0x58d   : > { %p3097_p0 = pneg %p3096_p13 }
 0x58f   : > { %p3104_p9 = pnand %p3103_p8, %p3097_p0 }
 0x591   : > { %3107 = shalt.err (!%p3104_p9)
}
 0x592   : > { %s3147_s12 = smov 128   ;;  %s3148_s13 = smov 8  }
 0x593   : > { %2849 = dma.vmem_to_hbm [thread:$0]  (%p2863_p7), %s2559_s25, 256, %s4381_s8, [#allocation10], %s3147_s12, %s3147_s12, %s3148_s13  }
 0x594   : > { %3131 = dma.done.wait (%p2863_p7), [#allocation10], 256  }
 0x595   : > { %3133 = vsyncadd (%p2863_p7), [#allocation10], 4294967040 }
 0x596 PF: > { %s21_s27 = sadd.s32 1, %s3136_s27  }
 0x597   : > { %p18_p11 = scmp.ge.s32.totalorder %s21_s27, 4  }
 0x599   :  { %20 = sbr.rel (!%p18_p11) target bundleno = 3 (0x3), region = 108 }
 0x59e   :  { %2574 = vsyncpa [#allocation9], 1 }
 0x59f   :  { %2576 = vsyncpa [#allocation9 + $0x1], 1 }
 0x5a0   :  { %2577 = vsyncpa [#allocation12], 1 }
 0x5a1   :  { %2578 = vsyncpa [#allocation10], 1 }
 0x5a2   :  { %2580 = vsyncpa [#allocation10 + $0x1], 1 }

</bundles_post_ra>
